<compile_context>
chip_gen: v7x
topology: tpu7x:2x2x1
jax: 0.10.0
libtpu: 0.0.40
codegen_flags: <defaults>
</compile_context>

<pallas_src>
import functools
import math

import jax
import jax.numpy as jnp
from jax.experimental import pallas as pl
from jax.experimental.pallas import tpu as pltpu


# ----------------------------------------------------------------------------- kernel
def lstm_model_kernel(ids_ref, labels_ref, t0_ref, whh0_ref, wcat_ref, b_ref,
                      wh_ref, bh_ref, out_ref, *, b_real):
    """Whole forward pass on one TensorCore.

    ids_ref    : [S*Bp, 1]      int32   time-major flattened token ids (row = t*Bp + b)
    labels_ref : [Bp, S]        f32     zero-padded labels
    t0_ref     : [Vp, 4*Hp]     f32     host-folded layer-0 table (emb->lin->W_ih0 + biases)
    whh0_ref   : [Hp, 4*Hp]     bf16    layer-0 hidden->gate weights, gate order (i,f,o,g)
    wcat_ref   : [L-1, 2Hp, 4Hp] bf16   layers>=1: [W_ih ; W_hh] stacked on the input dim
    b_ref      : [L-1, 1, 4Hp]  f32     layers>=1: folded b_ih + b_hh
    wh_ref     : [Hp, 1]        f32     head weight (transposed, zero-padded rows)
    bh_ref     : [1, 1]         f32     head bias
    out_ref    : [Bp, 128]      f32     lane 0 = logits, lane 1 = loss, rest 0
    """
    SBp = ids_ref.shape[0]
    Vp = t0_ref.shape[0]
    Hp = whh0_ref.shape[0]
    Bp, S = labels_ref.shape
    L = wcat_ref.shape[0] + 1

    f32 = jnp.float32
    bf16 = jnp.bfloat16

    # --- layer-0 gate pre-activations for ALL timesteps in one f32 MXU matmul ---
    ids = ids_ref[...]                                                    # [SBp, 1] int32
    onehot = (jax.lax.broadcasted_iota(jnp.int32, (SBp, Vp), 1) == ids).astype(f32)
    gates0 = jnp.dot(onehot, t0_ref[...], preferred_element_type=f32)     # [SBp, 4Hp]

    # Hoisted weight loads (values reused across the unrolled recurrence).
    whh0 = whh0_ref[...]                                                  # [Hp, 4Hp] bf16
    wcats = [wcat_ref[l] for l in range(L - 1)]                           # [2Hp, 4Hp] bf16
    biases = [b_ref[l] for l in range(L - 1)]                             # [1, 4Hp]  f32

    def cell(g, c_prev):
        # Gate lane blocks (i, f, o, g), each exactly Hp = 128 lanes -> whole-vreg slices.
        i_g = jax.nn.sigmoid(g[:, 0 * Hp:1 * Hp])
        f_g = jax.nn.sigmoid(g[:, 1 * Hp:2 * Hp])
        o_g = jax.nn.sigmoid(g[:, 2 * Hp:3 * Hp])
        g_g = jnp.tanh(g[:, 3 * Hp:4 * Hp])
        c_new = f_g * c_prev + i_g * g_g
        h_new = o_g * jnp.tanh(c_new)
        return h_new, c_new

    h = [jnp.zeros((Bp, Hp), f32) for _ in range(L)]
    c = [jnp.zeros((Bp, Hp), f32) for _ in range(L)]

    # --- wavefront over (layer, time): at wave w, layer l runs timestep t = w - l. ---
    # Layers are visited top-down within a wave so layer l reads its lower layer's h
    # from the previous wave; two independent recurrence chains are in flight.
    for w in range(S + L - 1):
        for l in range(L - 1, -1, -1):
            t = w - l
            if 0 <= t < S:
                if l == 0:
                    g = gates0[t * Bp:(t + 1) * Bp, :] + jnp.dot(
                        h[0].astype(bf16), whh0, preferred_element_type=f32)
                else:
                    hcat = jnp.concatenate([h[l - 1], h[l]], axis=1).astype(bf16)
                    g = jnp.dot(hcat, wcats[l - 1],
                                preferred_element_type=f32) + biases[l - 1]
                h[l], c[l] = cell(g, c[l])
        # inter-layer dropout (p=0.1) is identity at eval time.

    # --- head on the last timestep of the top layer ---
    logits = jnp.dot(h[L - 1], wh_ref[...],
                     preferred_element_type=f32) + bh_ref[...]            # [Bp, 1]

    # --- loss = BCEWithLogits(logits, any(labels, dim=1)), padded rows masked out ---
    y = (jnp.sum(jnp.abs(labels_ref[...]), axis=1, keepdims=True) > 0.0).astype(f32)
    per = (jnp.maximum(logits, 0.0) - logits * y
           + jnp.log1p(jnp.exp(-jnp.abs(logits))))                        # [Bp, 1]
    row = jax.lax.broadcasted_iota(jnp.int32, (Bp, 1), 0)
    loss = jnp.sum(jnp.where(row < b_real, per, 0.0)) / b_real

    # --- single lane-dense output vreg: lane 0 = logits, lane 1 = loss ---
    lane = jax.lax.broadcasted_iota(jnp.int32, out_ref.shape, 1)
    out_ref[...] = jnp.where(lane == 0, logits, jnp.where(lane == 1, loss, 0.0))


# ----------------------------------------------------------------------------- wrapper
@functools.partial(jax.jit, static_argnames=("sequence_len",))
def lstm_model_forward(input_ids, labels, packed, sequence_len):
    """Single jitted dispatch: pad batch to a sublane group, tiny transpose, one pallas_call."""
    B, S = input_ids.shape
    assert S == sequence_len
    Bp = max(8, -(-B // 8) * 8)          # pad batch to one (or more) f32 sublane groups
    Hp = packed["whh0"].shape[0]         # lane-padded hidden size (128)

    ids_p = jnp.pad(input_ids.astype(jnp.int32), ((0, Bp - B), (0, 0)))
    labels_p = jnp.pad(labels.astype(jnp.float32), ((0, Bp - B), (0, 0)))
    ids_tm = jnp.transpose(ids_p).reshape(S * Bp, 1)          # time-major row = t*Bp + b

    vmem = pl.BlockSpec(memory_space=pltpu.MemorySpace.VMEM)
    out = pl.pallas_call(
        functools.partial(lstm_model_kernel, b_real=B),
        out_shape=jax.ShapeDtypeStruct((Bp, 128), jnp.float32),
        in_specs=[vmem] * 8,
        out_specs=vmem,
    )(ids_tm, labels_p,
      packed["t0"], packed["whh0"], packed["wcat"], packed["b"],
      packed["wh"], packed["bh"])

    return out[0, 1], out[:B, 0]         # (loss, output), like the PyTorch module


# ----------------------------------------------------------------------------- params
def init_params(key, *, num_layers, hidden_size, input_size, field_input_size, vocab_size):
    """PyTorch-layout params (weights stored transposed as [in, out]; gate order i,f,g,o)."""
    ks = jax.random.split(key, 10)
    H, I, L, F, V = hidden_size, input_size, num_layers, field_input_size, vocab_size
    k_lin = 1.0 / math.sqrt(I)
    k_lstm = 1.0 / math.sqrt(H)
    u = jax.random.uniform
    return {
        "emb": (0.1 * jax.random.normal(ks[0], (V, F))).astype(jnp.float32),
        "wl":  u(ks[1], (I, H), minval=-k_lin, maxval=k_lin, dtype=jnp.float32),
        "bl":  u(ks[2], (1, H), minval=-k_lin, maxval=k_lin, dtype=jnp.float32),
        "wih": u(ks[3], (L, H, 4 * H), minval=-k_lstm, maxval=k_lstm, dtype=jnp.float32),
        "whh": u(ks[4], (L, H, 4 * H), minval=-k_lstm, maxval=k_lstm, dtype=jnp.float32),
        "bih": u(ks[5], (L, 1, 4 * H), minval=-k_lstm, maxval=k_lstm, dtype=jnp.float32),
        "bhh": u(ks[6], (L, 1, 4 * H), minval=-k_lstm, maxval=k_lstm, dtype=jnp.float32),
        # head: init_weights() -> weight ~ U(-0.1, 0.1), bias = 0
        "wh":  u(ks[7], (H, 1), minval=-0.1, maxval=0.1, dtype=jnp.float32),
        "bh":  jnp.zeros((1, 1), jnp.float32),
    }


def pack_params(params, *, lane_pad=128):
    """One-time host-side prep (all numerics f32):
       * permute gate columns (i,f,g,o) -> (i,f,o,g),
       * zero-pad each gate block H -> lane_pad and every hidden input dim H -> lane_pad,
       * fold emb @ W_lin @ W_ih0 (+ all layer-0 biases) into one [Vp, 4*Hp] table,
       * fold b_ih + b_hh for layers >= 1 and stack [W_ih ; W_hh],
       * cast recurrence weights to bf16 (table / head stay f32)."""
    H = params["wl"].shape[1]
    L = params["wih"].shape[0]
    assert L >= 2, "kernel packing assumes num_layers >= 2"
    Hp = lane_pad
    V = params["emb"].shape[0]
    Vp = -(-V // 128) * 128

    def perm(w):                      # last-dim gate blocks (i,f,g,o) -> (i,f,o,g)
        i, f, g, o = (w[..., k * H:(k + 1) * H] for k in range(4))
        return jnp.concatenate([i, f, o, g], axis=-1)

    def pad_gates(w):                 # pad each of the 4 gate blocks H -> Hp (last dim)
        cfg = [(0, 0)] * (w.ndim - 1)
        return jnp.concatenate(
            [jnp.pad(w[..., k * H:(k + 1) * H], cfg + [(0, Hp - H)]) for k in range(4)],
            axis=-1)

    def pad_axis(w, to, axis):
        cfg = [(0, 0)] * w.ndim
        cfg[axis] = (0, to - w.shape[axis])
        return jnp.pad(w, cfg)

    b_fold = params["bih"] + params["bhh"]                                  # [L, 1, 4H]

    # Layer 0: whole affine prologue folded into one table.
    t0 = ((params["emb"] @ params["wl"]) @ params["wih"][0]
          + params["bl"] @ params["wih"][0] + b_fold[0])                    # [V, 4H]
    t0 = pad_axis(pad_gates(perm(t0)), Vp, 0).astype(jnp.float32)           # [Vp, 4Hp]

    whh0 = pad_axis(pad_gates(perm(params["whh"][0])), Hp, 0).astype(jnp.bfloat16)

    wcat, b = [], []
    for l in range(1, L):
        wih_l = pad_axis(pad_gates(perm(params["wih"][l])), Hp, 0)          # [Hp, 4Hp]
        whh_l = pad_axis(pad_gates(perm(params["whh"][l])), Hp, 0)          # [Hp, 4Hp]
        wcat.append(jnp.concatenate([wih_l, whh_l], axis=0))                # [2Hp, 4Hp]
        b.append(pad_gates(perm(b_fold[l])))                                # [1, 4Hp]
    wcat = jnp.stack(wcat).astype(jnp.bfloat16)                             # [L-1, 2Hp, 4Hp]
    b = jnp.stack(b).astype(jnp.float32)                                    # [L-1, 1, 4Hp]

    wh = pad_axis(params["wh"], Hp, 0).astype(jnp.float32)                  # [Hp, 1]
    return {"t0": t0, "whh0": whh0, "wcat": wcat, "b": b,
            "wh": wh, "bh": params["bh"].astype(jnp.float32)}


# ----------------------------------------------------------------------------- reference
def reference_forward(input_ids, labels, params, sequence_len):
    """Pure-JAX f32 reference with the original PyTorch layout (gate order i,f,g,o)."""
    H = params["wl"].shape[1]
    L = params["wih"].shape[0]
    B = input_ids.shape[0]
    x = params["emb"][input_ids] @ params["wl"] + params["bl"]              # [B, S, H]
    seq = x
    for l in range(L):
        h = jnp.zeros((B, H), jnp.float32)
        c = jnp.zeros((B, H), jnp.float32)
        outs = []
        for t in range(sequence_len):
            g = (seq[:, t, :] @ params["wih"][l] + h @ params["whh"][l]
                 + params["bih"][l] + params["bhh"][l])
            i_g = jax.nn.sigmoid(g[:, 0:H])
            f_g = jax.nn.sigmoid(g[:, H:2 * H])
            g_g = jnp.tanh(g[:, 2 * H:3 * H])
            o_g = jax.nn.sigmoid(g[:, 3 * H:4 * H])
            c = f_g * c + i_g * g_g
            h = o_g * jnp.tanh(c)
            outs.append(h)
        seq = jnp.stack(outs, axis=1)
    logits = (seq[:, -1, :] @ params["wh"] + params["bh"])[:, 0]            # [B]
    y = jnp.any(labels != 0.0, axis=1).astype(jnp.float32)
    per = jnp.maximum(logits, 0.0) - logits * y + jnp.log1p(jnp.exp(-jnp.abs(logits)))
    return jnp.mean(per), logits


# ----------------------------------------------------------------------------- main
if __name__ == "__main__":
    # Module hyper-params (use_embeddings=False branch).
    sequence_len = 8
    num_layers = 2
    hidden_size = 32
    input_size = 16
    field_input_size = 16
    vocab_size = 50
    batch = 2

    key = jax.random.PRNGKey(0)
    k_ids, k_lab, k_par = jax.random.split(key, 3)

    input_ids = jax.random.randint(k_ids, (batch, sequence_len), 0, vocab_size,
                                   dtype=jnp.int32)
    labels = jax.random.bernoulli(k_lab, 0.5, (batch, sequence_len)).astype(jnp.float32)

    params = init_params(k_par,
                         num_layers=num_layers, hidden_size=hidden_size,
                         input_size=input_size, field_input_size=field_input_size,
                         vocab_size=vocab_size)
    packed = pack_params(params)

    loss, output = lstm_model_forward(input_ids, labels, packed, sequence_len)
    jax.block_until_ready((loss, output))

    ref_loss, ref_out = reference_forward(input_ids, labels, params, sequence_len)
    assert output.shape == (batch,)
    assert loss.shape == ()
    # bf16 recurrence operands -> loose tolerance vs the f32 reference.
    assert jnp.allclose(output, ref_out, atol=2e-2, rtol=2e-2), (output, ref_out)
    assert jnp.allclose(loss, ref_loss, atol=2e-2, rtol=2e-2), (loss, ref_loss)
    print("KERNEL_OK")
</pallas_src>

<mosaic_0001>
module attributes {stable_mosaic.version = 11 : i64} {
  func.func @lstm_model_kernel(%arg0: memref<64x1xi32, #tpu.memory_space<vmem>>, %arg1: memref<8x8xf32, #tpu.memory_space<vmem>>, %arg2: memref<128x512xf32, #tpu.memory_space<vmem>>, %arg3: memref<128x512xbf16, #tpu.memory_space<vmem>>, %arg4: memref<1x256x512xbf16, #tpu.memory_space<vmem>>, %arg5: memref<1x1x512xf32, #tpu.memory_space<vmem>>, %arg6: memref<128x1xf32, #tpu.memory_space<vmem>>, %arg7: memref<1x1xf32, #tpu.memory_space<vmem>>, %arg8: memref<8x128xf32, #tpu.memory_space<vmem>>) attributes {dimension_semantics = [], scalar_prefetch = 0 : i64, scratch_operands = 0 : i64, tpu.core_type = #tpu.core_type<tc>} {
    %c0 = arith.constant 0 : index
    %c0_0 = arith.constant 0 : index
    %0 = vector.load %arg0[%c0, %c0_0] : memref<64x1xi32, #tpu.memory_space<vmem>>, vector<64x1xi32>
    %1 = tpu.iota {dimensions = array<i32: 1>} : vector<64x128xi32>
    %2 = vector.broadcast %0 : vector<64x1xi32> to vector<64x128xi32>
    %3 = arith.cmpi eq, %1, %2 : vector<64x128xi32>
    %4 = arith.extui %3 : vector<64x128xi1> to vector<64x128xi32>
    %5 = arith.sitofp %4 : vector<64x128xi32> to vector<64x128xf32>
    %c0_1 = arith.constant 0 : index
    %c0_2 = arith.constant 0 : index
    %6 = vector.load %arg2[%c0_1, %c0_2] : memref<128x512xf32, #tpu.memory_space<vmem>>, vector<128x512xf32>
    %cst = arith.constant dense<0.000000e+00> : vector<64x512xf32>
    %7 = tpu.matmul %5, %6, %cst {dimension_numbers = #tpu.dot_dimension_numbers<[1], [0], [0], [1], [0, 0, 1, 1], [], []>} : vector<64x128xf32>, vector<128x512xf32>, vector<64x512xf32> -> vector<64x512xf32>
    %c0_3 = arith.constant 0 : index
    %c0_4 = arith.constant 0 : index
    %8 = vector.load %arg3[%c0_3, %c0_4] : memref<128x512xbf16, #tpu.memory_space<vmem>>, vector<128x512xbf16>
    %c0_5 = arith.constant 0 : index
    %c0_6 = arith.constant 0 : index
    %c0_7 = arith.constant 0 : index
    %9 = vector.load %arg4[%c0_5, %c0_6, %c0_7] : memref<1x256x512xbf16, #tpu.memory_space<vmem>>, vector<1x256x512xbf16>
    %10 = vector.shape_cast %9 : vector<1x256x512xbf16> to vector<256x512xbf16>
    %c0_8 = arith.constant 0 : index
    %c0_9 = arith.constant 0 : index
    %c0_10 = arith.constant 0 : index
    %11 = vector.load %arg5[%c0_8, %c0_9, %c0_10] : memref<1x1x512xf32, #tpu.memory_space<vmem>>, vector<1x1x512xf32>
    %12 = vector.shape_cast %11 : vector<1x1x512xf32> to vector<1x512xf32>
    %cst_11 = arith.constant 0.000000e+00 : f32
    %13 = vector.broadcast %cst_11 : f32 to vector<8x128xf32>
    %cst_12 = arith.constant 0.000000e+00 : f32
    %14 = vector.broadcast %cst_12 : f32 to vector<8x128xf32>
    %cst_13 = arith.constant 0.000000e+00 : f32
    %15 = vector.broadcast %cst_13 : f32 to vector<8x128xf32>
    %cst_14 = arith.constant 0.000000e+00 : f32
    %16 = vector.broadcast %cst_14 : f32 to vector<8x128xf32>
    %17 = vector.extract_strided_slice %7 {offsets = [0, 0], sizes = [8, 512], strides = [1, 1]} : vector<64x512xf32> to vector<8x512xf32>
    %18 = arith.truncf %13 : vector<8x128xf32> to vector<8x128xbf16>
    %cst_15 = arith.constant dense<0.000000e+00> : vector<8x512xf32>
    %19 = tpu.matmul %18, %8, %cst_15 {dimension_numbers = #tpu.dot_dimension_numbers<[1], [0], [0], [1], [0, 0, 1, 1], [], []>} : vector<8x128xbf16>, vector<128x512xbf16>, vector<8x512xf32> -> vector<8x512xf32>
    %20 = arith.addf %17, %19 : vector<8x512xf32>
    %21 = vector.extract_strided_slice %20 {offsets = [0, 0], sizes = [8, 128], strides = [1, 1]} : vector<8x512xf32> to vector<8x128xf32>
    %22 = arith.negf %21 : vector<8x128xf32>
    %23 = math.exp %22 : vector<8x128xf32>
    %cst_16 = arith.constant 1.000000e+00 : f32
    %24 = vector.broadcast %cst_16 : f32 to vector<8x128xf32>
    %25 = arith.addf %24, %23 : vector<8x128xf32>
    %26 = arith.divf %24, %25 : vector<8x128xf32>
    %27 = vector.extract_strided_slice %20 {offsets = [0, 128], sizes = [8, 128], strides = [1, 1]} : vector<8x512xf32> to vector<8x128xf32>
    %28 = arith.negf %27 : vector<8x128xf32>
    %29 = math.exp %28 : vector<8x128xf32>
    %cst_17 = arith.constant 1.000000e+00 : f32
    %30 = vector.broadcast %cst_17 : f32 to vector<8x128xf32>
    %31 = arith.addf %30, %29 : vector<8x128xf32>
    %32 = arith.divf %30, %31 : vector<8x128xf32>
    %33 = vector.extract_strided_slice %20 {offsets = [0, 256], sizes = [8, 128], strides = [1, 1]} : vector<8x512xf32> to vector<8x128xf32>
    %34 = arith.negf %33 : vector<8x128xf32>
    %35 = math.exp %34 : vector<8x128xf32>
    %cst_18 = arith.constant 1.000000e+00 : f32
    %36 = vector.broadcast %cst_18 : f32 to vector<8x128xf32>
    %37 = arith.addf %36, %35 : vector<8x128xf32>
    %38 = arith.divf %36, %37 : vector<8x128xf32>
    %39 = vector.extract_strided_slice %20 {offsets = [0, 384], sizes = [8, 128], strides = [1, 1]} : vector<8x512xf32> to vector<8x128xf32>
    %40 = math.tanh %39 : vector<8x128xf32>
    %41 = arith.mulf %32, %15 : vector<8x128xf32>
    %42 = arith.mulf %26, %40 : vector<8x128xf32>
    %43 = arith.addf %41, %42 : vector<8x128xf32>
    %44 = math.tanh %43 : vector<8x128xf32>
    %45 = arith.mulf %38, %44 : vector<8x128xf32>
    %46 = tpu.concatenate %45, %14 in 1 : vector<8x128xf32>, vector<8x128xf32> -> vector<8x256xf32>
    %47 = arith.truncf %46 : vector<8x256xf32> to vector<8x256xbf16>
    %cst_19 = arith.constant dense<0.000000e+00> : vector<8x512xf32>
    %48 = tpu.matmul %47, %10, %cst_19 {dimension_numbers = #tpu.dot_dimension_numbers<[1], [0], [0], [1], [0, 0, 1, 1], [], []>} : vector<8x256xbf16>, vector<256x512xbf16>, vector<8x512xf32> -> vector<8x512xf32>
    %49 = vector.broadcast %12 : vector<1x512xf32> to vector<8x512xf32>
    %50 = arith.addf %48, %49 : vector<8x512xf32>
    %51 = vector.extract_strided_slice %50 {offsets = [0, 0], sizes = [8, 128], strides = [1, 1]} : vector<8x512xf32> to vector<8x128xf32>
    %52 = arith.negf %51 : vector<8x128xf32>
    %53 = math.exp %52 : vector<8x128xf32>
    %cst_20 = arith.constant 1.000000e+00 : f32
    %54 = vector.broadcast %cst_20 : f32 to vector<8x128xf32>
    %55 = arith.addf %54, %53 : vector<8x128xf32>
    %56 = arith.divf %54, %55 : vector<8x128xf32>
    %57 = vector.extract_strided_slice %50 {offsets = [0, 128], sizes = [8, 128], strides = [1, 1]} : vector<8x512xf32> to vector<8x128xf32>
    %58 = arith.negf %57 : vector<8x128xf32>
    %59 = math.exp %58 : vector<8x128xf32>
    %cst_21 = arith.constant 1.000000e+00 : f32
    %60 = vector.broadcast %cst_21 : f32 to vector<8x128xf32>
    %61 = arith.addf %60, %59 : vector<8x128xf32>
    %62 = arith.divf %60, %61 : vector<8x128xf32>
    %63 = vector.extract_strided_slice %50 {offsets = [0, 256], sizes = [8, 128], strides = [1, 1]} : vector<8x512xf32> to vector<8x128xf32>
    %64 = arith.negf %63 : vector<8x128xf32>
    %65 = math.exp %64 : vector<8x128xf32>
    %cst_22 = arith.constant 1.000000e+00 : f32
    %66 = vector.broadcast %cst_22 : f32 to vector<8x128xf32>
    %67 = arith.addf %66, %65 : vector<8x128xf32>
    %68 = arith.divf %66, %67 : vector<8x128xf32>
    %69 = vector.extract_strided_slice %50 {offsets = [0, 384], sizes = [8, 128], strides = [1, 1]} : vector<8x512xf32> to vector<8x128xf32>
    %70 = math.tanh %69 : vector<8x128xf32>
    %71 = arith.mulf %62, %16 : vector<8x128xf32>
    %72 = arith.mulf %56, %70 : vector<8x128xf32>
    %73 = arith.addf %71, %72 : vector<8x128xf32>
    %74 = math.tanh %73 : vector<8x128xf32>
    %75 = arith.mulf %68, %74 : vector<8x128xf32>
    %76 = vector.extract_strided_slice %7 {offsets = [8, 0], sizes = [8, 512], strides = [1, 1]} : vector<64x512xf32> to vector<8x512xf32>
    %77 = arith.truncf %45 : vector<8x128xf32> to vector<8x128xbf16>
    %cst_23 = arith.constant dense<0.000000e+00> : vector<8x512xf32>
    %78 = tpu.matmul %77, %8, %cst_23 {dimension_numbers = #tpu.dot_dimension_numbers<[1], [0], [0], [1], [0, 0, 1, 1], [], []>} : vector<8x128xbf16>, vector<128x512xbf16>, vector<8x512xf32> -> vector<8x512xf32>
    %79 = arith.addf %76, %78 : vector<8x512xf32>
    %80 = vector.extract_strided_slice %79 {offsets = [0, 0], sizes = [8, 128], strides = [1, 1]} : vector<8x512xf32> to vector<8x128xf32>
    %81 = arith.negf %80 : vector<8x128xf32>
    %82 = math.exp %81 : vector<8x128xf32>
    %cst_24 = arith.constant 1.000000e+00 : f32
    %83 = vector.broadcast %cst_24 : f32 to vector<8x128xf32>
    %84 = arith.addf %83, %82 : vector<8x128xf32>
    %85 = arith.divf %83, %84 : vector<8x128xf32>
    %86 = vector.extract_strided_slice %79 {offsets = [0, 128], sizes = [8, 128], strides = [1, 1]} : vector<8x512xf32> to vector<8x128xf32>
    %87 = arith.negf %86 : vector<8x128xf32>
    %88 = math.exp %87 : vector<8x128xf32>
    %cst_25 = arith.constant 1.000000e+00 : f32
    %89 = vector.broadcast %cst_25 : f32 to vector<8x128xf32>
    %90 = arith.addf %89, %88 : vector<8x128xf32>
    %91 = arith.divf %89, %90 : vector<8x128xf32>
    %92 = vector.extract_strided_slice %79 {offsets = [0, 256], sizes = [8, 128], strides = [1, 1]} : vector<8x512xf32> to vector<8x128xf32>
    %93 = arith.negf %92 : vector<8x128xf32>
    %94 = math.exp %93 : vector<8x128xf32>
    %cst_26 = arith.constant 1.000000e+00 : f32
    %95 = vector.broadcast %cst_26 : f32 to vector<8x128xf32>
    %96 = arith.addf %95, %94 : vector<8x128xf32>
    %97 = arith.divf %95, %96 : vector<8x128xf32>
    %98 = vector.extract_strided_slice %79 {offsets = [0, 384], sizes = [8, 128], strides = [1, 1]} : vector<8x512xf32> to vector<8x128xf32>
    %99 = math.tanh %98 : vector<8x128xf32>
    %100 = arith.mulf %91, %43 : vector<8x128xf32>
    %101 = arith.mulf %85, %99 : vector<8x128xf32>
    %102 = arith.addf %100, %101 : vector<8x128xf32>
    %103 = math.tanh %102 : vector<8x128xf32>
    %104 = arith.mulf %97, %103 : vector<8x128xf32>
    %105 = tpu.concatenate %104, %75 in 1 : vector<8x128xf32>, vector<8x128xf32> -> vector<8x256xf32>
    %106 = arith.truncf %105 : vector<8x256xf32> to vector<8x256xbf16>
    %cst_27 = arith.constant dense<0.000000e+00> : vector<8x512xf32>
    %107 = tpu.matmul %106, %10, %cst_27 {dimension_numbers = #tpu.dot_dimension_numbers<[1], [0], [0], [1], [0, 0, 1, 1], [], []>} : vector<8x256xbf16>, vector<256x512xbf16>, vector<8x512xf32> -> vector<8x512xf32>
    %108 = vector.broadcast %12 : vector<1x512xf32> to vector<8x512xf32>
    %109 = arith.addf %107, %108 : vector<8x512xf32>
    %110 = vector.extract_strided_slice %109 {offsets = [0, 0], sizes = [8, 128], strides = [1, 1]} : vector<8x512xf32> to vector<8x128xf32>
    %111 = arith.negf %110 : vector<8x128xf32>
    %112 = math.exp %111 : vector<8x128xf32>
    %cst_28 = arith.constant 1.000000e+00 : f32
    %113 = vector.broadcast %cst_28 : f32 to vector<8x128xf32>
    %114 = arith.addf %113, %112 : vector<8x128xf32>
    %115 = arith.divf %113, %114 : vector<8x128xf32>
    %116 = vector.extract_strided_slice %109 {offsets = [0, 128], sizes = [8, 128], strides = [1, 1]} : vector<8x512xf32> to vector<8x128xf32>
    %117 = arith.negf %116 : vector<8x128xf32>
    %118 = math.exp %117 : vector<8x128xf32>
    %cst_29 = arith.constant 1.000000e+00 : f32
    %119 = vector.broadcast %cst_29 : f32 to vector<8x128xf32>
    %120 = arith.addf %119, %118 : vector<8x128xf32>
    %121 = arith.divf %119, %120 : vector<8x128xf32>
    %122 = vector.extract_strided_slice %109 {offsets = [0, 256], sizes = [8, 128], strides = [1, 1]} : vector<8x512xf32> to vector<8x128xf32>
    %123 = arith.negf %122 : vector<8x128xf32>
    %124 = math.exp %123 : vector<8x128xf32>
    %cst_30 = arith.constant 1.000000e+00 : f32
    %125 = vector.broadcast %cst_30 : f32 to vector<8x128xf32>
    %126 = arith.addf %125, %124 : vector<8x128xf32>
    %127 = arith.divf %125, %126 : vector<8x128xf32>
    %128 = vector.extract_strided_slice %109 {offsets = [0, 384], sizes = [8, 128], strides = [1, 1]} : vector<8x512xf32> to vector<8x128xf32>
    %129 = math.tanh %128 : vector<8x128xf32>
    %130 = arith.mulf %121, %73 : vector<8x128xf32>
    %131 = arith.mulf %115, %129 : vector<8x128xf32>
    %132 = arith.addf %130, %131 : vector<8x128xf32>
    %133 = math.tanh %132 : vector<8x128xf32>
    %134 = arith.mulf %127, %133 : vector<8x128xf32>
    %135 = vector.extract_strided_slice %7 {offsets = [16, 0], sizes = [8, 512], strides = [1, 1]} : vector<64x512xf32> to vector<8x512xf32>
    %136 = arith.truncf %104 : vector<8x128xf32> to vector<8x128xbf16>
    %cst_31 = arith.constant dense<0.000000e+00> : vector<8x512xf32>
    %137 = tpu.matmul %136, %8, %cst_31 {dimension_numbers = #tpu.dot_dimension_numbers<[1], [0], [0], [1], [0, 0, 1, 1], [], []>} : vector<8x128xbf16>, vector<128x512xbf16>, vector<8x512xf32> -> vector<8x512xf32>
    %138 = arith.addf %135, %137 : vector<8x512xf32>
    %139 = vector.extract_strided_slice %138 {offsets = [0, 0], sizes = [8, 128], strides = [1, 1]} : vector<8x512xf32> to vector<8x128xf32>
    %140 = arith.negf %139 : vector<8x128xf32>
    %141 = math.exp %140 : vector<8x128xf32>
    %cst_32 = arith.constant 1.000000e+00 : f32
    %142 = vector.broadcast %cst_32 : f32 to vector<8x128xf32>
    %143 = arith.addf %142, %141 : vector<8x128xf32>
    %144 = arith.divf %142, %143 : vector<8x128xf32>
    %145 = vector.extract_strided_slice %138 {offsets = [0, 128], sizes = [8, 128], strides = [1, 1]} : vector<8x512xf32> to vector<8x128xf32>
    %146 = arith.negf %145 : vector<8x128xf32>
    %147 = math.exp %146 : vector<8x128xf32>
    %cst_33 = arith.constant 1.000000e+00 : f32
    %148 = vector.broadcast %cst_33 : f32 to vector<8x128xf32>
    %149 = arith.addf %148, %147 : vector<8x128xf32>
    %150 = arith.divf %148, %149 : vector<8x128xf32>
    %151 = vector.extract_strided_slice %138 {offsets = [0, 256], sizes = [8, 128], strides = [1, 1]} : vector<8x512xf32> to vector<8x128xf32>
    %152 = arith.negf %151 : vector<8x128xf32>
    %153 = math.exp %152 : vector<8x128xf32>
    %cst_34 = arith.constant 1.000000e+00 : f32
    %154 = vector.broadcast %cst_34 : f32 to vector<8x128xf32>
    %155 = arith.addf %154, %153 : vector<8x128xf32>
    %156 = arith.divf %154, %155 : vector<8x128xf32>
    %157 = vector.extract_strided_slice %138 {offsets = [0, 384], sizes = [8, 128], strides = [1, 1]} : vector<8x512xf32> to vector<8x128xf32>
    %158 = math.tanh %157 : vector<8x128xf32>
    %159 = arith.mulf %150, %102 : vector<8x128xf32>
    %160 = arith.mulf %144, %158 : vector<8x128xf32>
    %161 = arith.addf %159, %160 : vector<8x128xf32>
    %162 = math.tanh %161 : vector<8x128xf32>
    %163 = arith.mulf %156, %162 : vector<8x128xf32>
    %164 = tpu.concatenate %163, %134 in 1 : vector<8x128xf32>, vector<8x128xf32> -> vector<8x256xf32>
    %165 = arith.truncf %164 : vector<8x256xf32> to vector<8x256xbf16>
    %cst_35 = arith.constant dense<0.000000e+00> : vector<8x512xf32>
    %166 = tpu.matmul %165, %10, %cst_35 {dimension_numbers = #tpu.dot_dimension_numbers<[1], [0], [0], [1], [0, 0, 1, 1], [], []>} : vector<8x256xbf16>, vector<256x512xbf16>, vector<8x512xf32> -> vector<8x512xf32>
    %167 = vector.broadcast %12 : vector<1x512xf32> to vector<8x512xf32>
    %168 = arith.addf %166, %167 : vector<8x512xf32>
    %169 = vector.extract_strided_slice %168 {offsets = [0, 0], sizes = [8, 128], strides = [1, 1]} : vector<8x512xf32> to vector<8x128xf32>
    %170 = arith.negf %169 : vector<8x128xf32>
    %171 = math.exp %170 : vector<8x128xf32>
    %cst_36 = arith.constant 1.000000e+00 : f32
    %172 = vector.broadcast %cst_36 : f32 to vector<8x128xf32>
    %173 = arith.addf %172, %171 : vector<8x128xf32>
    %174 = arith.divf %172, %173 : vector<8x128xf32>
    %175 = vector.extract_strided_slice %168 {offsets = [0, 128], sizes = [8, 128], strides = [1, 1]} : vector<8x512xf32> to vector<8x128xf32>
    %176 = arith.negf %175 : vector<8x128xf32>
    %177 = math.exp %176 : vector<8x128xf32>
    %cst_37 = arith.constant 1.000000e+00 : f32
    %178 = vector.broadcast %cst_37 : f32 to vector<8x128xf32>
    %179 = arith.addf %178, %177 : vector<8x128xf32>
    %180 = arith.divf %178, %179 : vector<8x128xf32>
    %181 = vector.extract_strided_slice %168 {offsets = [0, 256], sizes = [8, 128], strides = [1, 1]} : vector<8x512xf32> to vector<8x128xf32>
    %182 = arith.negf %181 : vector<8x128xf32>
    %183 = math.exp %182 : vector<8x128xf32>
    %cst_38 = arith.constant 1.000000e+00 : f32
    %184 = vector.broadcast %cst_38 : f32 to vector<8x128xf32>
    %185 = arith.addf %184, %183 : vector<8x128xf32>
    %186 = arith.divf %184, %185 : vector<8x128xf32>
    %187 = vector.extract_strided_slice %168 {offsets = [0, 384], sizes = [8, 128], strides = [1, 1]} : vector<8x512xf32> to vector<8x128xf32>
    %188 = math.tanh %187 : vector<8x128xf32>
    %189 = arith.mulf %180, %132 : vector<8x128xf32>
    %190 = arith.mulf %174, %188 : vector<8x128xf32>
    %191 = arith.addf %189, %190 : vector<8x128xf32>
    %192 = math.tanh %191 : vector<8x128xf32>
    %193 = arith.mulf %186, %192 : vector<8x128xf32>
    %194 = vector.extract_strided_slice %7 {offsets = [24, 0], sizes = [8, 512], strides = [1, 1]} : vector<64x512xf32> to vector<8x512xf32>
    %195 = arith.truncf %163 : vector<8x128xf32> to vector<8x128xbf16>
    %cst_39 = arith.constant dense<0.000000e+00> : vector<8x512xf32>
    %196 = tpu.matmul %195, %8, %cst_39 {dimension_numbers = #tpu.dot_dimension_numbers<[1], [0], [0], [1], [0, 0, 1, 1], [], []>} : vector<8x128xbf16>, vector<128x512xbf16>, vector<8x512xf32> -> vector<8x512xf32>
    %197 = arith.addf %194, %196 : vector<8x512xf32>
    %198 = vector.extract_strided_slice %197 {offsets = [0, 0], sizes = [8, 128], strides = [1, 1]} : vector<8x512xf32> to vector<8x128xf32>
    %199 = arith.negf %198 : vector<8x128xf32>
    %200 = math.exp %199 : vector<8x128xf32>
    %cst_40 = arith.constant 1.000000e+00 : f32
    %201 = vector.broadcast %cst_40 : f32 to vector<8x128xf32>
    %202 = arith.addf %201, %200 : vector<8x128xf32>
    %203 = arith.divf %201, %202 : vector<8x128xf32>
    %204 = vector.extract_strided_slice %197 {offsets = [0, 128], sizes = [8, 128], strides = [1, 1]} : vector<8x512xf32> to vector<8x128xf32>
    %205 = arith.negf %204 : vector<8x128xf32>
    %206 = math.exp %205 : vector<8x128xf32>
    %cst_41 = arith.constant 1.000000e+00 : f32
    %207 = vector.broadcast %cst_41 : f32 to vector<8x128xf32>
    %208 = arith.addf %207, %206 : vector<8x128xf32>
    %209 = arith.divf %207, %208 : vector<8x128xf32>
    %210 = vector.extract_strided_slice %197 {offsets = [0, 256], sizes = [8, 128], strides = [1, 1]} : vector<8x512xf32> to vector<8x128xf32>
    %211 = arith.negf %210 : vector<8x128xf32>
    %212 = math.exp %211 : vector<8x128xf32>
    %cst_42 = arith.constant 1.000000e+00 : f32
    %213 = vector.broadcast %cst_42 : f32 to vector<8x128xf32>
    %214 = arith.addf %213, %212 : vector<8x128xf32>
    %215 = arith.divf %213, %214 : vector<8x128xf32>
    %216 = vector.extract_strided_slice %197 {offsets = [0, 384], sizes = [8, 128], strides = [1, 1]} : vector<8x512xf32> to vector<8x128xf32>
    %217 = math.tanh %216 : vector<8x128xf32>
    %218 = arith.mulf %209, %161 : vector<8x128xf32>
    %219 = arith.mulf %203, %217 : vector<8x128xf32>
    %220 = arith.addf %218, %219 : vector<8x128xf32>
    %221 = math.tanh %220 : vector<8x128xf32>
    %222 = arith.mulf %215, %221 : vector<8x128xf32>
    %223 = tpu.concatenate %222, %193 in 1 : vector<8x128xf32>, vector<8x128xf32> -> vector<8x256xf32>
    %224 = arith.truncf %223 : vector<8x256xf32> to vector<8x256xbf16>
    %cst_43 = arith.constant dense<0.000000e+00> : vector<8x512xf32>
    %225 = tpu.matmul %224, %10, %cst_43 {dimension_numbers = #tpu.dot_dimension_numbers<[1], [0], [0], [1], [0, 0, 1, 1], [], []>} : vector<8x256xbf16>, vector<256x512xbf16>, vector<8x512xf32> -> vector<8x512xf32>
    %226 = vector.broadcast %12 : vector<1x512xf32> to vector<8x512xf32>
    %227 = arith.addf %225, %226 : vector<8x512xf32>
    %228 = vector.extract_strided_slice %227 {offsets = [0, 0], sizes = [8, 128], strides = [1, 1]} : vector<8x512xf32> to vector<8x128xf32>
    %229 = arith.negf %228 : vector<8x128xf32>
    %230 = math.exp %229 : vector<8x128xf32>
    %cst_44 = arith.constant 1.000000e+00 : f32
    %231 = vector.broadcast %cst_44 : f32 to vector<8x128xf32>
    %232 = arith.addf %231, %230 : vector<8x128xf32>
    %233 = arith.divf %231, %232 : vector<8x128xf32>
    %234 = vector.extract_strided_slice %227 {offsets = [0, 128], sizes = [8, 128], strides = [1, 1]} : vector<8x512xf32> to vector<8x128xf32>
    %235 = arith.negf %234 : vector<8x128xf32>
    %236 = math.exp %235 : vector<8x128xf32>
    %cst_45 = arith.constant 1.000000e+00 : f32
    %237 = vector.broadcast %cst_45 : f32 to vector<8x128xf32>
    %238 = arith.addf %237, %236 : vector<8x128xf32>
    %239 = arith.divf %237, %238 : vector<8x128xf32>
    %240 = vector.extract_strided_slice %227 {offsets = [0, 256], sizes = [8, 128], strides = [1, 1]} : vector<8x512xf32> to vector<8x128xf32>
    %241 = arith.negf %240 : vector<8x128xf32>
    %242 = math.exp %241 : vector<8x128xf32>
    %cst_46 = arith.constant 1.000000e+00 : f32
    %243 = vector.broadcast %cst_46 : f32 to vector<8x128xf32>
    %244 = arith.addf %243, %242 : vector<8x128xf32>
    %245 = arith.divf %243, %244 : vector<8x128xf32>
    %246 = vector.extract_strided_slice %227 {offsets = [0, 384], sizes = [8, 128], strides = [1, 1]} : vector<8x512xf32> to vector<8x128xf32>
    %247 = math.tanh %246 : vector<8x128xf32>
    %248 = arith.mulf %239, %191 : vector<8x128xf32>
    %249 = arith.mulf %233, %247 : vector<8x128xf32>
    %250 = arith.addf %248, %249 : vector<8x128xf32>
    %251 = math.tanh %250 : vector<8x128xf32>
    %252 = arith.mulf %245, %251 : vector<8x128xf32>
    %253 = vector.extract_strided_slice %7 {offsets = [32, 0], sizes = [8, 512], strides = [1, 1]} : vector<64x512xf32> to vector<8x512xf32>
    %254 = arith.truncf %222 : vector<8x128xf32> to vector<8x128xbf16>
    %cst_47 = arith.constant dense<0.000000e+00> : vector<8x512xf32>
    %255 = tpu.matmul %254, %8, %cst_47 {dimension_numbers = #tpu.dot_dimension_numbers<[1], [0], [0], [1], [0, 0, 1, 1], [], []>} : vector<8x128xbf16>, vector<128x512xbf16>, vector<8x512xf32> -> vector<8x512xf32>
    %256 = arith.addf %253, %255 : vector<8x512xf32>
    %257 = vector.extract_strided_slice %256 {offsets = [0, 0], sizes = [8, 128], strides = [1, 1]} : vector<8x512xf32> to vector<8x128xf32>
    %258 = arith.negf %257 : vector<8x128xf32>
    %259 = math.exp %258 : vector<8x128xf32>
    %cst_48 = arith.constant 1.000000e+00 : f32
    %260 = vector.broadcast %cst_48 : f32 to vector<8x128xf32>
    %261 = arith.addf %260, %259 : vector<8x128xf32>
    %262 = arith.divf %260, %261 : vector<8x128xf32>
    %263 = vector.extract_strided_slice %256 {offsets = [0, 128], sizes = [8, 128], strides = [1, 1]} : vector<8x512xf32> to vector<8x128xf32>
    %264 = arith.negf %263 : vector<8x128xf32>
    %265 = math.exp %264 : vector<8x128xf32>
    %cst_49 = arith.constant 1.000000e+00 : f32
    %266 = vector.broadcast %cst_49 : f32 to vector<8x128xf32>
    %267 = arith.addf %266, %265 : vector<8x128xf32>
    %268 = arith.divf %266, %267 : vector<8x128xf32>
    %269 = vector.extract_strided_slice %256 {offsets = [0, 256], sizes = [8, 128], strides = [1, 1]} : vector<8x512xf32> to vector<8x128xf32>
    %270 = arith.negf %269 : vector<8x128xf32>
    %271 = math.exp %270 : vector<8x128xf32>
    %cst_50 = arith.constant 1.000000e+00 : f32
    %272 = vector.broadcast %cst_50 : f32 to vector<8x128xf32>
    %273 = arith.addf %272, %271 : vector<8x128xf32>
    %274 = arith.divf %272, %273 : vector<8x128xf32>
    %275 = vector.extract_strided_slice %256 {offsets = [0, 384], sizes = [8, 128], strides = [1, 1]} : vector<8x512xf32> to vector<8x128xf32>
    %276 = math.tanh %275 : vector<8x128xf32>
    %277 = arith.mulf %268, %220 : vector<8x128xf32>
    %278 = arith.mulf %262, %276 : vector<8x128xf32>
    %279 = arith.addf %277, %278 : vector<8x128xf32>
    %280 = math.tanh %279 : vector<8x128xf32>
    %281 = arith.mulf %274, %280 : vector<8x128xf32>
    %282 = tpu.concatenate %281, %252 in 1 : vector<8x128xf32>, vector<8x128xf32> -> vector<8x256xf32>
    %283 = arith.truncf %282 : vector<8x256xf32> to vector<8x256xbf16>
    %cst_51 = arith.constant dense<0.000000e+00> : vector<8x512xf32>
    %284 = tpu.matmul %283, %10, %cst_51 {dimension_numbers = #tpu.dot_dimension_numbers<[1], [0], [0], [1], [0, 0, 1, 1], [], []>} : vector<8x256xbf16>, vector<256x512xbf16>, vector<8x512xf32> -> vector<8x512xf32>
    %285 = vector.broadcast %12 : vector<1x512xf32> to vector<8x512xf32>
    %286 = arith.addf %284, %285 : vector<8x512xf32>
    %287 = vector.extract_strided_slice %286 {offsets = [0, 0], sizes = [8, 128], strides = [1, 1]} : vector<8x512xf32> to vector<8x128xf32>
    %288 = arith.negf %287 : vector<8x128xf32>
    %289 = math.exp %288 : vector<8x128xf32>
    %cst_52 = arith.constant 1.000000e+00 : f32
    %290 = vector.broadcast %cst_52 : f32 to vector<8x128xf32>
    %291 = arith.addf %290, %289 : vector<8x128xf32>
    %292 = arith.divf %290, %291 : vector<8x128xf32>
    %293 = vector.extract_strided_slice %286 {offsets = [0, 128], sizes = [8, 128], strides = [1, 1]} : vector<8x512xf32> to vector<8x128xf32>
    %294 = arith.negf %293 : vector<8x128xf32>
    %295 = math.exp %294 : vector<8x128xf32>
    %cst_53 = arith.constant 1.000000e+00 : f32
    %296 = vector.broadcast %cst_53 : f32 to vector<8x128xf32>
    %297 = arith.addf %296, %295 : vector<8x128xf32>
    %298 = arith.divf %296, %297 : vector<8x128xf32>
    %299 = vector.extract_strided_slice %286 {offsets = [0, 256], sizes = [8, 128], strides = [1, 1]} : vector<8x512xf32> to vector<8x128xf32>
    %300 = arith.negf %299 : vector<8x128xf32>
    %301 = math.exp %300 : vector<8x128xf32>
    %cst_54 = arith.constant 1.000000e+00 : f32
    %302 = vector.broadcast %cst_54 : f32 to vector<8x128xf32>
    %303 = arith.addf %302, %301 : vector<8x128xf32>
    %304 = arith.divf %302, %303 : vector<8x128xf32>
    %305 = vector.extract_strided_slice %286 {offsets = [0, 384], sizes = [8, 128], strides = [1, 1]} : vector<8x512xf32> to vector<8x128xf32>
    %306 = math.tanh %305 : vector<8x128xf32>
    %307 = arith.mulf %298, %250 : vector<8x128xf32>
    %308 = arith.mulf %292, %306 : vector<8x128xf32>
    %309 = arith.addf %307, %308 : vector<8x128xf32>
    %310 = math.tanh %309 : vector<8x128xf32>
    %311 = arith.mulf %304, %310 : vector<8x128xf32>
    %312 = vector.extract_strided_slice %7 {offsets = [40, 0], sizes = [8, 512], strides = [1, 1]} : vector<64x512xf32> to vector<8x512xf32>
    %313 = arith.truncf %281 : vector<8x128xf32> to vector<8x128xbf16>
    %cst_55 = arith.constant dense<0.000000e+00> : vector<8x512xf32>
    %314 = tpu.matmul %313, %8, %cst_55 {dimension_numbers = #tpu.dot_dimension_numbers<[1], [0], [0], [1], [0, 0, 1, 1], [], []>} : vector<8x128xbf16>, vector<128x512xbf16>, vector<8x512xf32> -> vector<8x512xf32>
    %315 = arith.addf %312, %314 : vector<8x512xf32>
    %316 = vector.extract_strided_slice %315 {offsets = [0, 0], sizes = [8, 128], strides = [1, 1]} : vector<8x512xf32> to vector<8x128xf32>
    %317 = arith.negf %316 : vector<8x128xf32>
    %318 = math.exp %317 : vector<8x128xf32>
    %cst_56 = arith.constant 1.000000e+00 : f32
    %319 = vector.broadcast %cst_56 : f32 to vector<8x128xf32>
    %320 = arith.addf %319, %318 : vector<8x128xf32>
    %321 = arith.divf %319, %320 : vector<8x128xf32>
    %322 = vector.extract_strided_slice %315 {offsets = [0, 128], sizes = [8, 128], strides = [1, 1]} : vector<8x512xf32> to vector<8x128xf32>
    %323 = arith.negf %322 : vector<8x128xf32>
    %324 = math.exp %323 : vector<8x128xf32>
    %cst_57 = arith.constant 1.000000e+00 : f32
    %325 = vector.broadcast %cst_57 : f32 to vector<8x128xf32>
    %326 = arith.addf %325, %324 : vector<8x128xf32>
    %327 = arith.divf %325, %326 : vector<8x128xf32>
    %328 = vector.extract_strided_slice %315 {offsets = [0, 256], sizes = [8, 128], strides = [1, 1]} : vector<8x512xf32> to vector<8x128xf32>
    %329 = arith.negf %328 : vector<8x128xf32>
    %330 = math.exp %329 : vector<8x128xf32>
    %cst_58 = arith.constant 1.000000e+00 : f32
    %331 = vector.broadcast %cst_58 : f32 to vector<8x128xf32>
    %332 = arith.addf %331, %330 : vector<8x128xf32>
    %333 = arith.divf %331, %332 : vector<8x128xf32>
    %334 = vector.extract_strided_slice %315 {offsets = [0, 384], sizes = [8, 128], strides = [1, 1]} : vector<8x512xf32> to vector<8x128xf32>
    %335 = math.tanh %334 : vector<8x128xf32>
    %336 = arith.mulf %327, %279 : vector<8x128xf32>
    %337 = arith.mulf %321, %335 : vector<8x128xf32>
    %338 = arith.addf %336, %337 : vector<8x128xf32>
    %339 = math.tanh %338 : vector<8x128xf32>
    %340 = arith.mulf %333, %339 : vector<8x128xf32>
    %341 = tpu.concatenate %340, %311 in 1 : vector<8x128xf32>, vector<8x128xf32> -> vector<8x256xf32>
    %342 = arith.truncf %341 : vector<8x256xf32> to vector<8x256xbf16>
    %cst_59 = arith.constant dense<0.000000e+00> : vector<8x512xf32>
    %343 = tpu.matmul %342, %10, %cst_59 {dimension_numbers = #tpu.dot_dimension_numbers<[1], [0], [0], [1], [0, 0, 1, 1], [], []>} : vector<8x256xbf16>, vector<256x512xbf16>, vector<8x512xf32> -> vector<8x512xf32>
    %344 = vector.broadcast %12 : vector<1x512xf32> to vector<8x512xf32>
    %345 = arith.addf %343, %344 : vector<8x512xf32>
    %346 = vector.extract_strided_slice %345 {offsets = [0, 0], sizes = [8, 128], strides = [1, 1]} : vector<8x512xf32> to vector<8x128xf32>
    %347 = arith.negf %346 : vector<8x128xf32>
    %348 = math.exp %347 : vector<8x128xf32>
    %cst_60 = arith.constant 1.000000e+00 : f32
    %349 = vector.broadcast %cst_60 : f32 to vector<8x128xf32>
    %350 = arith.addf %349, %348 : vector<8x128xf32>
    %351 = arith.divf %349, %350 : vector<8x128xf32>
    %352 = vector.extract_strided_slice %345 {offsets = [0, 128], sizes = [8, 128], strides = [1, 1]} : vector<8x512xf32> to vector<8x128xf32>
    %353 = arith.negf %352 : vector<8x128xf32>
    %354 = math.exp %353 : vector<8x128xf32>
    %cst_61 = arith.constant 1.000000e+00 : f32
    %355 = vector.broadcast %cst_61 : f32 to vector<8x128xf32>
    %356 = arith.addf %355, %354 : vector<8x128xf32>
    %357 = arith.divf %355, %356 : vector<8x128xf32>
    %358 = vector.extract_strided_slice %345 {offsets = [0, 256], sizes = [8, 128], strides = [1, 1]} : vector<8x512xf32> to vector<8x128xf32>
    %359 = arith.negf %358 : vector<8x128xf32>
    %360 = math.exp %359 : vector<8x128xf32>
    %cst_62 = arith.constant 1.000000e+00 : f32
    %361 = vector.broadcast %cst_62 : f32 to vector<8x128xf32>
    %362 = arith.addf %361, %360 : vector<8x128xf32>
    %363 = arith.divf %361, %362 : vector<8x128xf32>
    %364 = vector.extract_strided_slice %345 {offsets = [0, 384], sizes = [8, 128], strides = [1, 1]} : vector<8x512xf32> to vector<8x128xf32>
    %365 = math.tanh %364 : vector<8x128xf32>
    %366 = arith.mulf %357, %309 : vector<8x128xf32>
    %367 = arith.mulf %351, %365 : vector<8x128xf32>
    %368 = arith.addf %366, %367 : vector<8x128xf32>
    %369 = math.tanh %368 : vector<8x128xf32>
    %370 = arith.mulf %363, %369 : vector<8x128xf32>
    %371 = vector.extract_strided_slice %7 {offsets = [48, 0], sizes = [8, 512], strides = [1, 1]} : vector<64x512xf32> to vector<8x512xf32>
    %372 = arith.truncf %340 : vector<8x128xf32> to vector<8x128xbf16>
    %cst_63 = arith.constant dense<0.000000e+00> : vector<8x512xf32>
    %373 = tpu.matmul %372, %8, %cst_63 {dimension_numbers = #tpu.dot_dimension_numbers<[1], [0], [0], [1], [0, 0, 1, 1], [], []>} : vector<8x128xbf16>, vector<128x512xbf16>, vector<8x512xf32> -> vector<8x512xf32>
    %374 = arith.addf %371, %373 : vector<8x512xf32>
    %375 = vector.extract_strided_slice %374 {offsets = [0, 0], sizes = [8, 128], strides = [1, 1]} : vector<8x512xf32> to vector<8x128xf32>
    %376 = arith.negf %375 : vector<8x128xf32>
    %377 = math.exp %376 : vector<8x128xf32>
    %cst_64 = arith.constant 1.000000e+00 : f32
    %378 = vector.broadcast %cst_64 : f32 to vector<8x128xf32>
    %379 = arith.addf %378, %377 : vector<8x128xf32>
    %380 = arith.divf %378, %379 : vector<8x128xf32>
    %381 = vector.extract_strided_slice %374 {offsets = [0, 128], sizes = [8, 128], strides = [1, 1]} : vector<8x512xf32> to vector<8x128xf32>
    %382 = arith.negf %381 : vector<8x128xf32>
    %383 = math.exp %382 : vector<8x128xf32>
    %cst_65 = arith.constant 1.000000e+00 : f32
    %384 = vector.broadcast %cst_65 : f32 to vector<8x128xf32>
    %385 = arith.addf %384, %383 : vector<8x128xf32>
    %386 = arith.divf %384, %385 : vector<8x128xf32>
    %387 = vector.extract_strided_slice %374 {offsets = [0, 256], sizes = [8, 128], strides = [1, 1]} : vector<8x512xf32> to vector<8x128xf32>
    %388 = arith.negf %387 : vector<8x128xf32>
    %389 = math.exp %388 : vector<8x128xf32>
    %cst_66 = arith.constant 1.000000e+00 : f32
    %390 = vector.broadcast %cst_66 : f32 to vector<8x128xf32>
    %391 = arith.addf %390, %389 : vector<8x128xf32>
    %392 = arith.divf %390, %391 : vector<8x128xf32>
    %393 = vector.extract_strided_slice %374 {offsets = [0, 384], sizes = [8, 128], strides = [1, 1]} : vector<8x512xf32> to vector<8x128xf32>
    %394 = math.tanh %393 : vector<8x128xf32>
    %395 = arith.mulf %386, %338 : vector<8x128xf32>
    %396 = arith.mulf %380, %394 : vector<8x128xf32>
    %397 = arith.addf %395, %396 : vector<8x128xf32>
    %398 = math.tanh %397 : vector<8x128xf32>
    %399 = arith.mulf %392, %398 : vector<8x128xf32>
    %400 = tpu.concatenate %399, %370 in 1 : vector<8x128xf32>, vector<8x128xf32> -> vector<8x256xf32>
    %401 = arith.truncf %400 : vector<8x256xf32> to vector<8x256xbf16>
    %cst_67 = arith.constant dense<0.000000e+00> : vector<8x512xf32>
    %402 = tpu.matmul %401, %10, %cst_67 {dimension_numbers = #tpu.dot_dimension_numbers<[1], [0], [0], [1], [0, 0, 1, 1], [], []>} : vector<8x256xbf16>, vector<256x512xbf16>, vector<8x512xf32> -> vector<8x512xf32>
    %403 = vector.broadcast %12 : vector<1x512xf32> to vector<8x512xf32>
    %404 = arith.addf %402, %403 : vector<8x512xf32>
    %405 = vector.extract_strided_slice %404 {offsets = [0, 0], sizes = [8, 128], strides = [1, 1]} : vector<8x512xf32> to vector<8x128xf32>
    %406 = arith.negf %405 : vector<8x128xf32>
    %407 = math.exp %406 : vector<8x128xf32>
    %cst_68 = arith.constant 1.000000e+00 : f32
    %408 = vector.broadcast %cst_68 : f32 to vector<8x128xf32>
    %409 = arith.addf %408, %407 : vector<8x128xf32>
    %410 = arith.divf %408, %409 : vector<8x128xf32>
    %411 = vector.extract_strided_slice %404 {offsets = [0, 128], sizes = [8, 128], strides = [1, 1]} : vector<8x512xf32> to vector<8x128xf32>
    %412 = arith.negf %411 : vector<8x128xf32>
    %413 = math.exp %412 : vector<8x128xf32>
    %cst_69 = arith.constant 1.000000e+00 : f32
    %414 = vector.broadcast %cst_69 : f32 to vector<8x128xf32>
    %415 = arith.addf %414, %413 : vector<8x128xf32>
    %416 = arith.divf %414, %415 : vector<8x128xf32>
    %417 = vector.extract_strided_slice %404 {offsets = [0, 256], sizes = [8, 128], strides = [1, 1]} : vector<8x512xf32> to vector<8x128xf32>
    %418 = arith.negf %417 : vector<8x128xf32>
    %419 = math.exp %418 : vector<8x128xf32>
    %cst_70 = arith.constant 1.000000e+00 : f32
    %420 = vector.broadcast %cst_70 : f32 to vector<8x128xf32>
    %421 = arith.addf %420, %419 : vector<8x128xf32>
    %422 = arith.divf %420, %421 : vector<8x128xf32>
    %423 = vector.extract_strided_slice %404 {offsets = [0, 384], sizes = [8, 128], strides = [1, 1]} : vector<8x512xf32> to vector<8x128xf32>
    %424 = math.tanh %423 : vector<8x128xf32>
    %425 = arith.mulf %416, %368 : vector<8x128xf32>
    %426 = arith.mulf %410, %424 : vector<8x128xf32>
    %427 = arith.addf %425, %426 : vector<8x128xf32>
    %428 = math.tanh %427 : vector<8x128xf32>
    %429 = arith.mulf %422, %428 : vector<8x128xf32>
    %430 = vector.extract_strided_slice %7 {offsets = [56, 0], sizes = [8, 512], strides = [1, 1]} : vector<64x512xf32> to vector<8x512xf32>
    %431 = arith.truncf %399 : vector<8x128xf32> to vector<8x128xbf16>
    %cst_71 = arith.constant dense<0.000000e+00> : vector<8x512xf32>
    %432 = tpu.matmul %431, %8, %cst_71 {dimension_numbers = #tpu.dot_dimension_numbers<[1], [0], [0], [1], [0, 0, 1, 1], [], []>} : vector<8x128xbf16>, vector<128x512xbf16>, vector<8x512xf32> -> vector<8x512xf32>
    %433 = arith.addf %430, %432 : vector<8x512xf32>
    %434 = vector.extract_strided_slice %433 {offsets = [0, 0], sizes = [8, 128], strides = [1, 1]} : vector<8x512xf32> to vector<8x128xf32>
    %435 = arith.negf %434 : vector<8x128xf32>
    %436 = math.exp %435 : vector<8x128xf32>
    %cst_72 = arith.constant 1.000000e+00 : f32
    %437 = vector.broadcast %cst_72 : f32 to vector<8x128xf32>
    %438 = arith.addf %437, %436 : vector<8x128xf32>
    %439 = arith.divf %437, %438 : vector<8x128xf32>
    %440 = vector.extract_strided_slice %433 {offsets = [0, 128], sizes = [8, 128], strides = [1, 1]} : vector<8x512xf32> to vector<8x128xf32>
    %441 = arith.negf %440 : vector<8x128xf32>
    %442 = math.exp %441 : vector<8x128xf32>
    %cst_73 = arith.constant 1.000000e+00 : f32
    %443 = vector.broadcast %cst_73 : f32 to vector<8x128xf32>
    %444 = arith.addf %443, %442 : vector<8x128xf32>
    %445 = arith.divf %443, %444 : vector<8x128xf32>
    %446 = vector.extract_strided_slice %433 {offsets = [0, 256], sizes = [8, 128], strides = [1, 1]} : vector<8x512xf32> to vector<8x128xf32>
    %447 = arith.negf %446 : vector<8x128xf32>
    %448 = math.exp %447 : vector<8x128xf32>
    %cst_74 = arith.constant 1.000000e+00 : f32
    %449 = vector.broadcast %cst_74 : f32 to vector<8x128xf32>
    %450 = arith.addf %449, %448 : vector<8x128xf32>
    %451 = arith.divf %449, %450 : vector<8x128xf32>
    %452 = vector.extract_strided_slice %433 {offsets = [0, 384], sizes = [8, 128], strides = [1, 1]} : vector<8x512xf32> to vector<8x128xf32>
    %453 = math.tanh %452 : vector<8x128xf32>
    %454 = arith.mulf %445, %397 : vector<8x128xf32>
    %455 = arith.mulf %439, %453 : vector<8x128xf32>
    %456 = arith.addf %454, %455 : vector<8x128xf32>
    %457 = math.tanh %456 : vector<8x128xf32>
    %458 = arith.mulf %451, %457 : vector<8x128xf32>
    %459 = tpu.concatenate %458, %429 in 1 : vector<8x128xf32>, vector<8x128xf32> -> vector<8x256xf32>
    %460 = arith.truncf %459 : vector<8x256xf32> to vector<8x256xbf16>
    %cst_75 = arith.constant dense<0.000000e+00> : vector<8x512xf32>
    %461 = tpu.matmul %460, %10, %cst_75 {dimension_numbers = #tpu.dot_dimension_numbers<[1], [0], [0], [1], [0, 0, 1, 1], [], []>} : vector<8x256xbf16>, vector<256x512xbf16>, vector<8x512xf32> -> vector<8x512xf32>
    %462 = vector.broadcast %12 : vector<1x512xf32> to vector<8x512xf32>
    %463 = arith.addf %461, %462 : vector<8x512xf32>
    %464 = vector.extract_strided_slice %463 {offsets = [0, 0], sizes = [8, 128], strides = [1, 1]} : vector<8x512xf32> to vector<8x128xf32>
    %465 = arith.negf %464 : vector<8x128xf32>
    %466 = math.exp %465 : vector<8x128xf32>
    %cst_76 = arith.constant 1.000000e+00 : f32
    %467 = vector.broadcast %cst_76 : f32 to vector<8x128xf32>
    %468 = arith.addf %467, %466 : vector<8x128xf32>
    %469 = arith.divf %467, %468 : vector<8x128xf32>
    %470 = vector.extract_strided_slice %463 {offsets = [0, 128], sizes = [8, 128], strides = [1, 1]} : vector<8x512xf32> to vector<8x128xf32>
    %471 = arith.negf %470 : vector<8x128xf32>
    %472 = math.exp %471 : vector<8x128xf32>
    %cst_77 = arith.constant 1.000000e+00 : f32
    %473 = vector.broadcast %cst_77 : f32 to vector<8x128xf32>
    %474 = arith.addf %473, %472 : vector<8x128xf32>
    %475 = arith.divf %473, %474 : vector<8x128xf32>
    %476 = vector.extract_strided_slice %463 {offsets = [0, 256], sizes = [8, 128], strides = [1, 1]} : vector<8x512xf32> to vector<8x128xf32>
    %477 = arith.negf %476 : vector<8x128xf32>
    %478 = math.exp %477 : vector<8x128xf32>
    %cst_78 = arith.constant 1.000000e+00 : f32
    %479 = vector.broadcast %cst_78 : f32 to vector<8x128xf32>
    %480 = arith.addf %479, %478 : vector<8x128xf32>
    %481 = arith.divf %479, %480 : vector<8x128xf32>
    %482 = vector.extract_strided_slice %463 {offsets = [0, 384], sizes = [8, 128], strides = [1, 1]} : vector<8x512xf32> to vector<8x128xf32>
    %483 = math.tanh %482 : vector<8x128xf32>
    %484 = arith.mulf %475, %427 : vector<8x128xf32>
    %485 = arith.mulf %469, %483 : vector<8x128xf32>
    %486 = arith.addf %484, %485 : vector<8x128xf32>
    %487 = math.tanh %486 : vector<8x128xf32>
    %488 = arith.mulf %481, %487 : vector<8x128xf32>
    %c0_79 = arith.constant 0 : index
    %c0_80 = arith.constant 0 : index
    %489 = vector.load %arg6[%c0_79, %c0_80] : memref<128x1xf32, #tpu.memory_space<vmem>>, vector<128x1xf32>
    %cst_81 = arith.constant dense<0.000000e+00> : vector<8x1xf32>
    %490 = tpu.matmul %488, %489, %cst_81 {dimension_numbers = #tpu.dot_dimension_numbers<[1], [0], [0], [1], [0, 0, 1, 1], [], []>} : vector<8x128xf32>, vector<128x1xf32>, vector<8x1xf32> -> vector<8x1xf32>
    %c0_82 = arith.constant 0 : index
    %c0_83 = arith.constant 0 : index
    %491 = vector.load %arg7[%c0_82, %c0_83] : memref<1x1xf32, #tpu.memory_space<vmem>>, vector<1x1xf32>
    %492 = vector.broadcast %491 : vector<1x1xf32> to vector<8x1xf32>
    %493 = arith.addf %490, %492 : vector<8x1xf32>
    %c0_84 = arith.constant 0 : index
    %c0_85 = arith.constant 0 : index
    %494 = vector.load %arg1[%c0_84, %c0_85] : memref<8x8xf32, #tpu.memory_space<vmem>>, vector<8x8xf32>
    %495 = math.absf %494 : vector<8x8xf32>
    %cst_86 = arith.constant dense<0.000000e+00> : vector<8xf32>
    %496 = vector.multi_reduction <add>, %495, %cst_86 [1] : vector<8x8xf32> to vector<8xf32>
    %497 = vector.shape_cast %496 : vector<8xf32> to vector<8x1xf32>
    %cst_87 = arith.constant 0.000000e+00 : f32
    %498 = vector.broadcast %cst_87 : f32 to vector<8x1xf32>
    %499 = arith.cmpf ogt, %497, %498 : vector<8x1xf32>
    %500 = arith.extui %499 : vector<8x1xi1> to vector<8x1xi32>
    %501 = arith.sitofp %500 : vector<8x1xi32> to vector<8x1xf32>
    %cst_88 = arith.constant 0.000000e+00 : f32
    %502 = vector.broadcast %cst_88 : f32 to vector<8x1xf32>
    %503 = arith.maximumf %493, %502 : vector<8x1xf32>
    %504 = arith.mulf %493, %501 : vector<8x1xf32>
    %505 = arith.subf %503, %504 : vector<8x1xf32>
    %506 = math.absf %493 : vector<8x1xf32>
    %cst_89 = arith.constant 0.000000e+00 : f32
    %507 = vector.broadcast %cst_89 : f32 to vector<8x1xf32>
    %508 = arith.subf %507, %506 : vector<8x1xf32>
    %509 = math.exp %508 : vector<8x1xf32>
    %510 = math.log1p %509 : vector<8x1xf32>
    %511 = arith.addf %505, %510 : vector<8x1xf32>
    %512 = tpu.iota {dimensions = array<i32: 0>} : vector<8x1xi32>
    %c2_i32 = arith.constant 2 : i32
    %513 = vector.broadcast %c2_i32 : i32 to vector<8x1xi32>
    %514 = arith.cmpi slt, %512, %513 : vector<8x1xi32>
    %cst_90 = arith.constant 0.000000e+00 : f32
    %515 = vector.broadcast %cst_90 : f32 to vector<8x1xf32>
    %516 = arith.select %514, %511, %515 : vector<8x1xi1>, vector<8x1xf32>
    %517 = vector.shape_cast %516 : vector<8x1xf32> to vector<1x8x1xf32>
    %cst_91 = arith.constant dense<0.000000e+00> : vector<1xf32>
    %518 = vector.multi_reduction <add>, %517, %cst_91 [1, 2] : vector<1x8x1xf32> to vector<1xf32>
    %519 = vector.shape_cast %518 : vector<1xf32> to vector<1x1x1xf32>
    %520 = vector.extract %519[0, 0, 0] : f32 from vector<1x1x1xf32>
    %cst_92 = arith.constant 2.000000e+00 : f32
    %521 = arith.divf %520, %cst_92 : f32
    %522 = tpu.iota {dimensions = array<i32: 1>} : vector<8x128xi32>
    %c0_i32 = arith.constant 0 : i32
    %523 = vector.broadcast %c0_i32 : i32 to vector<8x128xi32>
    %524 = arith.cmpi eq, %522, %523 : vector<8x128xi32>
    %c1_i32 = arith.constant 1 : i32
    %525 = vector.broadcast %c1_i32 : i32 to vector<8x128xi32>
    %526 = arith.cmpi eq, %522, %525 : vector<8x128xi32>
    %cst_93 = arith.constant 0.000000e+00 : f32
    %527 = vector.broadcast %521 : f32 to vector<8x128xf32>
    %528 = vector.broadcast %cst_93 : f32 to vector<8x128xf32>
    %529 = arith.select %526, %527, %528 : vector<8x128xi1>, vector<8x128xf32>
    %530 = vector.shape_cast %493 : vector<8x1xf32> to vector<8x1xf32>
    %531 = vector.broadcast %530 : vector<8x1xf32> to vector<8x128xf32>
    %532 = arith.select %524, %531, %529 : vector<8x128xi1>, vector<8x128xf32>
    %c0_94 = arith.constant 0 : index
    %c0_95 = arith.constant 0 : index
    %533 = vector.load %arg8[%c0_94, %c0_95] : memref<8x128xf32, #tpu.memory_space<vmem>>, vector<8x128xf32>
    tpu.vector_store %arg8[%c0_94, %c0_95], %532 {strides = array<i32>} : memref<8x128xf32, #tpu.memory_space<vmem>>, vector<8x128xf32>,
    return
  }
}

</mosaic_0001>

<bundles_post_ra>
// kernel: lstm_model_forward.1
= control target key start
LH: loop header
LB: loop body
LE: loop exit
PB: predicated region body
PF: predicated region fallthrough
CT: control target
= control target key end

     0   :  { %s5946_s0 = inlined_call_operand.vmem [shape: s32[64,1], index: 0, kind: input, shape index: {}]   ;;  %s5947_s1 = inlined_call_operand.vmem [shape: f32[8,8], index: 1, kind: input, shape index: {}]   ;;  %s5948_s2 = inlined_call_operand.hbm [shape: f32[128,512], index: 2, kind: input, shape index: {}]   ;;  %s5949_s3 = inlined_call_operand.vmem [shape: bf16[128,512], index: 3, kind: input, shape index: {}]   ;;  %s5950_s4 = inlined_call_operand.hbm [shape: bf16[1,256,512], index: 4, kind: input, shape index: {}]   ;;  %s5951_s5 = inlined_call_operand.vmem [shape: f32[1,1,512], index: 5, kind: input, shape index: {}]   ;;  %s5952_s6 = inlined_call_operand.vmem [shape: f32[128,1], index: 6, kind: input, shape index: {}]   ;;  %s5953_s7 = inlined_call_operand.<no memory space> [shape: f32[1,1], index: 7, kind: input, shape index: {}]   ;;  %s5954_s8 = inlined_call_operand.vmem [shape: f32[8,128], index: 8, kind: output, shape index: {}]  }
   0x1   :  { %v13_v0 = vstv %s5953_s7 }
   0x2   :  { %14 = vst [vmem:[#allocation2] sm:$0x1] %v13_v0 }
   0x3   :  { %15 = vsyncpa [#allocation4], 0 }
   0x4   :  { %16 = vsyncpa [#allocation6], 0  ;;  %s3873_s29 = smov [#allocation3]   ;;  %s3825_s11 = scalar_lea.hbm %s5948_s2, 8192 }
   0x5   :  { %s26_s30 = sshll.u32 %s3873_s29, 4  ;;  %p3826_p0 = scmp.ne.s32.totalorder %s5948_s2, %s3825_s11  ;;  %s27_s30 = int_to_ptr.vmem [resolvable:$true] %s26_s30 }
   0x6   :  { %p3829_p1 = scmp.lt.u32.totalorder %s3825_s11, %s5948_s2 }
   0x8   :  { %p3831_p2 = pnand %p3829_p1, %p3826_p0 }
   0xa   :  { %3834 = shalt.err (!%p3831_p2)
}
   0xb   :  { %s3835_s7 = scalar_lea.vmem %s27_s30, 8192  ;;  %p3840_p4 = scmp.lt.s32.totalorder %s27_s30, %s27_s30 }
   0xc   :  { %p3836_p3 = scmp.ne.s32.totalorder %s27_s30, %s3835_s7  ;;  %p3841_p5 = scmp.lt.s32.totalorder %s3835_s7, %s3835_s7 }
   0xe   :  { %p3842_p6 = por %p3841_p5, %p3840_p4 }
  0x10   :  { %p3843_p7 = pnand %p3842_p6, %p3836_p3 }
  0x12   :  { %3846 = shalt.err (!%p3843_p7)
}
  0x13   :  { %s3874_s16 = smov 512   ;;  %s3875_s17 = smov 32  }
  0x14   :  { %32 = dma.hbm_to_vmem [thread:$0]  %s5948_s2, 8192, %s27_s30, [#allocation4], %s3874_s16, %s3874_s16, %s3875_s17  }
  0x15   :  { %s3876_s20 = smov [#allocation5]   ;;  %s3847_s24 = scalar_lea.hbm %s5950_s4, 8192 }
  0x16   :  { %s40_s21 = sshll.u32 %s3876_s20, 4  ;;  %p3848_p8 = scmp.ne.s32.totalorder %s5950_s4, %s3847_s24  ;;  %s41_s21 = int_to_ptr.vmem [resolvable:$true] %s40_s21 }
  0x17   :  { %p3851_p9 = scmp.lt.u32.totalorder %s3847_s24, %s5950_s4 }
  0x19   :  { %p3853_p10 = pnand %p3851_p9, %p3848_p8 }
  0x1b   :  { %3856 = shalt.err (!%p3853_p10)
}
  0x1c   :  { %s3857_s29 = scalar_lea.vmem %s41_s21, 8192  ;;  %p3862_p12 = scmp.lt.s32.totalorder %s41_s21, %s41_s21 }
  0x1d   :  { %p3858_p11 = scmp.ne.s32.totalorder %s41_s21, %s3857_s29  ;;  %p3863_p13 = scmp.lt.s32.totalorder %s3857_s29, %s3857_s29 }
  0x1f   :  { %p3864_p0 = por %p3863_p13, %p3862_p12 }
  0x21   :  { %p3865_p1 = pnand %p3864_p0, %p3858_p11 }
  0x23   :  { %3868 = shalt.err (!%p3865_p1)
}
  0x24   :  { %s3877_s2 = smov 256   ;;  %s3878_s30 = smov 16  }
  0x25   :  { %46 = dma.hbm_to_vmem [thread:$0]  %s5950_s4, 8192, %s41_s21, [#allocation6], %s3877_s2, %s3877_s2, %s3878_s30  }
  0x26   :  { %3869 = dma.done.wait [#allocation4], 8192  }
  0x27   :  { %3870 = vsyncadd [#allocation4], 4294959104 }
  0x28   :  { %3871 = dma.done.wait [#allocation6], 8192  }
  0x29   :  { %3872 = vsyncadd [#allocation6], 4294959104  ;;  %v5958_v1 = vmov 0   ;;  %v62_v2 = vld [vmem:[%s5946_s0 + $0x10] sm:$0xff]  ;;  %v60_v3 = vld [vmem:[%s5946_s0] sm:$0xff]  ;;  %v5955_v7 = vmov 0.0  }
  0x2a   :  { %3228 = vset.pattern.permute.xlu1 %v5958_v1  ;;  %3227 = vset.pattern.permute.xlu0 %v5958_v1  ;;  %v63_v4 = vld [vmem:[%s5946_s0 + $0x18] sm:$0xff]  ;;  %v61_v5 = vld [vmem:[%s5946_s0 + $0x8] sm:$0xff]  ;;  %v64_v12 = vld [vmem:[%s5946_s0 + $0x20] sm:$0xff]  ;;  %vm3883_vm8 = vmmov 0   ;;  %vm2845_vm9 = vcmask 64512   ;;  %vm2873_vm13 = vcmask 7168  }
  0x2b   :  { %77 = vperm.xlu1 %3228, %v62_v2   ;;  %71 = vperm.xlu0 %3227, %v60_v3   ;;  %v119_v6 = vld [vmem:[#allocation3 + $0x8] sm:$0xff]  ;;  %v118_v9 = vld [vmem:[#allocation3] sm:$0xff]  ;;  %v121_v15 = vld [vmem:[#allocation3 + $0x18] sm:$0xff] }
  0x2c   :  { %246 = vmatprep.mubr.f32.mxu0 %v5955_v7  ;;  %359 = vmatprep.mubr.f32.mxu1 %v5955_v7  ;;  %v123_v8 = vld [vmem:[#allocation3 + $0x28] sm:$0xff]  ;;  %v122_v10 = vld [vmem:[#allocation3 + $0x20] sm:$0xff]  ;;  %v125_v16 = vld [vmem:[#allocation3 + $0x38] sm:$0xff] }
  0x2d   :  { %v65_v11 = vld [vmem:[%s5946_s0 + $0x28] sm:$0xff]  ;;  %v3126_v13 = vpack.c.bf16 %v123_v8, %v119_v6  ;;  %v3128_v14 = vpack.c.bf16 %v122_v10, %v118_v9  ;;  %v120_v17 = vld [vmem:[#allocation3 + $0x10] sm:$0xff]  ;;  %v3158_v18 = vpack.c.bf16 %v125_v16, %v121_v15  ;;  %v129_v26 = vld [vmem:[#allocation3 + $0x58] sm:$0xff] }
  0x2e   :  { %v124_v19 = vld [vmem:[#allocation3 + $0x30] sm:$0xff]  ;;  %v127_v20 = vld [vmem:[#allocation3 + $0x48] sm:$0xff]  ;;  %v126_v24 = vld [vmem:[#allocation3 + $0x40] sm:$0xff] }
  0x2f   :  { %80 = vperm.xlu1 %3228, %v63_v4   ;;  %74 = vperm.xlu0 %3227, %v61_v5   ;;  %v131_v21 = vld [vmem:[#allocation3 + $0x68] sm:$0xff]  ;;  %v3160_v22 = vpack.c.bf16 %v124_v19, %v120_v17  ;;  %v130_v25 = vld [vmem:[#allocation3 + $0x60] sm:$0xff]  ;;  %v133_v28 = vld [vmem:[#allocation3 + $0x78] sm:$0xff] }
  0x30   :  { %3127 = vmatprep.subr.bf16.mxu0 %v3126_v13  ;;  %v3130_v23 = vpack.c.bf16 %v131_v21, %v127_v20  ;;  %3159 = vmatprep.subr.bf16.mxu1 %v3158_v18  ;;  %v3132_v27 = vpack.c.bf16 %v130_v25, %v126_v24  ;;  %v128_v29 = vld [vmem:[#allocation3 + $0x50] sm:$0xff]  ;;  %v3162_v33 = vpack.c.bf16 %v133_v28, %v129_v26  ;;  %v135_v35 = vld [vmem:[#allocation3 + $0x88] sm:$0xff]  ;;  %v134_v37 = vld [vmem:[#allocation3 + $0x80] sm:$0xff] }
  0x31   :  { %3129 = vmatpush1.bf16.msra.mxu0 %v3128_v14  ;;  %v132_v30 = vld [vmem:[#allocation3 + $0x70] sm:$0xff]  ;;  %3161 = vmatpush1.bf16.msra.mxu1 %v3160_v22  ;;  %v139_v36 = vld [vmem:[#allocation3 + $0xa8] sm:$0xff]  ;;  %v138_v39 = vld [vmem:[#allocation3 + $0xa0] sm:$0xff] }
  0x32   :  { %v67_v31 = vld [vmem:[%s5946_s0 + $0x38] sm:$0xff]  ;;  %v66_v32 = vld [vmem:[%s5946_s0 + $0x30] sm:$0xff]  ;;  %3131 = vmatprep.subr.bf16.mxu0 %v3130_v23  ;;  %v3164_v34 = vpack.c.bf16 %v132_v30, %v128_v29  ;;  %v3134_v38 = vpack.c.bf16 %v139_v36, %v135_v35  ;;  %3163 = vmatprep.subr.bf16.mxu1 %v3162_v33  ;;  %v3136_v46 = vpack.c.bf16 %v138_v39, %v134_v37  ;;  %v142_v48 = vld [vmem:[#allocation3 + $0xc0] sm:$0xff] }
  0x33   :  { %86 = vperm.xlu1 %3228, %v65_v11   ;;  %83 = vperm.xlu0 %3227, %v64_v12   ;;  %v137_v40 = vld [vmem:[#allocation3 + $0x98] sm:$0xff]  ;;  %v136_v43 = vld [vmem:[#allocation3 + $0x90] sm:$0xff]  ;;  %v143_v45 = vld [vmem:[#allocation3 + $0xc8] sm:$0xff] }
  0x34   :  { %v141_v41 = vld [vmem:[#allocation3 + $0xb8] sm:$0xff]  ;;  %v140_v44 = vld [vmem:[#allocation3 + $0xb0] sm:$0xff]  ;;  %v147_v47 = vld [vmem:[#allocation3 + $0xe8] sm:$0xff] }
  0x35   :  { %v3166_v42 = vpack.c.bf16 %v141_v41, %v137_v40  ;;  %3133 = vmatpush1.bf16.msra.mxu0 %v3132_v27  ;;  %v146_v49 = vld [vmem:[#allocation3 + $0xe0] sm:$0xff]  ;;  %3165 = vmatpush1.bf16.msra.mxu1 %v3164_v34  ;;  %v3168_v50 = vpack.c.bf16 %v140_v44, %v136_v43  ;;  %v3138_v51 = vpack.c.bf16 %v147_v47, %v143_v45  ;;  %v145_v52 = vld [vmem:[#allocation3 + $0xd8] sm:$0xff]  ;;  %v144_v54 = vld [vmem:[#allocation3 + $0xd0] sm:$0xff]  ;;  %v5957_v47 = vlaneseq }
  0x36   :  { %3135 = vmatprep.subr.bf16.mxu0 %v3134_v38  ;;  %v149_v53 = vld [vmem:[#allocation3 + $0xf8] sm:$0xff]  ;;  %v148_v56 = vld [vmem:[#allocation3 + $0xf0] sm:$0xff]  ;;  %v151_v57 = vld [vmem:[#allocation3 + $0x108] sm:$0xff]  ;;  %v3140_v60 = vpack.c.bf16 %v146_v49, %v142_v48 }
  0x37   :  { %92 = vperm.xlu1 %3228, %v67_v31   ;;  %89 = vperm.xlu0 %3227, %v66_v32   ;;  %v3170_v55 = vpack.c.bf16 %v149_v53, %v145_v52  ;;  %v155_v58 = vld [vmem:[#allocation3 + $0x128] sm:$0xff]  ;;  %v153_v59 = vld [vmem:[#allocation3 + $0x118] sm:$0xff]  ;;  %v3172_v62 = vpack.c.bf16 %v148_v56, %v144_v54  ;;  %v150_v0 = vld [vmem:[#allocation3 + $0x100] sm:$0xff]  ;;  %v3997_v48 = vand.u32 127, %v5957_v47  ;;  %v3881_v54 = vmov 1.0  }
  0x38   :  { %3167 = vmatprep.subr.bf16.mxu1 %v3166_v42  ;;  %v157_v61 = vld [vmem:[#allocation3 + $0x138] sm:$0xff]  ;;  %v3142_v63 = vpack.c.bf16 %v155_v58, %v151_v57  ;;  %v154_v2 = vld [vmem:[#allocation3 + $0x120] sm:$0xff]  ;;  %v152_v3 = vld [vmem:[#allocation3 + $0x110] sm:$0xff] }
  0x39   :  { %3137 = vmatpush1.bf16.msra.mxu0 %v3136_v46  ;;  %3169 = vmatpush1.bf16.msra.mxu1 %v3168_v50  ;;  %v3174_v4 = vpack.c.bf16 %v157_v61, %v153_v59  ;;  %v156_v5 = vld [vmem:[#allocation3 + $0x130] sm:$0xff]  ;;  %v159_v6 = vld [vmem:[#allocation3 + $0x148] sm:$0xff]  ;;  %v161_v9 = vld [vmem:[#allocation3 + $0x158] sm:$0xff]  ;;  %v3144_v11 = vpack.c.bf16 %v154_v2, %v150_v0  ;;  %6254 = vst [vmem:[#allocation11_spill] sm:$0xff] %v3997_v48 }
  0x3a   :  { %3139 = vmatprep.subr.bf16.mxu0 %v3138_v51  ;;  %3171 = vmatprep.subr.bf16.mxu1 %v3170_v55  ;;  %v163_v8 = vld [vmem:[#allocation3 + $0x168] sm:$0xff]  ;;  %v165_v10 = vld [vmem:[#allocation3 + $0x178] sm:$0xff]  ;;  %v3176_v12 = vpack.c.bf16 %v156_v5, %v152_v3  ;;  %v158_v14 = vld [vmem:[#allocation3 + $0x140] sm:$0xff] }
  0x3b   :  { %v3146_v13 = vpack.c.bf16 %v163_v8, %v159_v6  ;;  %v162_v15 = vld [vmem:[#allocation3 + $0x160] sm:$0xff]  ;;  %v160_v16 = vld [vmem:[#allocation3 + $0x150] sm:$0xff]  ;;  %v3178_v17 = vpack.c.bf16 %v165_v10, %v161_v9  ;;  %v167_v19 = vld [vmem:[#allocation3 + $0x188] sm:$0xff] }
  0x3c   :  { %v164_v18 = vld [vmem:[#allocation3 + $0x170] sm:$0xff]  ;;  %v171_v20 = vld [vmem:[#allocation3 + $0x1a8] sm:$0xff]  ;;  %v166_v21 = vld [vmem:[#allocation3 + $0x180] sm:$0xff]  ;;  %v3148_v24 = vpack.c.bf16 %v162_v15, %v158_v14 }
  0x3d   :  { %3141 = vmatpush1.bf16.msra.mxu0 %v3140_v60  ;;  %3173 = vmatpush1.bf16.msra.mxu1 %v3172_v62  ;;  %v169_v22 = vld [vmem:[#allocation3 + $0x198] sm:$0xff]  ;;  %v170_v25 = vld [vmem:[#allocation3 + $0x1a0] sm:$0xff]  ;;  %v168_v26 = vld [vmem:[#allocation3 + $0x190] sm:$0xff]  ;;  %v3180_v28 = vpack.c.bf16 %v164_v18, %v160_v16  ;;  %v3150_v29 = vpack.c.bf16 %v171_v20, %v167_v19 }
  0x3e   :  { %3143 = vmatprep.subr.bf16.mxu0 %v3142_v63  ;;  %3175 = vmatprep.subr.bf16.mxu1 %v3174_v4  ;;  %v173_v23 = vld [vmem:[#allocation3 + $0x1b8] sm:$0xff]  ;;  %v172_v27 = vld [vmem:[#allocation3 + $0x1b0] sm:$0xff]  ;;  %v175_v30 = vld [vmem:[#allocation3 + $0x1c8] sm:$0xff]  ;;  %v3152_v35 = vpack.c.bf16 %v170_v25, %v166_v21 }
  0x3f   :  { %v3182_v31 = vpack.c.bf16 %v173_v23, %v169_v22  ;;  %v179_v32 = vld [vmem:[#allocation3 + $0x1e8] sm:$0xff]  ;;  %v177_v33 = vld [vmem:[#allocation3 + $0x1d8] sm:$0xff]  ;;  %v174_v36 = vld [vmem:[#allocation3 + $0x1c0] sm:$0xff]  ;;  %v3184_v38 = vpack.c.bf16 %v172_v27, %v168_v26 }
  0x40   :  { %v181_v34 = vld [vmem:[#allocation3 + $0x1f8] sm:$0xff]  ;;  %v178_v37 = vld [vmem:[#allocation3 + $0x1e0] sm:$0xff]  ;;  %v3154_v39 = vpack.c.bf16 %v179_v32, %v175_v30  ;;  %v176_v40 = vld [vmem:[#allocation3 + $0x1d0] sm:$0xff] }
  0x41   :  { %3145 = vmatpush1.bf16.msra.mxu0 %v3144_v11  ;;  %3177 = vmatpush1.bf16.msra.mxu1 %v3176_v12  ;;  %v3186_v41 = vpack.c.bf16 %v181_v34, %v177_v33  ;;  %v180_v42 = vld [vmem:[#allocation3 + $0x1f0] sm:$0xff]  ;;  %v3156_v43 = vpack.c.bf16 %v178_v37, %v174_v36  ;;  %v3992_v46 = vld [vmem:[%s5949_s3 + $0xc] ss:$16 sps:$4 sm:$0xff]  }
  0x42   :  { %3147 = vmatprep.subr.bf16.mxu0 %v3146_v13  ;;  %3179 = vmatprep.subr.bf16.mxu1 %v3178_v17  ;;  %v3188_v44 = vpack.c.bf16 %v180_v42, %v176_v40  ;;  %v3987_v45 = vld [vmem:[%s5949_s3 + $0x4] ss:$16 sps:$4 sm:$0xff]   ;;  %6253 = vst [vmem:[#allocation10_spill] sm:$0xff] %v3992_v46  ;;  %v4002_v49 = vld [vmem:[%s5949_s3] ss:$16 sps:$4 sm:$0xff]  }
  0x43   :  { %6252 = vst [vmem:[#allocation9_spill] sm:$0xff] %v3987_v45  ;;  %v4007_v50 = vld [vmem:[%s5949_s3 + $0x8] ss:$16 sps:$4 sm:$0xff]   ;;  %v4013_v52 = vld [vmem:[%s5949_s3 + $0x24] ss:$16 sps:$4 sm:$0xff]  }
  0x44   :  { %v4018_v53 = vld [vmem:[%s5949_s3 + $0x2c] ss:$16 sps:$4 sm:$0xff]   ;;  %v4027_v55 = vld [vmem:[%s5949_s3 + $0x20] ss:$16 sps:$4 sm:$0xff]   ;;  %v4032_v56 = vld [vmem:[%s5949_s3 + $0x28] ss:$16 sps:$4 sm:$0xff]  }
  0x45   :  { %3149 = vmatpush1.bf16.msra.mxu0 %v3148_v24  ;;  %3181 = vmatpush1.bf16.msra.mxu1 %v3180_v28  ;;  %v4042_v58 = vld [vmem:[%s5949_s3 + $0x44] ss:$16 sps:$4 sm:$0xff]   ;;  %v4047_v59 = vld [vmem:[%s5949_s3 + $0x4c] ss:$16 sps:$4 sm:$0xff]   ;;  %v4057_v61 = vld [vmem:[%s5949_s3 + $0x40] ss:$16 sps:$4 sm:$0xff]  }
  0x46   :  { %3151 = vmatprep.subr.bf16.mxu0 %v3150_v29  ;;  %3183 = vmatprep.subr.bf16.mxu1 %v3182_v31  ;;  %v4062_v62 = vld [vmem:[%s5949_s3 + $0x48] ss:$16 sps:$4 sm:$0xff]   ;;  %v4071_v63 = vld [vmem:[%s5949_s3 + $0x64] ss:$16 sps:$4 sm:$0xff]   ;;  %v4076_v0 = vld [vmem:[%s5949_s3 + $0x6c] ss:$16 sps:$4 sm:$0xff]  }
  0x47   :  { %v4085_v2 = vld [vmem:[%s5949_s3 + $0x60] ss:$16 sps:$4 sm:$0xff]   ;;  %v4090_v3 = vld [vmem:[%s5949_s3 + $0x68] ss:$16 sps:$4 sm:$0xff]   ;;  %v4100_v5 = vld [vmem:[%s5949_s3 + $0x84] ss:$16 sps:$4 sm:$0xff]  }
  0x48   :  { %v4105_v6 = vld [vmem:[%s5949_s3 + $0x8c] ss:$16 sps:$4 sm:$0xff]   ;;  %v4114_v9 = vld [vmem:[%s5949_s3 + $0x80] ss:$16 sps:$4 sm:$0xff]   ;;  %v4119_v10 = vld [vmem:[%s5949_s3 + $0x88] ss:$16 sps:$4 sm:$0xff]  }
  0x49   :  { %3153 = vmatpush1.bf16.msra.mxu0 %v3152_v35  ;;  %3185 = vmatpush1.bf16.msra.mxu1 %v3184_v38  ;;  %v4129_v11 = vld [vmem:[%s5949_s3 + $0xa4] ss:$16 sps:$4 sm:$0xff]   ;;  %v4134_v12 = vld [vmem:[%s5949_s3 + $0xac] ss:$16 sps:$4 sm:$0xff]   ;;  %v4143_v14 = vld [vmem:[%s5949_s3 + $0xa0] ss:$16 sps:$4 sm:$0xff]  }
  0x4a   :  { %3155 = vmatprep.subr.bf16.mxu0 %v3154_v39  ;;  %3187 = vmatprep.subr.bf16.mxu1 %v3186_v41  ;;  %v4148_v15 = vld [vmem:[%s5949_s3 + $0xa8] ss:$16 sps:$4 sm:$0xff]   ;;  %v4158_v16 = vld [vmem:[%s5949_s3 + $0xc4] ss:$16 sps:$4 sm:$0xff]   ;;  %v4163_v17 = vld [vmem:[%s5949_s3 + $0xcc] ss:$16 sps:$4 sm:$0xff]  }
  0x4b   :  { %v4172_v19 = vld [vmem:[%s5949_s3 + $0xc0] ss:$16 sps:$4 sm:$0xff]   ;;  %v4177_v20 = vld [vmem:[%s5949_s3 + $0xc8] ss:$16 sps:$4 sm:$0xff]   ;;  %v4187_v21 = vld [vmem:[%s5949_s3 + $0xe4] ss:$16 sps:$4 sm:$0xff]  }
  0x4c   :  { %v4192_v22 = vld [vmem:[%s5949_s3 + $0xec] ss:$16 sps:$4 sm:$0xff]   ;;  %v4201_v24 = vld [vmem:[%s5949_s3 + $0xe0] ss:$16 sps:$4 sm:$0xff]   ;;  %v4206_v25 = vld [vmem:[%s5949_s3 + $0xe8] ss:$16 sps:$4 sm:$0xff]  }
  0x4d   :  { %3157 = vmatpush1.bf16.msra.mxu0 %v3156_v43  ;;  %3189 = vmatpush1.bf16.msra.mxu1 %v3188_v44  ;;  %v4221_v26 = vld [vmem:[#allocation5 + $0x4] ss:$16 sps:$4 sm:$0xff]   ;;  %v4223_v27 = vld [vmem:[#allocation5 + $0xc] ss:$16 sps:$4 sm:$0xff]   ;;  %v4225_v28 = vld [vmem:[#allocation5] ss:$16 sps:$4 sm:$0xff]  }
  0x4e   :  { %665 = vmatprep.subr.bf16.mxu0 %v3987_v45  ;;  %706 = vmatprep.subr.bf16.mxu1 %v3992_v46  ;;  %v4227_v29 = vld [vmem:[#allocation5 + $0x8] ss:$16 sps:$4 sm:$0xff]   ;;  %v4233_v30 = vld [vmem:[#allocation5 + $0x24] ss:$16 sps:$4 sm:$0xff]   ;;  %v4235_v31 = vld [vmem:[#allocation5 + $0x2c] ss:$16 sps:$4 sm:$0xff]  }
  0x4f   :  { %v4237_v32 = vld [vmem:[#allocation5 + $0x20] ss:$16 sps:$4 sm:$0xff]   ;;  %v4239_v33 = vld [vmem:[#allocation5 + $0x28] ss:$16 sps:$4 sm:$0xff]   ;;  %v4245_v34 = vld [vmem:[#allocation5 + $0x44] ss:$16 sps:$4 sm:$0xff]  }
  0x50   :  { %v4247_v35 = vld [vmem:[#allocation5 + $0x4c] ss:$16 sps:$4 sm:$0xff]   ;;  %v4249_v36 = vld [vmem:[#allocation5 + $0x40] ss:$16 sps:$4 sm:$0xff]   ;;  %v4251_v37 = vld [vmem:[#allocation5 + $0x48] ss:$16 sps:$4 sm:$0xff]  }
  0x51   :  { %6255 = vst [vmem:[#allocation12_spill] sm:$0xff] %v4251_v37  ;;  %v4257_v38 = vld [vmem:[#allocation5 + $0x64] ss:$16 sps:$4 sm:$0xff]   ;;  %v4259_v39 = vld [vmem:[#allocation5 + $0x6c] ss:$16 sps:$4 sm:$0xff]  }
  0x52   :  { %6256 = vst [vmem:[#allocation13_spill] sm:$0xff] %v4257_v38  ;;  %6257 = vst [vmem:[#allocation14_spill] sm:$0xff] %v4259_v39  ;;  %v4261_v40 = vld [vmem:[#allocation5 + $0x60] ss:$16 sps:$4 sm:$0xff]   ;;  %v4263_v41 = vld [vmem:[#allocation5 + $0x68] ss:$16 sps:$4 sm:$0xff]  }
  0x53   :  { %6258 = vst [vmem:[#allocation15_spill] sm:$0xff] %v4261_v40  ;;  %6259 = vst [vmem:[#allocation16_spill] sm:$0xff] %v4263_v41  ;;  %v4269_v42 = vld [vmem:[#allocation5 + $0x84] ss:$16 sps:$4 sm:$0xff]   ;;  %v4271_v43 = vld [vmem:[#allocation5 + $0x8c] ss:$16 sps:$4 sm:$0xff]  }
  0x54   :  { %6260 = vst [vmem:[#allocation17_spill] sm:$0xff] %v4269_v42  ;;  %6261 = vst [vmem:[#allocation18_spill] sm:$0xff] %v4271_v43  ;;  %v4273_v44 = vld [vmem:[#allocation5 + $0x80] ss:$16 sps:$4 sm:$0xff]   ;;  %v4307_v47 = vld [vmem:[#allocation5 + $0xec] ss:$16 sps:$4 sm:$0xff]  }
  0x55   :  { %6262 = vst [vmem:[#allocation19_spill] sm:$0xff] %v4273_v44  ;;  %6273 = vst [vmem:[#allocation30_spill] sm:$0xff] %v4307_v47 }
  0xaa   :  { %v72_v51 = vpop.permute.xlu0 %71  ;;  %v78_v60 = vpop.permute.xlu1 %77 }
  0xab   :  { %vm94_vm0 = vcmp.eq.s32.totalorder %v3997_v48, %v72_v51  ;;  %vm96_vm2 = vcmp.eq.s32.totalorder %v3997_v48, %v78_v60  ;;  %v4275_v51 = vld [vmem:[#allocation5 + $0x88] ss:$16 sps:$4 sm:$0xff]   ;;  %v4285_v60 = vld [vmem:[#allocation5 + $0xa0] ss:$16 sps:$4 sm:$0xff]  }
  0xac   :  { %2912 = vmatmul.mubr.msk.f32.vlgmr.msra.gmra.mrb[0].mxu0 %vm94_vm0, %v3881_v54  ;;  %2920 = vmatmul.mubr.msk.f32.vlgmr.msra.gmra.mrb[0].mxu1 %vm94_vm0, %v3881_v54  ;;  %6263 = vst [vmem:[#allocation20_spill] sm:$0xff] %v4275_v51  ;;  %6266 = vst [vmem:[#allocation23_spill] sm:$0xff] %v4285_v60 }
  0xad   :  { %666 = vmatpush1.bf16.msra.mxu0 %v4002_v49  ;;  %707 = vmatpush1.bf16.msra.mxu1 %v4007_v50 }
  0xae   :  { %v75_v57 = vpop.permute.xlu0 %74  ;;  %252 = vmatprep.mubr.f32.mxu0 %v5955_v7  ;;  %365 = vmatprep.mubr.f32.mxu1 %v5955_v7  ;;  %v81_v4 = vpop.permute.xlu1 %80 }
  0xaf   :  { %vm95_vm1 = vcmp.eq.s32.totalorder %v3997_v48, %v75_v57  ;;  %667 = vmatprep.subr.bf16.mxu0 %v4013_v52  ;;  %708 = vmatprep.subr.bf16.mxu1 %v4018_v53  ;;  %vm97_vm3 = vcmp.eq.s32.totalorder %v3997_v48, %v81_v4  ;;  %v4283_v57 = vld [vmem:[#allocation5 + $0xac] ss:$16 sps:$4 sm:$0xff]   ;;  %v4287_v4 = vld [vmem:[#allocation5 + $0xa8] ss:$16 sps:$4 sm:$0xff]  }
  0xb0   :  { %2913 = vmatmul.mubr.msk.f32.gmra.mrb[2].mxu0 %vm95_vm1, %v3881_v54  ;;  %2921 = vmatmul.mubr.msk.f32.gmra.mrb[2].mxu1 %vm95_vm1, %v3881_v54  ;;  %6265 = vst [vmem:[#allocation22_spill] sm:$0xff] %v4283_v57  ;;  %6267 = vst [vmem:[#allocation24_spill] sm:$0xff] %v4287_v4 }
  0xb1   :  { %668 = vmatpush1.bf16.msra.mxu0 %v4027_v55  ;;  %709 = vmatpush1.bf16.msra.mxu1 %v4032_v56 }
  0xb2   :  { %258 = vmatprep.mubr.f32.mxu0 %v5955_v7  ;;  %371 = vmatprep.mubr.f32.mxu1 %v5955_v7  ;;  %v84_v8 = vpop.permute.xlu0 %83  ;;  %v87_v13 = vpop.permute.xlu1 %86 }
  0xb3   :  { %669 = vmatprep.subr.bf16.mxu0 %v4042_v58  ;;  %710 = vmatprep.subr.bf16.mxu1 %v4047_v59  ;;  %vm98_vm4 = vcmp.eq.s32.totalorder %v3997_v48, %v84_v8  ;;  %vm99_vm5 = vcmp.eq.s32.totalorder %v3997_v48, %v87_v13  ;;  %v4293_v8 = vld [vmem:[#allocation5 + $0xc4] ss:$16 sps:$4 sm:$0xff]   ;;  %v4295_v13 = vld [vmem:[#allocation5 + $0xcc] ss:$16 sps:$4 sm:$0xff]  }
  0xb4   :  { %2914 = vmatmul.mubr.msk.f32.gmra.mrb[4].mxu0 %vm96_vm2, %v3881_v54  ;;  %2922 = vmatmul.mubr.msk.f32.gmra.mrb[4].mxu1 %vm96_vm2, %v3881_v54  ;;  %6268 = vst [vmem:[#allocation25_spill] sm:$0xff] %v4293_v8  ;;  %6269 = vst [vmem:[#allocation26_spill] sm:$0xff] %v4295_v13 }
  0xb5   :  { %670 = vmatpush1.bf16.msra.mxu0 %v4057_v61  ;;  %711 = vmatpush1.bf16.msra.mxu1 %v4062_v62 }
  0xb6   :  { %264 = vmatprep.mubr.f32.mxu0 %v5955_v7  ;;  %377 = vmatprep.mubr.f32.mxu1 %v5955_v7  ;;  %v90_v18 = vpop.permute.xlu0 %89  ;;  %v93_v23 = vpop.permute.xlu1 %92 }
  0xb7   :  { %671 = vmatprep.subr.bf16.mxu0 %v4071_v63  ;;  %712 = vmatprep.subr.bf16.mxu1 %v4076_v0  ;;  %vm100_vm6 = vcmp.eq.s32.totalorder %v3997_v48, %v90_v18  ;;  %vm101_vm7 = vcmp.eq.s32.totalorder %v3997_v48, %v93_v23  ;;  %v4297_v18 = vld [vmem:[#allocation5 + $0xc0] ss:$16 sps:$4 sm:$0xff]   ;;  %v4299_v23 = vld [vmem:[#allocation5 + $0xc8] ss:$16 sps:$4 sm:$0xff]  }
  0xb8   :  { %2915 = vmatmul.mubr.msk.f32.gmra.mrb[6].mxu0 %vm97_vm3, %v3881_v54  ;;  %2923 = vmatmul.mubr.msk.f32.gmra.mrb[6].mxu1 %vm97_vm3, %v3881_v54  ;;  %6270 = vst [vmem:[#allocation27_spill] sm:$0xff] %v4297_v18  ;;  %6271 = vst [vmem:[#allocation28_spill] sm:$0xff] %v4299_v23  ;;  %v4311_v48 = vld [vmem:[#allocation5 + $0xe8] ss:$16 sps:$4 sm:$0xff]  }
  0xb9   :  { %672 = vmatpush1.bf16.msra.mxu0 %v4085_v2  ;;  %713 = vmatpush1.bf16.msra.mxu1 %v4090_v3  ;;  %6275 = vst [vmem:[#allocation32_spill] sm:$0xff] %v4311_v48 }
  0xba   :  { %270 = vmatprep.mubr.f32.mxu0 %v5955_v7  ;;  %383 = vmatprep.mubr.f32.mxu1 %v5955_v7 }
  0xbb   :  { %673 = vmatprep.subr.bf16.mxu0 %v4100_v5  ;;  %714 = vmatprep.subr.bf16.mxu1 %v4105_v6 }
  0xbc   :  { %2916 = vmatmul.mubr.msk.f32.gmra.mrb[8].mxu0 %vm98_vm4, %v3881_v54  ;;  %2924 = vmatmul.mubr.msk.f32.gmra.mrb[8].mxu1 %vm98_vm4, %v3881_v54 }
  0xbd   :  { %674 = vmatpush1.bf16.msra.mxu0 %v4114_v9  ;;  %715 = vmatpush1.bf16.msra.mxu1 %v4119_v10 }
  0xbe   :  { %276 = vmatprep.mubr.f32.mxu0 %v5955_v7  ;;  %389 = vmatprep.mubr.f32.mxu1 %v5955_v7 }
  0xbf   :  { %675 = vmatprep.subr.bf16.mxu0 %v4129_v11  ;;  %716 = vmatprep.subr.bf16.mxu1 %v4134_v12 }
  0xc0   :  { %2917 = vmatmul.mubr.msk.f32.gmra.mrb[10].mxu0 %vm99_vm5, %v3881_v54  ;;  %2925 = vmatmul.mubr.msk.f32.gmra.mrb[10].mxu1 %vm99_vm5, %v3881_v54 }
  0xc1   :  { %676 = vmatpush1.bf16.msra.mxu0 %v4143_v14  ;;  %717 = vmatpush1.bf16.msra.mxu1 %v4148_v15 }
  0xc2   :  { %282 = vmatprep.mubr.f32.mxu0 %v5955_v7  ;;  %395 = vmatprep.mubr.f32.mxu1 %v5955_v7 }
  0xc3   :  { %677 = vmatprep.subr.bf16.mxu0 %v4158_v16  ;;  %718 = vmatprep.subr.bf16.mxu1 %v4163_v17 }
  0xc4   :  { %2918 = vmatmul.mubr.msk.f32.gmra.mrb[12].mxu0 %vm100_vm6, %v3881_v54  ;;  %2926 = vmatmul.mubr.msk.f32.gmra.mrb[12].mxu1 %vm100_vm6, %v3881_v54 }
  0xc5   :  { %678 = vmatpush1.bf16.msra.mxu0 %v4172_v19  ;;  %719 = vmatpush1.bf16.msra.mxu1 %v4177_v20 }
  0xc6   :  { %288 = vmatprep.mubr.f32.mxu0 %v5955_v7  ;;  %401 = vmatprep.mubr.f32.mxu1 %v5955_v7  ;;  %v4305_v7 = vld [vmem:[#allocation5 + $0xe4] ss:$16 sps:$4 sm:$0xff]  }
  0xc7   :  { %679 = vmatprep.subr.bf16.mxu0 %v4187_v21  ;;  %720 = vmatprep.subr.bf16.mxu1 %v4192_v22  ;;  %6272 = vst [vmem:[#allocation29_spill] sm:$0xff] %v4305_v7 }
  0xc8   :  { %2919 = vmatmul.mubr.msk.f32.gmra.mrb[14].mxu0 %vm101_vm7, %v3881_v54  ;;  %2927 = vmatmul.mubr.msk.f32.gmra.mrb[14].mxu1 %vm101_vm7, %v3881_v54  ;;  %v4281_v54 = vld [vmem:[#allocation5 + $0xa4] ss:$16 sps:$4 sm:$0xff]  }
  0xc9   :  { %680 = vmatpush1.bf16.msra.mxu0 %v4201_v24  ;;  %721 = vmatpush1.bf16.msra.mxu1 %v4206_v25  ;;  %6264 = vst [vmem:[#allocation21_spill] sm:$0xff] %v4281_v54 }
  0xca   :  { %697 = vmatprep.mubr.bf16.mxu0 %v5958_v1  ;;  %738 = vmatprep.mubr.bf16.mxu1 %v5958_v1 }
  0xcb   :  { %1118 = vmatprep.subr.bf16.mxu0 %v4221_v26  ;;  %1159 = vmatprep.subr.bf16.mxu1 %v4223_v27 }
  0xcc   :  { %698 = vmatmul.mubr.bf16.vlgmr.msra.gmra.mrb[16].mxu0 %v5958_v1  ;;  %739 = vmatmul.mubr.bf16.vlgmr.msra.gmra.mrb[16].mxu1 %v5958_v1  ;;  %v4309_v1 = vld [vmem:[#allocation5 + $0xe0] ss:$16 sps:$4 sm:$0xff]  }
  0xcd   :  { %1119 = vmatpush1.bf16.msra.mxu0 %v4225_v28  ;;  %1160 = vmatpush1.bf16.msra.mxu1 %v4227_v29  ;;  %6274 = vst [vmem:[#allocation31_spill] sm:$0xff] %v4309_v1 }
  0xce   :  { %1120 = vmatprep.subr.bf16.mxu0 %v4233_v30  ;;  %1161 = vmatprep.subr.bf16.mxu1 %v4235_v31 }
  0xd1   :  { %1121 = vmatpush1.bf16.msra.mxu0 %v4237_v32  ;;  %1162 = vmatpush1.bf16.msra.mxu1 %v4239_v33 }
  0xd2   :  { %1122 = vmatprep.subr.bf16.mxu0 %v4245_v34  ;;  %1163 = vmatprep.subr.bf16.mxu1 %v4247_v35 }
  0xd5   :  { %1123 = vmatpush1.bf16.msra.mxu0 %v4249_v36  ;;  %1164 = vmatpush1.bf16.msra.mxu1 %v4251_v37 }
  0xd6   :  { %1124 = vmatprep.subr.bf16.mxu0 %v4257_v38  ;;  %1165 = vmatprep.subr.bf16.mxu1 %v4259_v39 }
  0xd9   :  { %1125 = vmatpush1.bf16.msra.mxu0 %v4261_v40  ;;  %1166 = vmatpush1.bf16.msra.mxu1 %v4263_v41 }
  0xda   :  { %1126 = vmatprep.subr.bf16.mxu0 %v4269_v42  ;;  %1167 = vmatprep.subr.bf16.mxu1 %v4271_v43 }
  0xdd   :  { %1127 = vmatpush1.bf16.msra.mxu0 %v4273_v44  ;;  %1168 = vmatpush1.bf16.msra.mxu1 %v4275_v51 }
  0xde   :  { %1128 = vmatprep.subr.bf16.mxu0 %v4281_v54  ;;  %1169 = vmatprep.subr.bf16.mxu1 %v4283_v57  ;;  %v6028_v57 = vmov 0.0|0.0  }
  0xdf   :  { %1150 = vmatprep.mubr.bf16.mxu0 %v6028_v57  ;;  %1191 = vmatprep.mubr.bf16.mxu1 %v6028_v57 }
  0xe1   :  { %1129 = vmatpush1.bf16.msra.mxu0 %v4285_v60  ;;  %1170 = vmatpush1.bf16.msra.mxu1 %v4287_v4  ;;  %v4385_v4 = vld [vmem:[#allocation5 + $0x1c4] ss:$16 sps:$4 sm:$0xff]   ;;  %v4387_v60 = vld [vmem:[#allocation5 + $0x1cc] ss:$16 sps:$4 sm:$0xff]  }
  0xe2   :  { %1130 = vmatprep.subr.bf16.mxu0 %v4293_v8  ;;  %1171 = vmatprep.subr.bf16.mxu1 %v4295_v13  ;;  %v4317_v13 = vld [vmem:[#allocation5 + $0x104] ss:$16 sps:$4 sm:$0xff]   ;;  %v4323_v8 = vld [vmem:[#allocation5 + $0x108] ss:$16 sps:$4 sm:$0xff]   ;;  %6300 = vst [vmem:[#allocation57_spill] sm:$0xff] %v4385_v4  ;;  %6301 = vst [vmem:[#allocation58_spill] sm:$0xff] %v4387_v60 }
  0xe3   :  { %6276 = vst [vmem:[#allocation33_spill] sm:$0xff] %v4317_v13  ;;  %6279 = vst [vmem:[#allocation36_spill] sm:$0xff] %v4323_v8 }
  0xe5   :  { %1131 = vmatpush1.bf16.msra.mxu0 %v4297_v18  ;;  %1172 = vmatpush1.bf16.msra.mxu1 %v4299_v23  ;;  %v4319_v18 = vld [vmem:[#allocation5 + $0x10c] ss:$16 sps:$4 sm:$0xff]   ;;  %v4321_v23 = vld [vmem:[#allocation5 + $0x100] ss:$16 sps:$4 sm:$0xff]  }
  0xe6   :  { %1132 = vmatprep.subr.bf16.mxu0 %v4305_v7  ;;  %1173 = vmatprep.subr.bf16.mxu1 %v4307_v47  ;;  %6277 = vst [vmem:[#allocation34_spill] sm:$0xff] %v4319_v18  ;;  %6278 = vst [vmem:[#allocation35_spill] sm:$0xff] %v4321_v23  ;;  %v4329_v47 = vld [vmem:[#allocation5 + $0x124] ss:$16 sps:$4 sm:$0xff]   ;;  %v4335_v7 = vld [vmem:[#allocation5 + $0x128] ss:$16 sps:$4 sm:$0xff]  }
  0xe7   :  { %6280 = vst [vmem:[#allocation37_spill] sm:$0xff] %v4329_v47  ;;  %6283 = vst [vmem:[#allocation40_spill] sm:$0xff] %v4335_v7 }
  0xe9   :  { %1133 = vmatpush1.bf16.msra.mxu0 %v4309_v1  ;;  %1174 = vmatpush1.bf16.msra.mxu1 %v4311_v48  ;;  %v4331_v1 = vld [vmem:[#allocation5 + $0x12c] ss:$16 sps:$4 sm:$0xff]   ;;  %v4333_v48 = vld [vmem:[#allocation5 + $0x120] ss:$16 sps:$4 sm:$0xff]  }
  0xea   :  { %1134 = vmatprep.subr.bf16.mxu0 %v4317_v13  ;;  %1175 = vmatprep.subr.bf16.mxu1 %v4319_v18  ;;  %6281 = vst [vmem:[#allocation38_spill] sm:$0xff] %v4331_v1  ;;  %6282 = vst [vmem:[#allocation39_spill] sm:$0xff] %v4333_v48  ;;  %v4341_v18 = vld [vmem:[#allocation5 + $0x144] ss:$16 sps:$4 sm:$0xff]   ;;  %v4347_v13 = vld [vmem:[#allocation5 + $0x148] ss:$16 sps:$4 sm:$0xff]  }
  0xeb   :  { %6284 = vst [vmem:[#allocation41_spill] sm:$0xff] %v4341_v18  ;;  %6287 = vst [vmem:[#allocation44_spill] sm:$0xff] %v4347_v13 }
  0xed   :  { %1135 = vmatpush1.bf16.msra.mxu0 %v4321_v23  ;;  %1176 = vmatpush1.bf16.msra.mxu1 %v4323_v8  ;;  %v4343_v23 = vld [vmem:[#allocation5 + $0x14c] ss:$16 sps:$4 sm:$0xff]   ;;  %v4345_v8 = vld [vmem:[#allocation5 + $0x140] ss:$16 sps:$4 sm:$0xff]  }
  0xee   :  { %1136 = vmatprep.subr.bf16.mxu0 %v4329_v47  ;;  %1177 = vmatprep.subr.bf16.mxu1 %v4331_v1  ;;  %6285 = vst [vmem:[#allocation42_spill] sm:$0xff] %v4343_v23  ;;  %6286 = vst [vmem:[#allocation43_spill] sm:$0xff] %v4345_v8  ;;  %v4353_v1 = vld [vmem:[#allocation5 + $0x164] ss:$16 sps:$4 sm:$0xff]   ;;  %v4359_v47 = vld [vmem:[#allocation5 + $0x168] ss:$16 sps:$4 sm:$0xff]  }
  0xef   :  { %6288 = vst [vmem:[#allocation45_spill] sm:$0xff] %v4353_v1  ;;  %6291 = vst [vmem:[#allocation48_spill] sm:$0xff] %v4359_v47 }
  0xf1   :  { %1137 = vmatpush1.bf16.msra.mxu0 %v4333_v48  ;;  %1178 = vmatpush1.bf16.msra.mxu1 %v4335_v7  ;;  %v4355_v48 = vld [vmem:[#allocation5 + $0x16c] ss:$16 sps:$4 sm:$0xff]   ;;  %v4357_v7 = vld [vmem:[#allocation5 + $0x160] ss:$16 sps:$4 sm:$0xff]  }
  0xf2   :  { %1138 = vmatprep.subr.bf16.mxu0 %v4341_v18  ;;  %1179 = vmatprep.subr.bf16.mxu1 %v4343_v23  ;;  %6289 = vst [vmem:[#allocation46_spill] sm:$0xff] %v4355_v48  ;;  %6290 = vst [vmem:[#allocation47_spill] sm:$0xff] %v4357_v7  ;;  %v4365_v23 = vld [vmem:[#allocation5 + $0x184] ss:$16 sps:$4 sm:$0xff]   ;;  %v4371_v18 = vld [vmem:[#allocation5 + $0x188] ss:$16 sps:$4 sm:$0xff]  }
  0xf3   :  { %6292 = vst [vmem:[#allocation49_spill] sm:$0xff] %v4365_v23  ;;  %6295 = vst [vmem:[#allocation52_spill] sm:$0xff] %v4371_v18 }
  0xf5   :  { %1139 = vmatpush1.bf16.msra.mxu0 %v4345_v8  ;;  %1180 = vmatpush1.bf16.msra.mxu1 %v4347_v13  ;;  %v4367_v8 = vld [vmem:[#allocation5 + $0x18c] ss:$16 sps:$4 sm:$0xff]   ;;  %v4369_v13 = vld [vmem:[#allocation5 + $0x180] ss:$16 sps:$4 sm:$0xff]  }
  0xf6   :  { %1140 = vmatprep.subr.bf16.mxu0 %v4353_v1  ;;  %1181 = vmatprep.subr.bf16.mxu1 %v4355_v48  ;;  %6293 = vst [vmem:[#allocation50_spill] sm:$0xff] %v4367_v8  ;;  %6294 = vst [vmem:[#allocation51_spill] sm:$0xff] %v4369_v13  ;;  %v4377_v48 = vld [vmem:[#allocation5 + $0x1a4] ss:$16 sps:$4 sm:$0xff]   ;;  %v4383_v1 = vld [vmem:[#allocation5 + $0x1a8] ss:$16 sps:$4 sm:$0xff]  }
  0xf7   :  { %6296 = vst [vmem:[#allocation53_spill] sm:$0xff] %v4377_v48  ;;  %6299 = vst [vmem:[#allocation56_spill] sm:$0xff] %v4383_v1 }
  0xf9   :  { %1141 = vmatpush1.bf16.msra.mxu0 %v4357_v7  ;;  %1182 = vmatpush1.bf16.msra.mxu1 %v4359_v47  ;;  %v4379_v7 = vld [vmem:[#allocation5 + $0x1ac] ss:$16 sps:$4 sm:$0xff]   ;;  %v4381_v47 = vld [vmem:[#allocation5 + $0x1a0] ss:$16 sps:$4 sm:$0xff]  }
  0xfa   :  { %1142 = vmatprep.subr.bf16.mxu0 %v4365_v23  ;;  %1183 = vmatprep.subr.bf16.mxu1 %v4367_v8  ;;  %6297 = vst [vmem:[#allocation54_spill] sm:$0xff] %v4379_v7  ;;  %6298 = vst [vmem:[#allocation55_spill] sm:$0xff] %v4381_v47  ;;  %v4399_v8 = vld [vmem:[#allocation5 + $0x1e4] ss:$16 sps:$4 sm:$0xff]   ;;  %v4401_v23 = vld [vmem:[#allocation5 + $0x1ec] ss:$16 sps:$4 sm:$0xff]  }
  0xfb   :  { %6304 = vst [vmem:[#allocation61_spill] sm:$0xff] %v4399_v8  ;;  %6305 = vst [vmem:[#allocation62_spill] sm:$0xff] %v4401_v23 }
  0xfd   :  { %1143 = vmatpush1.bf16.msra.mxu0 %v4369_v13  ;;  %1184 = vmatpush1.bf16.msra.mxu1 %v4371_v18  ;;  %v4393_v18 = vld [vmem:[#allocation5 + $0x1c0] ss:$16 sps:$4 sm:$0xff]   ;;  %v4395_v13 = vld [vmem:[#allocation5 + $0x1c8] ss:$16 sps:$4 sm:$0xff]  }
  0xfe   :  { %1144 = vmatprep.subr.bf16.mxu0 %v4377_v48  ;;  %1185 = vmatprep.subr.bf16.mxu1 %v4379_v7  ;;  %6302 = vst [vmem:[#allocation59_spill] sm:$0xff] %v4393_v18  ;;  %6303 = vst [vmem:[#allocation60_spill] sm:$0xff] %v4395_v13 }
 0x101   :  { %1145 = vmatpush1.bf16.msra.mxu0 %v4381_v47  ;;  %1186 = vmatpush1.bf16.msra.mxu1 %v4383_v1  ;;  %v4407_v1 = vld [vmem:[#allocation5 + $0x1e0] ss:$16 sps:$4 sm:$0xff]   ;;  %v4409_v47 = vld [vmem:[#allocation5 + $0x1e8] ss:$16 sps:$4 sm:$0xff]  }
 0x102   :  { %1146 = vmatprep.subr.bf16.mxu0 %v4385_v4  ;;  %1187 = vmatprep.subr.bf16.mxu1 %v4387_v60  ;;  %6306 = vst [vmem:[#allocation63_spill] sm:$0xff] %v4407_v1  ;;  %6307 = vst [vmem:[#allocation64_spill] sm:$0xff] %v4409_v47 }
 0x105   :  { %1147 = vmatpush1.bf16.msra.mxu0 %v4393_v18  ;;  %1188 = vmatpush1.bf16.msra.mxu1 %v4395_v13 }
 0x106   :  { %1148 = vmatprep.subr.bf16.mxu0 %v4399_v8  ;;  %1189 = vmatprep.subr.bf16.mxu1 %v4401_v23 }
 0x109   :  { %1149 = vmatpush1.bf16.msra.mxu0 %v4407_v1  ;;  %1190 = vmatpush1.bf16.msra.mxu1 %v4409_v47 }
 0x10a   :  { %1224 = vmatprep.subr.bf16.mxu0 %v3987_v45  ;;  %1265 = vmatprep.subr.bf16.mxu1 %v3992_v46 }
 0x17f   :  { %v248_v57 = vpop.f32.mrb[0].mxu0  ;;  %v361_v18 = vpop.f32.mrb[0].mxu1 }
 0x180   :  { %v250_v60 = vpop.f32.mrb[1].mxu0  ;;  %v363_v13 = vpop.f32.mrb[1].mxu1 }
 0x183   :  { %v4417_v4 = vpop.f32.mrb[2].mxu0  ;;  %v4419_v7 = vpop.f32.mrb[2].mxu1 }
 0x184   :  { %6308 = vst [vmem:[#allocation65_spill] sm:$0xff] %v4417_v4  ;;  %6309 = vst [vmem:[#allocation66_spill] sm:$0xff] %v4419_v7  ;;  %v4421_v48 = vpop.f32.mrb[3].mxu0  ;;  %v4423_v8 = vpop.f32.mrb[3].mxu1 }
 0x185   :  { %6310 = vst [vmem:[#allocation67_spill] sm:$0xff] %v4421_v48  ;;  %6311 = vst [vmem:[#allocation68_spill] sm:$0xff] %v4423_v8 }
 0x187   :  { %v4425_v23 = vpop.f32.mrb[4].mxu0  ;;  %v4427_v1 = vpop.f32.mrb[4].mxu1 }
 0x188   :  { %6312 = vst [vmem:[#allocation69_spill] sm:$0xff] %v4425_v23  ;;  %6313 = vst [vmem:[#allocation70_spill] sm:$0xff] %v4427_v1  ;;  %v4429_v47 = vpop.f32.mrb[5].mxu0  ;;  %v4431_v45 = vpop.f32.mrb[5].mxu1 }
 0x189   :  { %6314 = vst [vmem:[#allocation71_spill] sm:$0xff] %v4429_v47  ;;  %6315 = vst [vmem:[#allocation72_spill] sm:$0xff] %v4431_v45 }
 0x18b   :  { %v4433_v46 = vpop.f32.mrb[6].mxu0  ;;  %v4435_v54 = vpop.f32.mrb[6].mxu1 }
 0x18c   :  { %6316 = vst [vmem:[#allocation73_spill] sm:$0xff] %v4433_v46  ;;  %6317 = vst [vmem:[#allocation74_spill] sm:$0xff] %v4435_v54  ;;  %v4437_v51 = vpop.f32.mrb[7].mxu0  ;;  %v4439_v4 = vpop.f32.mrb[7].mxu1 }
 0x18d   :  { %6318 = vst [vmem:[#allocation75_spill] sm:$0xff] %v4437_v51  ;;  %6319 = vst [vmem:[#allocation76_spill] sm:$0xff] %v4439_v4 }
 0x18f   :  { %v4441_v7 = vpop.f32.mrb[8].mxu0  ;;  %v4443_v48 = vpop.f32.mrb[8].mxu1 }
 0x190   :  { %6320 = vst [vmem:[#allocation77_spill] sm:$0xff] %v4441_v7  ;;  %6321 = vst [vmem:[#allocation78_spill] sm:$0xff] %v4443_v48  ;;  %v4445_v8 = vpop.f32.mrb[9].mxu0  ;;  %v4447_v23 = vpop.f32.mrb[9].mxu1 }
 0x191   :  { %6322 = vst [vmem:[#allocation79_spill] sm:$0xff] %v4445_v8  ;;  %6323 = vst [vmem:[#allocation80_spill] sm:$0xff] %v4447_v23 }
 0x193   :  { %v4449_v1 = vpop.f32.mrb[10].mxu0  ;;  %v4451_v47 = vpop.f32.mrb[10].mxu1 }
 0x194   :  { %6324 = vst [vmem:[#allocation81_spill] sm:$0xff] %v4449_v1  ;;  %6325 = vst [vmem:[#allocation82_spill] sm:$0xff] %v4451_v47  ;;  %v4453_v45 = vpop.f32.mrb[11].mxu0  ;;  %v4455_v46 = vpop.f32.mrb[11].mxu1 }
 0x195   :  { %6326 = vst [vmem:[#allocation83_spill] sm:$0xff] %v4453_v45  ;;  %6327 = vst [vmem:[#allocation84_spill] sm:$0xff] %v4455_v46 }
 0x197   :  { %v4457_v54 = vpop.f32.mrb[12].mxu0  ;;  %v4459_v51 = vpop.f32.mrb[12].mxu1 }
 0x198   :  { %6328 = vst [vmem:[#allocation85_spill] sm:$0xff] %v4457_v54  ;;  %6329 = vst [vmem:[#allocation86_spill] sm:$0xff] %v4459_v51  ;;  %v4461_v4 = vpop.f32.mrb[13].mxu0  ;;  %v4463_v7 = vpop.f32.mrb[13].mxu1 }
 0x199   :  { %6330 = vst [vmem:[#allocation87_spill] sm:$0xff] %v4461_v4  ;;  %6331 = vst [vmem:[#allocation88_spill] sm:$0xff] %v4463_v7 }
 0x19b   :  { %v4465_v48 = vpop.f32.mrb[14].mxu0  ;;  %v4467_v8 = vpop.f32.mrb[14].mxu1 }
 0x19c   :  { %6332 = vst [vmem:[#allocation89_spill] sm:$0xff] %v4465_v48  ;;  %6333 = vst [vmem:[#allocation90_spill] sm:$0xff] %v4467_v8  ;;  %v4469_v23 = vpop.f32.mrb[15].mxu0  ;;  %v4471_v1 = vpop.f32.mrb[15].mxu1 }
 0x19d   :  { %6334 = vst [vmem:[#allocation91_spill] sm:$0xff] %v4469_v23  ;;  %6335 = vst [vmem:[#allocation92_spill] sm:$0xff] %v4471_v1 }
 0x19f   :  { %v699_v47 = vpop.f32.mrb[16].mxu0  ;;  %v740_v45 = vpop.f32.mrb[16].mxu1 }
 0x1a0   :  { %v747_v44 = vadd.f32 %v699_v47, %v248_v57  ;;  %v749_v46 = vadd.f32 %v740_v45, %v361_v18  ;;  %v701_v43 = vpop.f32.mrb[17].mxu0  ;;  %v742_v54 = vpop.f32.mrb[17].mxu1  ;;  %v6343_v18 = vld [vmem:[#allocation19_spill] sm:$0xff] }
 0x1a1   :  { %v748_v42 = vadd.f32 %v701_v43, %v250_v60  ;;  %v750_v51 = vadd.f32 %v742_v54, %v363_v13  ;;  %v703_v41 = vpop.f32.mrb[18].mxu0  ;;  %v744_v4 = vpop.f32.mrb[18].mxu1  ;;  %v6339_v60 = vld [vmem:[#allocation15_spill] sm:$0xff]  ;;  %v6342_v13 = vld [vmem:[#allocation18_spill] sm:$0xff] }
 0x1a2   :  { %v2960_v40 = vmul.f32 -1.442695, %v747_v44  ;;  %v704_v7 = vpop.f32.mrb[19].mxu0  ;;  %v745_v39 = vpop.f32.mrb[19].mxu1  ;;  %v2962_v8 = vmul.f32 -1.442695, %v749_v46 }
 0x1a3   :  { %v2961_v48 = vmul.f32 -1.442695, %v748_v42  ;;  %v6340_v4 = vld [vmem:[#allocation16_spill] sm:$0xff] }
 0x1a4   :  { %3373 = vpow2.f32 %v2960_v40 }
 0x1a5   :  { %3375 = vpow2.f32 %v2961_v48 }
 0x1a6   :  { %3377 = vtanh.f32 %v750_v51  ;;  %v6338_v51 = vld [vmem:[#allocation14_spill] sm:$0xff] }
 0x1a7   :  { %3379 = vpow2.f32 %v2962_v8  ;;  %v6341_v8 = vld [vmem:[#allocation17_spill] sm:$0xff] }
 0x1ae   :  { %v3374_v23 = vpop.eup %3373 }
 0x1af   :  { %v754_v38 = vadd.f32 1.0, %v3374_v23  ;;  %v3376_v1 = vpop.eup %3375  ;;  %v6344_v23 = vld [vmem:[#allocation20_spill] sm:$0xff] }
 0x1b0   :  { %v760_v45 = vadd.f32 1.0, %v3376_v1  ;;  %v3378_v47 = vpop.eup %3377  ;;  %v6336_v1 = vmov 0  }
 0x1b1   :  { %3381 = vrcp.f32 %v754_v38  ;;  %v3380_v43 = vpop.eup %3379  ;;  %v6337_v38 = vld [vmem:[#allocation13_spill] sm:$0xff] }
 0x1b2   :  { %3383 = vrcp.f32 %v760_v45  ;;  %v766_v44 = vadd.f32 1.0, %v3380_v43  ;;  %v6345_v45 = vld [vmem:[#allocation21_spill] sm:$0xff]  ;;  %v6347_v43 = vld [vmem:[#allocation23_spill] sm:$0xff] }
 0x1b4   :  { %3385 = vrcp.f32 %v766_v44  ;;  %v6351_v44 = vld [vmem:[#allocation27_spill] sm:$0xff] }
 0x1bb   :  { %v3382_v54 = vpop.eup %3381 }
 0x1bc   :  { %v771_v41 = vmul.f32 %v3382_v54, %v3378_v47  ;;  %v3384_v57 = vpop.eup %3383  ;;  %v6346_v47 = vld [vmem:[#allocation22_spill] sm:$0xff]  ;;  %v6348_v54 = vld [vmem:[#allocation24_spill] sm:$0xff] }
 0x1bd   :  { %v770_v7 = vmul.f32 0.0, %v3384_v57  ;;  %v6350_v57 = vld [vmem:[#allocation26_spill] sm:$0xff] }
 0x1be   :  { %v3386_v46 = vpop.eup %3385 }
 0x1bf   :  { %v4473_v39 = vadd.f32 %v771_v41, %v770_v7  ;;  %v6349_v41 = vld [vmem:[#allocation25_spill] sm:$0xff]  ;;  %v6352_v7 = vld [vmem:[#allocation28_spill] sm:$0xff] }
 0x1c1   :  { %3387 = vtanh.f32 %v4473_v39 }
 0x1cb   :  { %v3388_v48 = vpop.eup %3387 }
 0x1cc   :  { %v774_v40 = vmul.f32 %v3388_v48, %v3386_v46  ;;  %v6353_v46 = vld [vmem:[#allocation29_spill] sm:$0xff]  ;;  %v6354_v48 = vld [vmem:[#allocation30_spill] sm:$0xff] }
 0x1ce   :  { %v775_v42 = vpack.c.bf16 %v774_v40, %v774_v40  ;;  %v6355_v40 = vld [vmem:[#allocation31_spill] sm:$0xff] }
 0x1d0   :  { %1151 = vmatmul.mubr.bf16.vlgmr.msra.gmra.mrb[20].mxu0 %v775_v42  ;;  %1192 = vmatmul.mubr.bf16.vlgmr.msra.gmra.mrb[20].mxu1 %v775_v42 }
 0x1d1   :  { %1225 = vmatpush1.bf16.msra.mxu0 %v4002_v49  ;;  %1266 = vmatpush1.bf16.msra.mxu1 %v4007_v50 }
 0x1d2   :  { %1226 = vmatprep.subr.bf16.mxu0 %v4013_v52  ;;  %1267 = vmatprep.subr.bf16.mxu1 %v4018_v53 }
 0x1d3   :  { %1256 = vmatprep.mubr.bf16.mxu0 %v6336_v1  ;;  %1297 = vmatprep.mubr.bf16.mxu1 %v6336_v1 }
 0x1d5   :  { %1227 = vmatpush1.bf16.msra.mxu0 %v4027_v55  ;;  %1268 = vmatpush1.bf16.msra.mxu1 %v4032_v56 }
 0x1d6   :  { %1228 = vmatprep.subr.bf16.mxu0 %v4042_v58  ;;  %1269 = vmatprep.subr.bf16.mxu1 %v4047_v59 }
 0x1d9   :  { %1229 = vmatpush1.bf16.msra.mxu0 %v4057_v61  ;;  %1270 = vmatpush1.bf16.msra.mxu1 %v4062_v62 }
 0x1da   :  { %1230 = vmatprep.subr.bf16.mxu0 %v4071_v63  ;;  %1271 = vmatprep.subr.bf16.mxu1 %v4076_v0 }
 0x1dd   :  { %1231 = vmatpush1.bf16.msra.mxu0 %v4085_v2  ;;  %1272 = vmatpush1.bf16.msra.mxu1 %v4090_v3 }
 0x1de   :  { %1232 = vmatprep.subr.bf16.mxu0 %v4100_v5  ;;  %1273 = vmatprep.subr.bf16.mxu1 %v4105_v6 }
 0x1e1   :  { %1233 = vmatpush1.bf16.msra.mxu0 %v4114_v9  ;;  %1274 = vmatpush1.bf16.msra.mxu1 %v4119_v10 }
 0x1e2   :  { %1234 = vmatprep.subr.bf16.mxu0 %v4129_v11  ;;  %1275 = vmatprep.subr.bf16.mxu1 %v4134_v12 }
 0x1e5   :  { %1235 = vmatpush1.bf16.msra.mxu0 %v4143_v14  ;;  %1276 = vmatpush1.bf16.msra.mxu1 %v4148_v15 }
 0x1e6   :  { %1236 = vmatprep.subr.bf16.mxu0 %v4158_v16  ;;  %1277 = vmatprep.subr.bf16.mxu1 %v4163_v17 }
 0x1e9   :  { %1237 = vmatpush1.bf16.msra.mxu0 %v4172_v19  ;;  %1278 = vmatpush1.bf16.msra.mxu1 %v4177_v20 }
 0x1ea   :  { %1238 = vmatprep.subr.bf16.mxu0 %v4187_v21  ;;  %1279 = vmatprep.subr.bf16.mxu1 %v4192_v22 }
 0x1ed   :  { %1239 = vmatpush1.bf16.msra.mxu0 %v4201_v24  ;;  %1280 = vmatpush1.bf16.msra.mxu1 %v4206_v25 }
 0x1ee   :  { %1336 = vmatprep.subr.bf16.mxu0 %v4221_v26  ;;  %1377 = vmatprep.subr.bf16.mxu1 %v4223_v27 }
 0x1f0   :  { %1257 = vmatmul.mubr.bf16.vlgmr.msra.gmra.mrb[24].mxu0 %v775_v42  ;;  %1298 = vmatmul.mubr.bf16.vlgmr.msra.gmra.mrb[24].mxu1 %v775_v42  ;;  %v6356_v42 = vld [vmem:[#allocation32_spill] sm:$0xff] }
 0x1f1   :  { %1337 = vmatpush1.bf16.msra.mxu0 %v4225_v28  ;;  %1378 = vmatpush1.bf16.msra.mxu1 %v4227_v29 }
 0x1f2   :  { %1338 = vmatprep.subr.bf16.mxu0 %v4233_v30  ;;  %1379 = vmatprep.subr.bf16.mxu1 %v4235_v31 }
 0x1f5   :  { %1339 = vmatpush1.bf16.msra.mxu0 %v4237_v32  ;;  %1380 = vmatpush1.bf16.msra.mxu1 %v4239_v33 }
 0x1f6   :  { %1340 = vmatprep.subr.bf16.mxu0 %v4245_v34  ;;  %1381 = vmatprep.subr.bf16.mxu1 %v4247_v35 }
 0x1f9   :  { %1341 = vmatpush1.bf16.msra.mxu0 %v4249_v36  ;;  %1382 = vmatpush1.bf16.msra.mxu1 %v4251_v37 }
 0x1fa   :  { %1342 = vmatprep.subr.bf16.mxu0 %v6337_v38  ;;  %1383 = vmatprep.subr.bf16.mxu1 %v6338_v51 }
 0x1fd   :  { %1343 = vmatpush1.bf16.msra.mxu0 %v6339_v60  ;;  %1384 = vmatpush1.bf16.msra.mxu1 %v6340_v4 }
 0x1fe   :  { %1344 = vmatprep.subr.bf16.mxu0 %v6341_v8  ;;  %1385 = vmatprep.subr.bf16.mxu1 %v6342_v13 }
 0x201   :  { %1345 = vmatpush1.bf16.msra.mxu0 %v6343_v18  ;;  %1386 = vmatpush1.bf16.msra.mxu1 %v6344_v23 }
 0x202   :  { %1346 = vmatprep.subr.bf16.mxu0 %v6345_v45  ;;  %1387 = vmatprep.subr.bf16.mxu1 %v6346_v47  ;;  %v6357_v47 = vld [vmem:[#allocation33_spill] sm:$0xff] }
 0x205   :  { %1347 = vmatpush1.bf16.msra.mxu0 %v6347_v43  ;;  %1388 = vmatpush1.bf16.msra.mxu1 %v6348_v54  ;;  %v6358_v43 = vld [vmem:[#allocation34_spill] sm:$0xff]  ;;  %v6359_v54 = vld [vmem:[#allocation35_spill] sm:$0xff] }
 0x206   :  { %1348 = vmatprep.subr.bf16.mxu0 %v6349_v41  ;;  %1389 = vmatprep.subr.bf16.mxu1 %v6350_v57  ;;  %v6360_v41 = vld [vmem:[#allocation36_spill] sm:$0xff]  ;;  %v6361_v57 = vld [vmem:[#allocation37_spill] sm:$0xff] }
 0x209   :  { %1349 = vmatpush1.bf16.msra.mxu0 %v6351_v44  ;;  %1390 = vmatpush1.bf16.msra.mxu1 %v6352_v7  ;;  %v6362_v44 = vld [vmem:[#allocation38_spill] sm:$0xff]  ;;  %v6363_v7 = vld [vmem:[#allocation39_spill] sm:$0xff] }
 0x20a   :  { %1350 = vmatprep.subr.bf16.mxu0 %v6353_v46  ;;  %1391 = vmatprep.subr.bf16.mxu1 %v6354_v48  ;;  %v6364_v46 = vld [vmem:[#allocation40_spill] sm:$0xff]  ;;  %v6365_v48 = vld [vmem:[#allocation41_spill] sm:$0xff] }
 0x20d   :  { %1351 = vmatpush1.bf16.msra.mxu0 %v6355_v40  ;;  %1392 = vmatpush1.bf16.msra.mxu1 %v6356_v42  ;;  %v6366_v40 = vld [vmem:[#allocation42_spill] sm:$0xff]  ;;  %v6367_v42 = vld [vmem:[#allocation43_spill] sm:$0xff] }
 0x20e   :  { %1352 = vmatprep.subr.bf16.mxu0 %v6357_v47  ;;  %1393 = vmatprep.subr.bf16.mxu1 %v6358_v43  ;;  %v6368_v47 = vld [vmem:[#allocation44_spill] sm:$0xff]  ;;  %v6369_v43 = vld [vmem:[#allocation45_spill] sm:$0xff] }
 0x211   :  { %1353 = vmatpush1.bf16.msra.mxu0 %v6359_v54  ;;  %1394 = vmatpush1.bf16.msra.mxu1 %v6360_v41  ;;  %v6370_v54 = vld [vmem:[#allocation46_spill] sm:$0xff]  ;;  %v6371_v41 = vld [vmem:[#allocation47_spill] sm:$0xff] }
 0x212   :  { %1354 = vmatprep.subr.bf16.mxu0 %v6361_v57  ;;  %1395 = vmatprep.subr.bf16.mxu1 %v6362_v44  ;;  %v6372_v57 = vld [vmem:[#allocation48_spill] sm:$0xff]  ;;  %v6373_v44 = vld [vmem:[#allocation49_spill] sm:$0xff] }
 0x215   :  { %1355 = vmatpush1.bf16.msra.mxu0 %v6363_v7  ;;  %1396 = vmatpush1.bf16.msra.mxu1 %v6364_v46  ;;  %v6374_v7 = vld [vmem:[#allocation50_spill] sm:$0xff]  ;;  %v6375_v46 = vld [vmem:[#allocation51_spill] sm:$0xff] }
 0x216   :  { %1356 = vmatprep.subr.bf16.mxu0 %v6365_v48  ;;  %1397 = vmatprep.subr.bf16.mxu1 %v6366_v40  ;;  %v6376_v48 = vld [vmem:[#allocation52_spill] sm:$0xff]  ;;  %v6377_v40 = vld [vmem:[#allocation53_spill] sm:$0xff] }
 0x219   :  { %1357 = vmatpush1.bf16.msra.mxu0 %v6367_v42  ;;  %1398 = vmatpush1.bf16.msra.mxu1 %v6368_v47  ;;  %v6378_v42 = vld [vmem:[#allocation54_spill] sm:$0xff]  ;;  %v6379_v47 = vld [vmem:[#allocation55_spill] sm:$0xff] }
 0x21a   :  { %1358 = vmatprep.subr.bf16.mxu0 %v6369_v43  ;;  %1399 = vmatprep.subr.bf16.mxu1 %v6370_v54  ;;  %v6380_v43 = vld [vmem:[#allocation56_spill] sm:$0xff]  ;;  %v6381_v54 = vld [vmem:[#allocation57_spill] sm:$0xff] }
 0x21d   :  { %1359 = vmatpush1.bf16.msra.mxu0 %v6371_v41  ;;  %1400 = vmatpush1.bf16.msra.mxu1 %v6372_v57  ;;  %v6382_v41 = vld [vmem:[#allocation58_spill] sm:$0xff]  ;;  %v6383_v57 = vld [vmem:[#allocation59_spill] sm:$0xff] }
 0x21e   :  { %1360 = vmatprep.subr.bf16.mxu0 %v6373_v44  ;;  %1401 = vmatprep.subr.bf16.mxu1 %v6374_v7  ;;  %v6384_v44 = vld [vmem:[#allocation60_spill] sm:$0xff]  ;;  %v6385_v7 = vld [vmem:[#allocation61_spill] sm:$0xff] }
 0x221   :  { %1361 = vmatpush1.bf16.msra.mxu0 %v6375_v46  ;;  %1402 = vmatpush1.bf16.msra.mxu1 %v6376_v48  ;;  %v6386_v46 = vld [vmem:[#allocation62_spill] sm:$0xff]  ;;  %v6387_v48 = vld [vmem:[#allocation63_spill] sm:$0xff] }
 0x222   :  { %1362 = vmatprep.subr.bf16.mxu0 %v6377_v40  ;;  %1403 = vmatprep.subr.bf16.mxu1 %v6378_v42  ;;  %v6388_v40 = vld [vmem:[#allocation64_spill] sm:$0xff]  ;;  %v6389_v42 = vld [vmem:[#allocation9_spill] sm:$0xff] }
 0x225   :  { %1363 = vmatpush1.bf16.msra.mxu0 %v6379_v47  ;;  %1404 = vmatpush1.bf16.msra.mxu1 %v6380_v43  ;;  %v6390_v47 = vld [vmem:[#allocation10_spill] sm:$0xff]  ;;  %v6391_v43 = vlaneseq }
 0x226   :  { %1364 = vmatprep.subr.bf16.mxu0 %v6381_v54  ;;  %1405 = vmatprep.subr.bf16.mxu1 %v6382_v41 }
 0x227   :  { %v4575_v54 = vshrl.u32 %v6391_v43, 7 }
 0x229   :  { %1365 = vmatpush1.bf16.msra.mxu0 %v6383_v57  ;;  %1406 = vmatpush1.bf16.msra.mxu1 %v6384_v44  ;;  %6392 = vst [vmem:[#allocation9_spill] sm:$0xff] %v4575_v54  ;;  %v780_v41 = vsub.s32 0, %v4575_v54  ;;  %v504_v44 = vld [vmem:[%s5951_s5] sm:$0xf] }
 0x22a   :  { %1366 = vmatprep.subr.bf16.mxu0 %v6385_v7  ;;  %1407 = vmatprep.subr.bf16.mxu1 %v6386_v46  ;;  %v784_v7 = vsub.s32 1, %v4575_v54 }
 0x22b   :  { %v4582_v46 = vrot.slane %v504_v44, %v780_v41  ;;  %v792_v41 = vsub.s32 3, %v4575_v54 }
 0x22d   :  { %1367 = vmatpush1.bf16.msra.mxu0 %v6387_v48  ;;  %1408 = vmatpush1.bf16.msra.mxu1 %v6388_v40  ;;  %6393 = vst [vmem:[#allocation10_spill] sm:$0xff] %v4582_v46  ;;  %v4584_v48 = vrot.slane %v504_v44, %v784_v7  ;;  %v4592_v38 = vrot.slane %v504_v44, %v792_v41 }
 0x22e   :  { %1442 = vmatprep.subr.bf16.mxu0 %v6389_v42  ;;  %1483 = vmatprep.subr.bf16.mxu1 %v6390_v47  ;;  %v788_v47 = vsub.s32 2, %v4575_v54 }
 0x22f   :  { %6394 = vst [vmem:[#allocation93_spill] sm:$0xff] %v4584_v48  ;;  %6396 = vst [vmem:[#allocation95_spill] sm:$0xff] %v4592_v38 }
 0x230   :  { %v4590_v7 = vrot.slane %v504_v44, %v788_v47 }
 0x232   :  { %6395 = vst [vmem:[#allocation94_spill] sm:$0xff] %v4590_v7 }
 0x2a3   :  { %v1152_v40 = vpop.f32.mrb[20].mxu0  ;;  %v1193_v57 = vpop.f32.mrb[20].mxu1 }
 0x2a4   :  { %v1153_v42 = vadd.f32 %v1152_v40, %v4582_v46  ;;  %v1154_v43 = vpop.f32.mrb[21].mxu0  ;;  %v1195_v45 = vpop.f32.mrb[21].mxu1  ;;  %v1194_v40 = vadd.f32 %v1193_v57, %v4590_v7 }
 0x2a5   :  { %v1155_v23 = vadd.f32 %v1154_v43, %v4584_v48  ;;  %v1156_v18 = vpop.f32.mrb[22].mxu0  ;;  %v1197_v13 = vpop.f32.mrb[22].mxu1  ;;  %v1196_v46 = vadd.f32 %v1195_v45, %v4592_v38  ;;  %v6397_v45 = vld [vmem:[#allocation65_spill] sm:$0xff] }
 0x2a6   :  { %v3027_v8 = vmul.f32 -1.442695, %v1153_v42  ;;  %v1157_v4 = vpop.f32.mrb[23].mxu0  ;;  %v1198_v60 = vpop.f32.mrb[23].mxu1  ;;  %v3029_v37 = vmul.f32 -1.442695, %v1194_v40 }
 0x2a7   :  { %v3028_v51 = vmul.f32 -1.442695, %v1155_v23 }
 0x2a8   :  { %3389 = vpow2.f32 %v3027_v8 }
 0x2a9   :  { %3391 = vpow2.f32 %v3028_v51 }
 0x2aa   :  { %3393 = vtanh.f32 %v1196_v46 }
 0x2ab   :  { %3395 = vpow2.f32 %v3029_v37 }
 0x2b2   :  { %v3390_v43 = vpop.eup %3389 }
 0x2b3   :  { %v1203_v18 = vadd.f32 1.0, %v3390_v43  ;;  %v3392_v13 = vpop.eup %3391  ;;  %v6398_v43 = vld [vmem:[#allocation66_spill] sm:$0xff] }
 0x2b4   :  { %v1209_v60 = vadd.f32 1.0, %v3392_v13  ;;  %v3394_v4 = vpop.eup %3393 }
 0x2b5   :  { %3397 = vrcp.f32 %v1203_v18  ;;  %v3396_v8 = vpop.eup %3395  ;;  %v6399_v18 = vld [vmem:[#allocation67_spill] sm:$0xff] }
 0x2b6   :  { %3399 = vrcp.f32 %v1209_v60  ;;  %v1215_v44 = vadd.f32 1.0, %v3396_v8  ;;  %v6400_v60 = vld [vmem:[#allocation68_spill] sm:$0xff] }
 0x2b8   :  { %3401 = vrcp.f32 %v1215_v44 }
 0x2bf   :  { %v3398_v23 = vpop.eup %3397 }
 0x2c0   :  { %v1220_v42 = vmul.f32 %v3398_v23, %v3394_v4  ;;  %v3400_v51 = vpop.eup %3399 }
 0x2c1   :  { %v1219_v47 = vmul.f32 0.0, %v3400_v51 }
 0x2c3   :  { %v1258_v41 = vpop.f32.mrb[24].mxu0  ;;  %v1299_v57 = vpop.f32.mrb[24].mxu1  ;;  %v4596_v54 = vadd.f32 %v1220_v42, %v1219_v47 }
 0x2c4   :  { %v1306_v40 = vadd.f32 %v1258_v41, %v6397_v45  ;;  %v1308_v46 = vadd.f32 %v1299_v57, %v6398_v43  ;;  %v1260_v38 = vpop.f32.mrb[25].mxu0  ;;  %v1301_v37 = vpop.f32.mrb[25].mxu1 }
 0x2c5   :  { %v1307_v13 = vadd.f32 %v1260_v38, %v6399_v18  ;;  %v1309_v7 = vadd.f32 %v1301_v37, %v6400_v60  ;;  %v1262_v48 = vpop.f32.mrb[26].mxu0  ;;  %v1303_v4 = vpop.f32.mrb[26].mxu1  ;;  %3403 = vtanh.f32 %v4596_v54 }
 0x2c6   :  { %v3030_v23 = vmul.f32 -1.442695, %v1306_v40  ;;  %v1263_v8 = vpop.f32.mrb[27].mxu0  ;;  %v1304_v51 = vpop.f32.mrb[27].mxu1  ;;  %v3032_v57 = vmul.f32 -1.442695, %v1308_v46 }
 0x2c7   :  { %v3031_v42 = vmul.f32 -1.442695, %v1307_v13  ;;  %v3402_v47 = vpop.eup %3401 }
 0x2c8   :  { %3405 = vpow2.f32 %v3030_v23 }
 0x2c9   :  { %3407 = vpow2.f32 %v3031_v42 }
 0x2ca   :  { %3409 = vtanh.f32 %v1309_v7 }
 0x2cb   :  { %3411 = vpow2.f32 %v3032_v57  ;;  %v6444_v57 = vld [vmem:[#allocation55_spill] sm:$0xff] }
 0x2cf   :  { %v3404_v41 = vpop.eup %3403 }
 0x2d0   :  { %v1223_v45 = vmul.f32 %v3404_v41, %v3402_v47  ;;  %v6443_v41 = vld [vmem:[#allocation54_spill] sm:$0xff] }
 0x2d2   :  { %v3406_v43 = vpop.eup %3405  ;;  %v1335_v38 = vpack.c.bf16 %v1223_v45, %v1223_v45  ;;  %v6445_v45 = vld [vmem:[#allocation56_spill] sm:$0xff] }
 0x2d3   :  { %v1313_v44 = vadd.f32 1.0, %v3406_v43  ;;  %v3408_v18 = vpop.eup %3407  ;;  %v6446_v43 = vld [vmem:[#allocation57_spill] sm:$0xff] }
 0x2d4   :  { %v1319_v48 = vadd.f32 1.0, %v3408_v18  ;;  %1368 = vmatprep.mubr.bf16.mxu0 %v1335_v38  ;;  %1409 = vmatprep.mubr.bf16.mxu1 %v1335_v38  ;;  %v3410_v40 = vpop.eup %3409  ;;  %v6448_v38 = vld [vmem:[#allocation59_spill] sm:$0xff]  ;;  %v6449_v18 = vld [vmem:[#allocation60_spill] sm:$0xff] }
 0x2d5   :  { %3413 = vrcp.f32 %v1313_v44  ;;  %v3412_v37 = vpop.eup %3411  ;;  %v6447_v44 = vld [vmem:[#allocation58_spill] sm:$0xff] }
 0x2d6   :  { %3415 = vrcp.f32 %v1319_v48  ;;  %v1325_v23 = vadd.f32 1.0, %v3412_v37  ;;  %v6450_v48 = vld [vmem:[#allocation61_spill] sm:$0xff]  ;;  %v6452_v37 = vld [vmem:[#allocation63_spill] sm:$0xff] }
 0x2d8   :  { %3417 = vrcp.f32 %v1325_v23 }
 0x2df   :  { %v3414_v13 = vpop.eup %3413 }
 0x2e0   :  { %v1330_v60 = vmul.f32 %v3414_v13, %v3410_v40  ;;  %v3416_v4 = vpop.eup %3415  ;;  %v6451_v40 = vld [vmem:[#allocation62_spill] sm:$0xff]  ;;  %v6453_v13 = vld [vmem:[#allocation64_spill] sm:$0xff] }
 0x2e1   :  { %v1329_v46 = vmul.f32 %v3416_v4, %v4473_v39  ;;  %v6442_v39 = vld [vmem:[#allocation53_spill] sm:$0xff]  ;;  %v4712_v4 = vld [vmem:[%s5949_s3 + $0xc] ss:$16 sps:$4 sm:$0xff]  }
 0x2e2   :  { %v3418_v7 = vpop.eup %3417  ;;  %6455 = vst [vmem:[#allocation66_spill] sm:$0xff] %v4712_v4 }
 0x2e3   :  { %v4604_v8 = vadd.f32 %v1330_v60, %v1329_v46  ;;  %v4706_v60 = vld [vmem:[%s5949_s3 + $0x4] ss:$16 sps:$4 sm:$0xff]  }
 0x2e4   :  { %6454 = vst [vmem:[#allocation65_spill] sm:$0xff] %v4706_v60 }
 0x2e5   :  { %3419 = vtanh.f32 %v4604_v8 }
 0x2ef   :  { %v3420_v51 = vpop.eup %3419 }
 0x2f0   :  { %v1333_v42 = vmul.f32 %v3420_v51, %v3418_v7  ;;  %v6456_v7 = vld [vmem:[#allocation10_spill] sm:$0xff] }
 0x2f2   :  { %v1334_v47 = vpack.c.bf16 %v1333_v42, %v1333_v42 }
 0x2f4   :  { %1369 = vmatmul.mubr.bf16.vlgmr.msra.gmra.mrb[28].mxu0 %v1334_v47  ;;  %1410 = vmatmul.mubr.bf16.vlgmr.msra.gmra.mrb[28].mxu1 %v1334_v47 }
 0x2f5   :  { %1443 = vmatpush1.bf16.msra.mxu0 %v4002_v49  ;;  %1484 = vmatpush1.bf16.msra.mxu1 %v4007_v50  ;;  %v6401_v49 = vld [vmem:[#allocation12_spill] sm:$0xff]  ;;  %v6402_v50 = vld [vmem:[#allocation13_spill] sm:$0xff] }
 0x2f6   :  { %1444 = vmatprep.subr.bf16.mxu0 %v4013_v52  ;;  %1485 = vmatprep.subr.bf16.mxu1 %v4018_v53  ;;  %v6403_v52 = vld [vmem:[#allocation14_spill] sm:$0xff]  ;;  %v6404_v53 = vld [vmem:[#allocation15_spill] sm:$0xff] }
 0x2f7   :  { %1474 = vmatprep.mubr.bf16.mxu0 %v6336_v1  ;;  %1515 = vmatprep.mubr.bf16.mxu1 %v6336_v1 }
 0x2f9   :  { %1445 = vmatpush1.bf16.msra.mxu0 %v4027_v55  ;;  %1486 = vmatpush1.bf16.msra.mxu1 %v4032_v56  ;;  %v6405_v55 = vld [vmem:[#allocation16_spill] sm:$0xff]  ;;  %v6406_v56 = vld [vmem:[#allocation17_spill] sm:$0xff] }
 0x2fa   :  { %1446 = vmatprep.subr.bf16.mxu0 %v4042_v58  ;;  %1487 = vmatprep.subr.bf16.mxu1 %v4047_v59  ;;  %v6407_v58 = vld [vmem:[#allocation18_spill] sm:$0xff]  ;;  %v6408_v59 = vld [vmem:[#allocation19_spill] sm:$0xff] }
 0x2fd   :  { %1447 = vmatpush1.bf16.msra.mxu0 %v4057_v61  ;;  %1488 = vmatpush1.bf16.msra.mxu1 %v4062_v62  ;;  %v6409_v61 = vld [vmem:[#allocation20_spill] sm:$0xff]  ;;  %v6410_v62 = vld [vmem:[#allocation21_spill] sm:$0xff] }
 0x2fe   :  { %1448 = vmatprep.subr.bf16.mxu0 %v4071_v63  ;;  %1489 = vmatprep.subr.bf16.mxu1 %v4076_v0  ;;  %v6411_v63 = vld [vmem:[#allocation22_spill] sm:$0xff]  ;;  %v6412_v0 = vld [vmem:[#allocation23_spill] sm:$0xff] }
 0x301   :  { %1449 = vmatpush1.bf16.msra.mxu0 %v4085_v2  ;;  %1490 = vmatpush1.bf16.msra.mxu1 %v4090_v3  ;;  %v6413_v2 = vld [vmem:[#allocation24_spill] sm:$0xff]  ;;  %v6414_v3 = vld [vmem:[#allocation25_spill] sm:$0xff] }
 0x302   :  { %1450 = vmatprep.subr.bf16.mxu0 %v4100_v5  ;;  %1491 = vmatprep.subr.bf16.mxu1 %v4105_v6  ;;  %v6415_v5 = vld [vmem:[#allocation26_spill] sm:$0xff]  ;;  %v6416_v6 = vld [vmem:[#allocation27_spill] sm:$0xff] }
 0x305   :  { %1451 = vmatpush1.bf16.msra.mxu0 %v4114_v9  ;;  %1492 = vmatpush1.bf16.msra.mxu1 %v4119_v10  ;;  %v6417_v9 = vld [vmem:[#allocation28_spill] sm:$0xff]  ;;  %v6418_v10 = vld [vmem:[#allocation29_spill] sm:$0xff] }
 0x306   :  { %1452 = vmatprep.subr.bf16.mxu0 %v4129_v11  ;;  %1493 = vmatprep.subr.bf16.mxu1 %v4134_v12  ;;  %v6419_v11 = vld [vmem:[#allocation30_spill] sm:$0xff]  ;;  %v6420_v12 = vld [vmem:[#allocation31_spill] sm:$0xff] }
 0x309   :  { %1453 = vmatpush1.bf16.msra.mxu0 %v4143_v14  ;;  %1494 = vmatpush1.bf16.msra.mxu1 %v4148_v15  ;;  %v6421_v14 = vld [vmem:[#allocation32_spill] sm:$0xff]  ;;  %v6422_v15 = vld [vmem:[#allocation33_spill] sm:$0xff] }
 0x30a   :  { %1454 = vmatprep.subr.bf16.mxu0 %v4158_v16  ;;  %1495 = vmatprep.subr.bf16.mxu1 %v4163_v17  ;;  %v6423_v16 = vld [vmem:[#allocation34_spill] sm:$0xff]  ;;  %v6424_v17 = vld [vmem:[#allocation35_spill] sm:$0xff] }
 0x30d   :  { %1455 = vmatpush1.bf16.msra.mxu0 %v4172_v19  ;;  %1496 = vmatpush1.bf16.msra.mxu1 %v4177_v20  ;;  %v6425_v19 = vld [vmem:[#allocation36_spill] sm:$0xff]  ;;  %v6426_v20 = vld [vmem:[#allocation37_spill] sm:$0xff] }
 0x30e   :  { %1456 = vmatprep.subr.bf16.mxu0 %v4187_v21  ;;  %1497 = vmatprep.subr.bf16.mxu1 %v4192_v22  ;;  %v6427_v21 = vld [vmem:[#allocation38_spill] sm:$0xff]  ;;  %v6428_v22 = vld [vmem:[#allocation39_spill] sm:$0xff] }
 0x311   :  { %1457 = vmatpush1.bf16.msra.mxu0 %v4201_v24  ;;  %1498 = vmatpush1.bf16.msra.mxu1 %v4206_v25  ;;  %v6429_v24 = vld [vmem:[#allocation40_spill] sm:$0xff]  ;;  %v6430_v25 = vld [vmem:[#allocation41_spill] sm:$0xff] }
 0x312   :  { %1554 = vmatprep.subr.bf16.mxu0 %v4221_v26  ;;  %1595 = vmatprep.subr.bf16.mxu1 %v4223_v27  ;;  %v6431_v26 = vld [vmem:[#allocation42_spill] sm:$0xff]  ;;  %v6432_v27 = vld [vmem:[#allocation43_spill] sm:$0xff] }
 0x314   :  { %1475 = vmatmul.mubr.bf16.vlgmr.msra.gmra.mrb[32].mxu0 %v1334_v47  ;;  %1516 = vmatmul.mubr.bf16.vlgmr.msra.gmra.mrb[32].mxu1 %v1334_v47 }
 0x315   :  { %1555 = vmatpush1.bf16.msra.mxu0 %v4225_v28  ;;  %1596 = vmatpush1.bf16.msra.mxu1 %v4227_v29  ;;  %v6433_v28 = vld [vmem:[#allocation44_spill] sm:$0xff]  ;;  %v6434_v29 = vld [vmem:[#allocation45_spill] sm:$0xff] }
 0x316   :  { %1556 = vmatprep.subr.bf16.mxu0 %v4233_v30  ;;  %1597 = vmatprep.subr.bf16.mxu1 %v4235_v31  ;;  %v6435_v30 = vld [vmem:[#allocation46_spill] sm:$0xff]  ;;  %v6436_v31 = vld [vmem:[#allocation47_spill] sm:$0xff] }
 0x319   :  { %1557 = vmatpush1.bf16.msra.mxu0 %v4237_v32  ;;  %1598 = vmatpush1.bf16.msra.mxu1 %v4239_v33  ;;  %v6437_v32 = vld [vmem:[#allocation48_spill] sm:$0xff]  ;;  %v6438_v33 = vld [vmem:[#allocation49_spill] sm:$0xff] }
 0x31a   :  { %1558 = vmatprep.subr.bf16.mxu0 %v4245_v34  ;;  %1599 = vmatprep.subr.bf16.mxu1 %v4247_v35  ;;  %v6439_v34 = vld [vmem:[#allocation50_spill] sm:$0xff]  ;;  %v6440_v35 = vld [vmem:[#allocation51_spill] sm:$0xff] }
 0x31d   :  { %1559 = vmatpush1.bf16.msra.mxu0 %v4249_v36  ;;  %1600 = vmatpush1.bf16.msra.mxu1 %v6401_v49  ;;  %v6441_v36 = vld [vmem:[#allocation52_spill] sm:$0xff]  ;;  %v6457_v49 = vld [vmem:[#allocation93_spill] sm:$0xff] }
 0x31e   :  { %1560 = vmatprep.subr.bf16.mxu0 %v6402_v50  ;;  %1601 = vmatprep.subr.bf16.mxu1 %v6403_v52 }
 0x321   :  { %1561 = vmatpush1.bf16.msra.mxu0 %v6404_v53  ;;  %1602 = vmatpush1.bf16.msra.mxu1 %v6405_v55 }
 0x322   :  { %1562 = vmatprep.subr.bf16.mxu0 %v6406_v56  ;;  %1603 = vmatprep.subr.bf16.mxu1 %v6407_v58 }
 0x325   :  { %1563 = vmatpush1.bf16.msra.mxu0 %v6408_v59  ;;  %1604 = vmatpush1.bf16.msra.mxu1 %v6409_v61  ;;  %v6458_v61 = vld [vmem:[#allocation94_spill] sm:$0xff] }
 0x326   :  { %1564 = vmatprep.subr.bf16.mxu0 %v6410_v62  ;;  %1605 = vmatprep.subr.bf16.mxu1 %v6411_v63  ;;  %v6459_v63 = vld [vmem:[#allocation95_spill] sm:$0xff] }
 0x329   :  { %1565 = vmatpush1.bf16.msra.mxu0 %v6412_v0  ;;  %1606 = vmatpush1.bf16.msra.mxu1 %v6413_v2 }
 0x32a   :  { %1566 = vmatprep.subr.bf16.mxu0 %v6414_v3  ;;  %1607 = vmatprep.subr.bf16.mxu1 %v6415_v5 }
 0x32d   :  { %1567 = vmatpush1.bf16.msra.mxu0 %v6416_v6  ;;  %1608 = vmatpush1.bf16.msra.mxu1 %v6417_v9 }
 0x32e   :  { %1568 = vmatprep.subr.bf16.mxu0 %v6418_v10  ;;  %1609 = vmatprep.subr.bf16.mxu1 %v6419_v11 }
 0x331   :  { %1569 = vmatpush1.bf16.msra.mxu0 %v6420_v12  ;;  %1610 = vmatpush1.bf16.msra.mxu1 %v6421_v14 }
 0x332   :  { %1570 = vmatprep.subr.bf16.mxu0 %v6422_v15  ;;  %1611 = vmatprep.subr.bf16.mxu1 %v6423_v16 }
 0x335   :  { %1571 = vmatpush1.bf16.msra.mxu0 %v6424_v17  ;;  %1612 = vmatpush1.bf16.msra.mxu1 %v6425_v19 }
 0x336   :  { %1572 = vmatprep.subr.bf16.mxu0 %v6426_v20  ;;  %1613 = vmatprep.subr.bf16.mxu1 %v6427_v21 }
 0x339   :  { %1573 = vmatpush1.bf16.msra.mxu0 %v6428_v22  ;;  %1614 = vmatpush1.bf16.msra.mxu1 %v6429_v24  ;;  %v6460_v22 = vld [vmem:[#allocation69_spill] sm:$0xff] }
 0x33a   :  { %1574 = vmatprep.subr.bf16.mxu0 %v6430_v25  ;;  %1615 = vmatprep.subr.bf16.mxu1 %v6431_v26  ;;  %v6461_v25 = vld [vmem:[#allocation70_spill] sm:$0xff] }
 0x33d   :  { %1575 = vmatpush1.bf16.msra.mxu0 %v6432_v27  ;;  %1616 = vmatpush1.bf16.msra.mxu1 %v6433_v28 }
 0x33e   :  { %1576 = vmatprep.subr.bf16.mxu0 %v6434_v29  ;;  %1617 = vmatprep.subr.bf16.mxu1 %v6435_v30  ;;  %v6462_v29 = vld [vmem:[#allocation71_spill] sm:$0xff] }
 0x341   :  { %1577 = vmatpush1.bf16.msra.mxu0 %v6436_v31  ;;  %1618 = vmatpush1.bf16.msra.mxu1 %v6437_v32  ;;  %v6463_v31 = vld [vmem:[#allocation72_spill] sm:$0xff] }
 0x342   :  { %1578 = vmatprep.subr.bf16.mxu0 %v6438_v33  ;;  %1619 = vmatprep.subr.bf16.mxu1 %v6439_v34 }
 0x345   :  { %1579 = vmatpush1.bf16.msra.mxu0 %v6440_v35  ;;  %1620 = vmatpush1.bf16.msra.mxu1 %v6441_v36 }
 0x346   :  { %1580 = vmatprep.subr.bf16.mxu0 %v6442_v39  ;;  %1621 = vmatprep.subr.bf16.mxu1 %v6443_v41 }
 0x349   :  { %1581 = vmatpush1.bf16.msra.mxu0 %v6444_v57  ;;  %1622 = vmatpush1.bf16.msra.mxu1 %v6445_v45 }
 0x34a   :  { %1582 = vmatprep.subr.bf16.mxu0 %v6446_v43  ;;  %1623 = vmatprep.subr.bf16.mxu1 %v6447_v44 }
 0x34d   :  { %1583 = vmatpush1.bf16.msra.mxu0 %v6448_v38  ;;  %1624 = vmatpush1.bf16.msra.mxu1 %v6449_v18 }
 0x34e   :  { %1584 = vmatprep.subr.bf16.mxu0 %v6450_v48  ;;  %1625 = vmatprep.subr.bf16.mxu1 %v6451_v40 }
 0x351   :  { %1585 = vmatpush1.bf16.msra.mxu0 %v6452_v37  ;;  %1626 = vmatpush1.bf16.msra.mxu1 %v6453_v13 }
 0x352   :  { %1660 = vmatprep.subr.bf16.mxu0 %v4706_v60  ;;  %1701 = vmatprep.subr.bf16.mxu1 %v4712_v4 }
 0x3c7   :  { %v1370_v23 = vpop.f32.mrb[28].mxu0  ;;  %v1411_v46 = vpop.f32.mrb[28].mxu1 }
 0x3c8   :  { %v1371_v51 = vadd.f32 %v1370_v23, %v6456_v7  ;;  %v1372_v42 = vpop.f32.mrb[29].mxu0  ;;  %v1413_v47 = vpop.f32.mrb[29].mxu1  ;;  %v1412_v62 = vadd.f32 %v1411_v46, %v6458_v61 }
 0x3c9   :  { %v1373_v50 = vadd.f32 %v1372_v42, %v6457_v49  ;;  %v1374_v52 = vpop.f32.mrb[30].mxu0  ;;  %v1415_v53 = vpop.f32.mrb[30].mxu1  ;;  %v1414_v0 = vadd.f32 %v1413_v47, %v6459_v63 }
 0x3ca   :  { %v3033_v55 = vmul.f32 -1.442695, %v1371_v51  ;;  %v1375_v56 = vpop.f32.mrb[31].mxu0  ;;  %v1416_v58 = vpop.f32.mrb[31].mxu1  ;;  %v3035_v2 = vmul.f32 -1.442695, %v1412_v62 }
 0x3cb   :  { %v3034_v59 = vmul.f32 -1.442695, %v1373_v50  ;;  %v4738_v58 = vld [vmem:[%s5949_s3] ss:$16 sps:$4 sm:$0xff]   ;;  %v4756_v62 = vld [vmem:[%s5949_s3 + $0x2c] ss:$16 sps:$4 sm:$0xff]  }
 0x3cc   :  { %3421 = vpow2.f32 %v3033_v55 }
 0x3cd   :  { %3423 = vpow2.f32 %v3034_v59  ;;  %v4750_v59 = vld [vmem:[%s5949_s3 + $0x24] ss:$16 sps:$4 sm:$0xff]  }
 0x3ce   :  { %3425 = vtanh.f32 %v1414_v0  ;;  %v4764_v0 = vld [vmem:[%s5949_s3 + $0x20] ss:$16 sps:$4 sm:$0xff]  }
 0x3cf   :  { %3427 = vpow2.f32 %v3035_v2  ;;  %v4770_v2 = vld [vmem:[%s5949_s3 + $0x28] ss:$16 sps:$4 sm:$0xff]  }
 0x3d6   :  { %v3422_v3 = vpop.eup %3421 }
 0x3d7   :  { %v1421_v5 = vadd.f32 1.0, %v3422_v3  ;;  %v3424_v6 = vpop.eup %3423  ;;  %v4776_v3 = vld [vmem:[%s5949_s3 + $0x44] ss:$16 sps:$4 sm:$0xff]  }
 0x3d8   :  { %v1427_v9 = vadd.f32 1.0, %v3424_v6  ;;  %v3426_v10 = vpop.eup %3425  ;;  %v4788_v6 = vld [vmem:[%s5949_s3 + $0x40] ss:$16 sps:$4 sm:$0xff]  }
 0x3d9   :  { %3429 = vrcp.f32 %v1421_v5  ;;  %v3428_v11 = vpop.eup %3427  ;;  %v4782_v5 = vld [vmem:[%s5949_s3 + $0x4c] ss:$16 sps:$4 sm:$0xff]  }
 0x3da   :  { %3431 = vrcp.f32 %v1427_v9  ;;  %v1433_v16 = vadd.f32 1.0, %v3428_v11  ;;  %v4794_v9 = vld [vmem:[%s5949_s3 + $0x48] ss:$16 sps:$4 sm:$0xff]   ;;  %v4806_v11 = vld [vmem:[%s5949_s3 + $0x6c] ss:$16 sps:$4 sm:$0xff]  }
 0x3dc   :  { %3433 = vrcp.f32 %v1433_v16  ;;  %v4830_v16 = vld [vmem:[%s5949_s3 + $0x8c] ss:$16 sps:$4 sm:$0xff]  }
 0x3e3   :  { %v3430_v12 = vpop.eup %3429 }
 0x3e4   :  { %v1438_v14 = vmul.f32 %v3430_v12, %v3426_v10  ;;  %v3432_v15 = vpop.eup %3431  ;;  %v4800_v10 = vld [vmem:[%s5949_s3 + $0x64] ss:$16 sps:$4 sm:$0xff]   ;;  %v4812_v12 = vld [vmem:[%s5949_s3 + $0x60] ss:$16 sps:$4 sm:$0xff]  }
 0x3e5   :  { %v1437_v17 = vmul.f32 %v3432_v15, %v4596_v54  ;;  %v4824_v15 = vld [vmem:[%s5949_s3 + $0x84] ss:$16 sps:$4 sm:$0xff]  }
 0x3e6   :  { %v3434_v41 = vpop.eup %3433 }
 0x3e7   :  { %v1476_v19 = vpop.f32.mrb[32].mxu0  ;;  %v1517_v20 = vpop.f32.mrb[32].mxu1  ;;  %v4720_v21 = vadd.f32 %v1438_v14, %v1437_v17  ;;  %v4818_v14 = vld [vmem:[%s5949_s3 + $0x68] ss:$16 sps:$4 sm:$0xff]   ;;  %v4836_v17 = vld [vmem:[%s5949_s3 + $0x80] ss:$16 sps:$4 sm:$0xff]  }
 0x3e8   :  { %v1524_v24 = vadd.f32 %v1476_v19, %v6460_v22  ;;  %v1526_v26 = vadd.f32 %v1517_v20, %v6461_v25  ;;  %v1478_v27 = vpop.f32.mrb[33].mxu0  ;;  %v1519_v28 = vpop.f32.mrb[33].mxu1  ;;  %v4842_v19 = vld [vmem:[%s5949_s3 + $0x88] ss:$16 sps:$4 sm:$0xff]   ;;  %v4848_v20 = vld [vmem:[%s5949_s3 + $0xa4] ss:$16 sps:$4 sm:$0xff]  }
 0x3e9   :  { %v1525_v30 = vadd.f32 %v1478_v27, %v6462_v29  ;;  %v1527_v32 = vadd.f32 %v1519_v28, %v6463_v31  ;;  %v1480_v33 = vpop.f32.mrb[34].mxu0  ;;  %v1521_v34 = vpop.f32.mrb[34].mxu1  ;;  %3435 = vtanh.f32 %v4720_v21  ;;  %v4854_v22 = vld [vmem:[%s5949_s3 + $0xac] ss:$16 sps:$4 sm:$0xff]   ;;  %v4866_v25 = vld [vmem:[%s5949_s3 + $0xa8] ss:$16 sps:$4 sm:$0xff]  }
 0x3ea   :  { %v3036_v35 = vmul.f32 -1.442695, %v1524_v24  ;;  %v1481_v36 = vpop.f32.mrb[35].mxu0  ;;  %v1522_v54 = vpop.f32.mrb[35].mxu1  ;;  %v3038_v45 = vmul.f32 -1.442695, %v1526_v26 }
 0x3eb   :  { %v3037_v39 = vmul.f32 -1.442695, %v1525_v30  ;;  %v4860_v24 = vld [vmem:[%s5949_s3 + $0xa0] ss:$16 sps:$4 sm:$0xff]   ;;  %v4872_v26 = vld [vmem:[%s5949_s3 + $0xc4] ss:$16 sps:$4 sm:$0xff]  }
 0x3ec   :  { %3437 = vpow2.f32 %v3036_v35  ;;  %v4878_v27 = vld [vmem:[%s5949_s3 + $0xcc] ss:$16 sps:$4 sm:$0xff]   ;;  %v4884_v28 = vld [vmem:[%s5949_s3 + $0xc0] ss:$16 sps:$4 sm:$0xff]   ;;  %v4890_v29 = vld [vmem:[%s5949_s3 + $0xc8] ss:$16 sps:$4 sm:$0xff]  }
 0x3ed   :  { %3439 = vpow2.f32 %v3037_v39  ;;  %v4896_v30 = vld [vmem:[%s5949_s3 + $0xe4] ss:$16 sps:$4 sm:$0xff]   ;;  %v4902_v31 = vld [vmem:[%s5949_s3 + $0xec] ss:$16 sps:$4 sm:$0xff]   ;;  %v4914_v33 = vld [vmem:[%s5949_s3 + $0xe8] ss:$16 sps:$4 sm:$0xff]  }
 0x3ee   :  { %3441 = vtanh.f32 %v1527_v32  ;;  %v4908_v32 = vld [vmem:[%s5949_s3 + $0xe0] ss:$16 sps:$4 sm:$0xff]   ;;  %v4917_v34 = vld [vmem:[#allocation5 + $0x4] ss:$16 sps:$4 sm:$0xff]   ;;  %v4928_v54 = vld [vmem:[#allocation5 + $0x8] ss:$16 sps:$4 sm:$0xff]  }
 0x3ef   :  { %3443 = vpow2.f32 %v3038_v45  ;;  %v4920_v35 = vld [vmem:[#allocation5 + $0xc] ss:$16 sps:$4 sm:$0xff]   ;;  %v4925_v36 = vld [vmem:[#allocation5] ss:$16 sps:$4 sm:$0xff]   ;;  %v4931_v39 = vld [vmem:[#allocation5 + $0x24] ss:$16 sps:$4 sm:$0xff]  }
 0x3f0   :  { %v4940_v45 = vld [vmem:[#allocation5 + $0x28] ss:$16 sps:$4 sm:$0xff]  }
 0x3f3   :  { %v3436_v57 = vpop.eup %3435 }
 0x3f4   :  { %v1441_v43 = vmul.f32 %v3436_v57, %v3434_v41  ;;  %v4934_v41 = vld [vmem:[#allocation5 + $0x2c] ss:$16 sps:$4 sm:$0xff]   ;;  %v4937_v57 = vld [vmem:[#allocation5 + $0x20] ss:$16 sps:$4 sm:$0xff]  }
 0x3f6   :  { %v3438_v44 = vpop.eup %3437  ;;  %v1553_v18 = vpack.c.bf16 %v1441_v43, %v1441_v43  ;;  %v4943_v43 = vld [vmem:[#allocation5 + $0x44] ss:$16 sps:$4 sm:$0xff]  }
 0x3f7   :  { %v1531_v38 = vadd.f32 1.0, %v3438_v44  ;;  %v3440_v48 = vpop.eup %3439  ;;  %v4946_v44 = vld [vmem:[#allocation5 + $0x4c] ss:$16 sps:$4 sm:$0xff]  }
 0x3f8   :  { %v1537_v40 = vadd.f32 1.0, %v3440_v48  ;;  %1586 = vmatprep.mubr.bf16.mxu0 %v1553_v18  ;;  %1627 = vmatprep.mubr.bf16.mxu1 %v1553_v18  ;;  %v3442_v37 = vpop.eup %3441  ;;  %v4952_v18 = vld [vmem:[#allocation5 + $0x48] ss:$16 sps:$4 sm:$0xff]   ;;  %v4955_v48 = vld [vmem:[#allocation5 + $0x64] ss:$16 sps:$4 sm:$0xff]  }
 0x3f9   :  { %3445 = vrcp.f32 %v1531_v38  ;;  %v3444_v13 = vpop.eup %3443  ;;  %v4949_v38 = vld [vmem:[#allocation5 + $0x40] ss:$16 sps:$4 sm:$0xff]   ;;  %6465 = vst [vmem:[#allocation68_spill] sm:$0xff] %v4952_v18  ;;  %6466 = vst [vmem:[#allocation12_spill] sm:$0xff] %v4955_v48 }
 0x3fa   :  { %3447 = vrcp.f32 %v1537_v40  ;;  %v1543_v42 = vadd.f32 1.0, %v3444_v13  ;;  %6464 = vst [vmem:[#allocation67_spill] sm:$0xff] %v4949_v38  ;;  %v4958_v40 = vld [vmem:[#allocation5 + $0x6c] ss:$16 sps:$4 sm:$0xff]   ;;  %v4964_v13 = vld [vmem:[#allocation5 + $0x68] ss:$16 sps:$4 sm:$0xff]  }
 0x3fb   :  { %6467 = vst [vmem:[#allocation13_spill] sm:$0xff] %v4958_v40  ;;  %6469 = vst [vmem:[#allocation15_spill] sm:$0xff] %v4964_v13 }
 0x3fc   :  { %3449 = vrcp.f32 %v1543_v42  ;;  %v4976_v42 = vld [vmem:[#allocation5 + $0x88] ss:$16 sps:$4 sm:$0xff]  }
 0x3fd   :  { %6473 = vst [vmem:[#allocation19_spill] sm:$0xff] %v4976_v42 }
 0x403   :  { %v3446_v23 = vpop.eup %3445 }
 0x404   :  { %v1548_v46 = vmul.f32 %v3446_v23, %v3442_v37  ;;  %v3448_v51 = vpop.eup %3447  ;;  %v4961_v37 = vld [vmem:[#allocation5 + $0x60] ss:$16 sps:$4 sm:$0xff]   ;;  %v4967_v23 = vld [vmem:[#allocation5 + $0x84] ss:$16 sps:$4 sm:$0xff]  }
 0x405   :  { %v1547_v47 = vmul.f32 %v3448_v51, %v4604_v8  ;;  %v4744_v8 = vld [vmem:[%s5949_s3 + $0x8] ss:$16 sps:$4 sm:$0xff]   ;;  %6468 = vst [vmem:[#allocation14_spill] sm:$0xff] %v4961_v37  ;;  %6470 = vst [vmem:[#allocation16_spill] sm:$0xff] %v4967_v23  ;;  %v4973_v51 = vld [vmem:[#allocation5 + $0x80] ss:$16 sps:$4 sm:$0xff]  }
 0x406   :  { %v3450_v52 = vpop.eup %3449  ;;  %6472 = vst [vmem:[#allocation18_spill] sm:$0xff] %v4973_v51 }
 0x407   :  { %v4728_v50 = vadd.f32 %v1548_v46, %v1547_v47  ;;  %v4970_v46 = vld [vmem:[#allocation5 + $0x8c] ss:$16 sps:$4 sm:$0xff]   ;;  %v4979_v47 = vld [vmem:[#allocation5 + $0xa4] ss:$16 sps:$4 sm:$0xff]  }
 0x408   :  { %6471 = vst [vmem:[#allocation17_spill] sm:$0xff] %v4970_v46  ;;  %6474 = vst [vmem:[#allocation20_spill] sm:$0xff] %v4979_v47 }
 0x409   :  { %3451 = vtanh.f32 %v4728_v50 }
 0x413   :  { %v3452_v53 = vpop.eup %3451 }
 0x414   :  { %v1551_v55 = vmul.f32 %v3452_v53, %v3450_v52  ;;  %v4982_v52 = vld [vmem:[#allocation5 + $0xac] ss:$16 sps:$4 sm:$0xff]   ;;  %v4985_v53 = vld [vmem:[#allocation5 + $0xa0] ss:$16 sps:$4 sm:$0xff]  }
 0x415   :  { %6475 = vst [vmem:[#allocation21_spill] sm:$0xff] %v4982_v52  ;;  %6476 = vst [vmem:[#allocation22_spill] sm:$0xff] %v4985_v53 }
 0x416   :  { %v4731_v56 = vpack.c.bf16 %v1551_v55, %v1551_v55  ;;  %v4988_v55 = vld [vmem:[#allocation5 + $0xa8] ss:$16 sps:$4 sm:$0xff]  }
 0x417   :  { %6477 = vst [vmem:[#allocation23_spill] sm:$0xff] %v4988_v55 }
 0x418   :  { %1587 = vmatmul.mubr.bf16.vlgmr.msra.gmra.mrb[36].mxu0 %v4731_v56  ;;  %1628 = vmatmul.mubr.bf16.vlgmr.msra.gmra.mrb[36].mxu1 %v4731_v56 }
 0x419   :  { %1661 = vmatpush1.bf16.msra.mxu0 %v4738_v58  ;;  %1702 = vmatpush1.bf16.msra.mxu1 %v4744_v8 }
 0x41a   :  { %1662 = vmatprep.subr.bf16.mxu0 %v4750_v59  ;;  %1703 = vmatprep.subr.bf16.mxu1 %v4756_v62 }
 0x41b   :  { %1692 = vmatprep.mubr.bf16.mxu0 %v6336_v1  ;;  %1733 = vmatprep.mubr.bf16.mxu1 %v6336_v1 }
 0x41d   :  { %1663 = vmatpush1.bf16.msra.mxu0 %v4764_v0  ;;  %1704 = vmatpush1.bf16.msra.mxu1 %v4770_v2 }
 0x41e   :  { %1664 = vmatprep.subr.bf16.mxu0 %v4776_v3  ;;  %1705 = vmatprep.subr.bf16.mxu1 %v4782_v5 }
 0x421   :  { %1665 = vmatpush1.bf16.msra.mxu0 %v4788_v6  ;;  %1706 = vmatpush1.bf16.msra.mxu1 %v4794_v9 }
 0x422   :  { %1666 = vmatprep.subr.bf16.mxu0 %v4800_v10  ;;  %1707 = vmatprep.subr.bf16.mxu1 %v4806_v11 }
 0x425   :  { %1667 = vmatpush1.bf16.msra.mxu0 %v4812_v12  ;;  %1708 = vmatpush1.bf16.msra.mxu1 %v4818_v14 }
 0x426   :  { %1668 = vmatprep.subr.bf16.mxu0 %v4824_v15  ;;  %1709 = vmatprep.subr.bf16.mxu1 %v4830_v16 }
 0x429   :  { %1669 = vmatpush1.bf16.msra.mxu0 %v4836_v17  ;;  %1710 = vmatpush1.bf16.msra.mxu1 %v4842_v19 }
 0x42a   :  { %1670 = vmatprep.subr.bf16.mxu0 %v4848_v20  ;;  %1711 = vmatprep.subr.bf16.mxu1 %v4854_v22 }
 0x42d   :  { %1671 = vmatpush1.bf16.msra.mxu0 %v4860_v24  ;;  %1712 = vmatpush1.bf16.msra.mxu1 %v4866_v25 }
 0x42e   :  { %1672 = vmatprep.subr.bf16.mxu0 %v4872_v26  ;;  %1713 = vmatprep.subr.bf16.mxu1 %v4878_v27 }
 0x431   :  { %1673 = vmatpush1.bf16.msra.mxu0 %v4884_v28  ;;  %1714 = vmatpush1.bf16.msra.mxu1 %v4890_v29 }
 0x432   :  { %1674 = vmatprep.subr.bf16.mxu0 %v4896_v30  ;;  %1715 = vmatprep.subr.bf16.mxu1 %v4902_v31 }
 0x435   :  { %1675 = vmatpush1.bf16.msra.mxu0 %v4908_v32  ;;  %1716 = vmatpush1.bf16.msra.mxu1 %v4914_v33 }
 0x436   :  { %1772 = vmatprep.subr.bf16.mxu0 %v4917_v34  ;;  %1813 = vmatprep.subr.bf16.mxu1 %v4920_v35 }
 0x438   :  { %1693 = vmatmul.mubr.bf16.vlgmr.msra.gmra.mrb[40].mxu0 %v4731_v56  ;;  %1734 = vmatmul.mubr.bf16.vlgmr.msra.gmra.mrb[40].mxu1 %v4731_v56  ;;  %v4991_v56 = vld [vmem:[#allocation5 + $0xc4] ss:$16 sps:$4 sm:$0xff]  }
 0x439   :  { %1773 = vmatpush1.bf16.msra.mxu0 %v4925_v36  ;;  %1814 = vmatpush1.bf16.msra.mxu1 %v4928_v54  ;;  %6478 = vst [vmem:[#allocation24_spill] sm:$0xff] %v4991_v56 }
 0x43a   :  { %1774 = vmatprep.subr.bf16.mxu0 %v4931_v39  ;;  %1815 = vmatprep.subr.bf16.mxu1 %v4934_v41 }
 0x43d   :  { %1775 = vmatpush1.bf16.msra.mxu0 %v4937_v57  ;;  %1816 = vmatpush1.bf16.msra.mxu1 %v4940_v45 }
 0x43e   :  { %1776 = vmatprep.subr.bf16.mxu0 %v4943_v43  ;;  %1817 = vmatprep.subr.bf16.mxu1 %v4946_v44 }
 0x441   :  { %1777 = vmatpush1.bf16.msra.mxu0 %v4949_v38  ;;  %1818 = vmatpush1.bf16.msra.mxu1 %v4952_v18 }
 0x442   :  { %1778 = vmatprep.subr.bf16.mxu0 %v4955_v48  ;;  %1819 = vmatprep.subr.bf16.mxu1 %v4958_v40 }
 0x445   :  { %1779 = vmatpush1.bf16.msra.mxu0 %v4961_v37  ;;  %1820 = vmatpush1.bf16.msra.mxu1 %v4964_v13 }
 0x446   :  { %1780 = vmatprep.subr.bf16.mxu0 %v4967_v23  ;;  %1821 = vmatprep.subr.bf16.mxu1 %v4970_v46 }
 0x449   :  { %1781 = vmatpush1.bf16.msra.mxu0 %v4973_v51  ;;  %1822 = vmatpush1.bf16.msra.mxu1 %v4976_v42  ;;  %v4994_v42 = vld [vmem:[#allocation5 + $0xcc] ss:$16 sps:$4 sm:$0xff]  }
 0x44a   :  { %1782 = vmatprep.subr.bf16.mxu0 %v4979_v47  ;;  %1823 = vmatprep.subr.bf16.mxu1 %v4982_v52  ;;  %6479 = vst [vmem:[#allocation25_spill] sm:$0xff] %v4994_v42  ;;  %v4997_v47 = vld [vmem:[#allocation5 + $0xc0] ss:$16 sps:$4 sm:$0xff]   ;;  %v5000_v52 = vld [vmem:[#allocation5 + $0xc8] ss:$16 sps:$4 sm:$0xff]  }
 0x44b   :  { %6480 = vst [vmem:[#allocation26_spill] sm:$0xff] %v4997_v47  ;;  %6481 = vst [vmem:[#allocation27_spill] sm:$0xff] %v5000_v52 }
 0x44d   :  { %1783 = vmatpush1.bf16.msra.mxu0 %v4985_v53  ;;  %1824 = vmatpush1.bf16.msra.mxu1 %v4988_v55  ;;  %v5003_v53 = vld [vmem:[#allocation5 + $0xe4] ss:$16 sps:$4 sm:$0xff]   ;;  %v5006_v55 = vld [vmem:[#allocation5 + $0xec] ss:$16 sps:$4 sm:$0xff]  }
 0x44e   :  { %1784 = vmatprep.subr.bf16.mxu0 %v4991_v56  ;;  %1825 = vmatprep.subr.bf16.mxu1 %v4994_v42  ;;  %6482 = vst [vmem:[#allocation28_spill] sm:$0xff] %v5003_v53  ;;  %6483 = vst [vmem:[#allocation29_spill] sm:$0xff] %v5006_v55  ;;  %v5009_v56 = vld [vmem:[#allocation5 + $0xe0] ss:$16 sps:$4 sm:$0xff]   ;;  %v5012_v42 = vld [vmem:[#allocation5 + $0xe8] ss:$16 sps:$4 sm:$0xff]  }
 0x44f   :  { %6484 = vst [vmem:[#allocation30_spill] sm:$0xff] %v5009_v56  ;;  %6485 = vst [vmem:[#allocation31_spill] sm:$0xff] %v5012_v42 }
 0x451   :  { %1785 = vmatpush1.bf16.msra.mxu0 %v4997_v47  ;;  %1826 = vmatpush1.bf16.msra.mxu1 %v5000_v52  ;;  %v5015_v47 = vld [vmem:[#allocation5 + $0x104] ss:$16 sps:$4 sm:$0xff]   ;;  %v5018_v52 = vld [vmem:[#allocation5 + $0x10c] ss:$16 sps:$4 sm:$0xff]  }
 0x452   :  { %1786 = vmatprep.subr.bf16.mxu0 %v5003_v53  ;;  %1827 = vmatprep.subr.bf16.mxu1 %v5006_v55  ;;  %6486 = vst [vmem:[#allocation32_spill] sm:$0xff] %v5015_v47  ;;  %6487 = vst [vmem:[#allocation33_spill] sm:$0xff] %v5018_v52  ;;  %v5021_v53 = vld [vmem:[#allocation5 + $0x100] ss:$16 sps:$4 sm:$0xff]   ;;  %v5024_v55 = vld [vmem:[#allocation5 + $0x108] ss:$16 sps:$4 sm:$0xff]  }
 0x453   :  { %6488 = vst [vmem:[#allocation34_spill] sm:$0xff] %v5021_v53  ;;  %6489 = vst [vmem:[#allocation35_spill] sm:$0xff] %v5024_v55 }
 0x455   :  { %1787 = vmatpush1.bf16.msra.mxu0 %v5009_v56  ;;  %1828 = vmatpush1.bf16.msra.mxu1 %v5012_v42  ;;  %v5027_v56 = vld [vmem:[#allocation5 + $0x124] ss:$16 sps:$4 sm:$0xff]   ;;  %v5030_v42 = vld [vmem:[#allocation5 + $0x12c] ss:$16 sps:$4 sm:$0xff]  }
 0x456   :  { %1788 = vmatprep.subr.bf16.mxu0 %v5015_v47  ;;  %1829 = vmatprep.subr.bf16.mxu1 %v5018_v52  ;;  %6490 = vst [vmem:[#allocation36_spill] sm:$0xff] %v5027_v56  ;;  %6491 = vst [vmem:[#allocation37_spill] sm:$0xff] %v5030_v42  ;;  %v5033_v47 = vld [vmem:[#allocation5 + $0x120] ss:$16 sps:$4 sm:$0xff]   ;;  %v5036_v52 = vld [vmem:[#allocation5 + $0x128] ss:$16 sps:$4 sm:$0xff]  }
 0x457   :  { %6492 = vst [vmem:[#allocation38_spill] sm:$0xff] %v5033_v47  ;;  %6493 = vst [vmem:[#allocation39_spill] sm:$0xff] %v5036_v52 }
 0x459   :  { %1789 = vmatpush1.bf16.msra.mxu0 %v5021_v53  ;;  %1830 = vmatpush1.bf16.msra.mxu1 %v5024_v55  ;;  %v5039_v53 = vld [vmem:[#allocation5 + $0x144] ss:$16 sps:$4 sm:$0xff]   ;;  %v5042_v55 = vld [vmem:[#allocation5 + $0x14c] ss:$16 sps:$4 sm:$0xff]  }
 0x45a   :  { %1790 = vmatprep.subr.bf16.mxu0 %v5027_v56  ;;  %1831 = vmatprep.subr.bf16.mxu1 %v5030_v42  ;;  %6494 = vst [vmem:[#allocation40_spill] sm:$0xff] %v5039_v53  ;;  %6495 = vst [vmem:[#allocation41_spill] sm:$0xff] %v5042_v55  ;;  %v5045_v56 = vld [vmem:[#allocation5 + $0x140] ss:$16 sps:$4 sm:$0xff]   ;;  %v5048_v42 = vld [vmem:[#allocation5 + $0x148] ss:$16 sps:$4 sm:$0xff]  }
 0x45b   :  { %6496 = vst [vmem:[#allocation42_spill] sm:$0xff] %v5045_v56  ;;  %6497 = vst [vmem:[#allocation43_spill] sm:$0xff] %v5048_v42 }
 0x45d   :  { %1791 = vmatpush1.bf16.msra.mxu0 %v5033_v47  ;;  %1832 = vmatpush1.bf16.msra.mxu1 %v5036_v52  ;;  %v5051_v47 = vld [vmem:[#allocation5 + $0x164] ss:$16 sps:$4 sm:$0xff]   ;;  %v5054_v52 = vld [vmem:[#allocation5 + $0x16c] ss:$16 sps:$4 sm:$0xff]  }
 0x45e   :  { %1792 = vmatprep.subr.bf16.mxu0 %v5039_v53  ;;  %1833 = vmatprep.subr.bf16.mxu1 %v5042_v55  ;;  %6498 = vst [vmem:[#allocation44_spill] sm:$0xff] %v5051_v47  ;;  %6499 = vst [vmem:[#allocation45_spill] sm:$0xff] %v5054_v52  ;;  %v5057_v53 = vld [vmem:[#allocation5 + $0x160] ss:$16 sps:$4 sm:$0xff]   ;;  %v5060_v55 = vld [vmem:[#allocation5 + $0x168] ss:$16 sps:$4 sm:$0xff]  }
 0x45f   :  { %6500 = vst [vmem:[#allocation46_spill] sm:$0xff] %v5057_v53  ;;  %6501 = vst [vmem:[#allocation47_spill] sm:$0xff] %v5060_v55 }
 0x461   :  { %1793 = vmatpush1.bf16.msra.mxu0 %v5045_v56  ;;  %1834 = vmatpush1.bf16.msra.mxu1 %v5048_v42  ;;  %v5063_v56 = vld [vmem:[#allocation5 + $0x184] ss:$16 sps:$4 sm:$0xff]   ;;  %v5066_v42 = vld [vmem:[#allocation5 + $0x18c] ss:$16 sps:$4 sm:$0xff]  }
 0x462   :  { %1794 = vmatprep.subr.bf16.mxu0 %v5051_v47  ;;  %1835 = vmatprep.subr.bf16.mxu1 %v5054_v52  ;;  %6502 = vst [vmem:[#allocation48_spill] sm:$0xff] %v5063_v56  ;;  %6503 = vst [vmem:[#allocation49_spill] sm:$0xff] %v5066_v42  ;;  %v5069_v47 = vld [vmem:[#allocation5 + $0x180] ss:$16 sps:$4 sm:$0xff]   ;;  %v5072_v52 = vld [vmem:[#allocation5 + $0x188] ss:$16 sps:$4 sm:$0xff]  }
 0x463   :  { %6504 = vst [vmem:[#allocation50_spill] sm:$0xff] %v5069_v47  ;;  %6505 = vst [vmem:[#allocation51_spill] sm:$0xff] %v5072_v52 }
 0x465   :  { %1795 = vmatpush1.bf16.msra.mxu0 %v5057_v53  ;;  %1836 = vmatpush1.bf16.msra.mxu1 %v5060_v55  ;;  %v5075_v53 = vld [vmem:[#allocation5 + $0x1a4] ss:$16 sps:$4 sm:$0xff]   ;;  %v5078_v55 = vld [vmem:[#allocation5 + $0x1ac] ss:$16 sps:$4 sm:$0xff]  }
 0x466   :  { %1796 = vmatprep.subr.bf16.mxu0 %v5063_v56  ;;  %1837 = vmatprep.subr.bf16.mxu1 %v5066_v42  ;;  %6506 = vst [vmem:[#allocation52_spill] sm:$0xff] %v5075_v53  ;;  %6507 = vst [vmem:[#allocation53_spill] sm:$0xff] %v5078_v55  ;;  %v5081_v56 = vld [vmem:[#allocation5 + $0x1a0] ss:$16 sps:$4 sm:$0xff]   ;;  %v5084_v42 = vld [vmem:[#allocation5 + $0x1a8] ss:$16 sps:$4 sm:$0xff]  }
 0x467   :  { %6508 = vst [vmem:[#allocation54_spill] sm:$0xff] %v5081_v56  ;;  %6509 = vst [vmem:[#allocation55_spill] sm:$0xff] %v5084_v42 }
 0x469   :  { %1797 = vmatpush1.bf16.msra.mxu0 %v5069_v47  ;;  %1838 = vmatpush1.bf16.msra.mxu1 %v5072_v52  ;;  %v5087_v47 = vld [vmem:[#allocation5 + $0x1c4] ss:$16 sps:$4 sm:$0xff]   ;;  %v5090_v52 = vld [vmem:[#allocation5 + $0x1cc] ss:$16 sps:$4 sm:$0xff]  }
 0x46a   :  { %1798 = vmatprep.subr.bf16.mxu0 %v5075_v53  ;;  %1839 = vmatprep.subr.bf16.mxu1 %v5078_v55  ;;  %6510 = vst [vmem:[#allocation56_spill] sm:$0xff] %v5087_v47  ;;  %6511 = vst [vmem:[#allocation57_spill] sm:$0xff] %v5090_v52  ;;  %v5093_v53 = vld [vmem:[#allocation5 + $0x1c0] ss:$16 sps:$4 sm:$0xff]   ;;  %v5096_v55 = vld [vmem:[#allocation5 + $0x1c8] ss:$16 sps:$4 sm:$0xff]  }
 0x46b   :  { %6512 = vst [vmem:[#allocation58_spill] sm:$0xff] %v5093_v53  ;;  %6513 = vst [vmem:[#allocation59_spill] sm:$0xff] %v5096_v55 }
 0x46d   :  { %1799 = vmatpush1.bf16.msra.mxu0 %v5081_v56  ;;  %1840 = vmatpush1.bf16.msra.mxu1 %v5084_v42  ;;  %v5099_v56 = vld [vmem:[#allocation5 + $0x1e4] ss:$16 sps:$4 sm:$0xff]   ;;  %v5102_v42 = vld [vmem:[#allocation5 + $0x1ec] ss:$16 sps:$4 sm:$0xff]  }
 0x46e   :  { %1800 = vmatprep.subr.bf16.mxu0 %v5087_v47  ;;  %1841 = vmatprep.subr.bf16.mxu1 %v5090_v52  ;;  %6514 = vst [vmem:[#allocation60_spill] sm:$0xff] %v5099_v56  ;;  %6515 = vst [vmem:[#allocation61_spill] sm:$0xff] %v5102_v42  ;;  %v5105_v47 = vld [vmem:[#allocation5 + $0x1e0] ss:$16 sps:$4 sm:$0xff]   ;;  %v5108_v52 = vld [vmem:[#allocation5 + $0x1e8] ss:$16 sps:$4 sm:$0xff]  }
 0x46f   :  { %6516 = vst [vmem:[#allocation62_spill] sm:$0xff] %v5105_v47  ;;  %6517 = vst [vmem:[#allocation63_spill] sm:$0xff] %v5108_v52 }
 0x471   :  { %1801 = vmatpush1.bf16.msra.mxu0 %v5093_v53  ;;  %1842 = vmatpush1.bf16.msra.mxu1 %v5096_v55 }
 0x472   :  { %1802 = vmatprep.subr.bf16.mxu0 %v5099_v56  ;;  %1843 = vmatprep.subr.bf16.mxu1 %v5102_v42 }
 0x475   :  { %1803 = vmatpush1.bf16.msra.mxu0 %v5105_v47  ;;  %1844 = vmatpush1.bf16.msra.mxu1 %v5108_v52 }
 0x476   :  { %1878 = vmatprep.subr.bf16.mxu0 %v4706_v60  ;;  %1919 = vmatprep.subr.bf16.mxu1 %v4712_v4 }
 0x4eb   :  { %v1588_v55 = vpop.f32.mrb[36].mxu0  ;;  %v1629_v53 = vpop.f32.mrb[36].mxu1 }
 0x4ec   :  { %v1589_v56 = vadd.f32 %v1588_v55, %v6456_v7  ;;  %v1590_v51 = vpop.f32.mrb[37].mxu0  ;;  %v1631_v46 = vpop.f32.mrb[37].mxu1  ;;  %v1630_v60 = vadd.f32 %v1629_v53, %v6458_v61  ;;  %v6521_v61 = vld [vmem:[#allocation76_spill] sm:$0xff] }
 0x4ed   :  { %v1591_v42 = vadd.f32 %v1590_v51, %v6457_v49  ;;  %v1592_v23 = vpop.f32.mrb[38].mxu0  ;;  %v1633_v13 = vpop.f32.mrb[38].mxu1  ;;  %v1632_v4 = vadd.f32 %v1631_v46, %v6459_v63 }
 0x4ee   :  { %v3039_v37 = vmul.f32 -1.442695, %v1589_v56  ;;  %v1593_v47 = vpop.f32.mrb[39].mxu0  ;;  %v1634_v40 = vpop.f32.mrb[39].mxu1  ;;  %v3041_v52 = vmul.f32 -1.442695, %v1630_v60 }
 0x4ef   :  { %v3040_v48 = vmul.f32 -1.442695, %v1591_v42  ;;  %v6518_v60 = vld [vmem:[#allocation73_spill] sm:$0xff] }
 0x4f0   :  { %3453 = vpow2.f32 %v3039_v37 }
 0x4f1   :  { %3455 = vpow2.f32 %v3040_v48 }
 0x4f2   :  { %3457 = vtanh.f32 %v1632_v4  ;;  %v6519_v4 = vld [vmem:[#allocation74_spill] sm:$0xff] }
 0x4f3   :  { %3459 = vpow2.f32 %v3041_v52 }
 0x4fa   :  { %v3454_v18 = vpop.eup %3453 }
 0x4fb   :  { %v1639_v38 = vadd.f32 1.0, %v3454_v18  ;;  %v3456_v55 = vpop.eup %3455 }
 0x4fc   :  { %v1645_v51 = vadd.f32 1.0, %v3456_v55  ;;  %v3458_v13 = vpop.eup %3457  ;;  %v6520_v55 = vld [vmem:[#allocation75_spill] sm:$0xff] }
 0x4fd   :  { %3461 = vrcp.f32 %v1639_v38  ;;  %v3460_v23 = vpop.eup %3459 }
 0x4fe   :  { %3463 = vrcp.f32 %v1645_v51  ;;  %v1651_v37 = vadd.f32 1.0, %v3460_v23 }
 0x500   :  { %3465 = vrcp.f32 %v1651_v37 }
 0x507   :  { %v3462_v47 = vpop.eup %3461 }
 0x508   :  { %v1656_v40 = vmul.f32 %v3462_v47, %v3458_v13  ;;  %v3464_v42 = vpop.eup %3463 }
 0x509   :  { %v1655_v48 = vmul.f32 %v3464_v42, %v4720_v21 }
 0x50a   :  { %v3466_v42 = vpop.eup %3465 }
 0x50b   :  { %v1694_v53 = vpop.f32.mrb[40].mxu0  ;;  %v1735_v56 = vpop.f32.mrb[40].mxu1  ;;  %v5118_v46 = vadd.f32 %v1656_v40, %v1655_v48 }
 0x50c   :  { %v1742_v18 = vadd.f32 %v1694_v53, %v6518_v60  ;;  %v1744_v63 = vadd.f32 %v1735_v56, %v6519_v4  ;;  %v1696_v52 = vpop.f32.mrb[41].mxu0  ;;  %v1737_v38 = vpop.f32.mrb[41].mxu1 }
 0x50d   :  { %v1743_v51 = vadd.f32 %v1696_v52, %v6520_v55  ;;  %v1745_v49 = vadd.f32 %v1737_v38, %v6521_v61  ;;  %v1698_v13 = vpop.f32.mrb[42].mxu0  ;;  %v1739_v47 = vpop.f32.mrb[42].mxu1  ;;  %3467 = vtanh.f32 %v5118_v46 }
 0x50e   :  { %v3042_v23 = vmul.f32 -1.442695, %v1742_v18  ;;  %v1699_v7 = vpop.f32.mrb[43].mxu0  ;;  %v1740_v21 = vpop.f32.mrb[43].mxu1  ;;  %v3044_v53 = vmul.f32 -1.442695, %v1744_v63 }
 0x50f   :  { %v3043_v40 = vmul.f32 -1.442695, %v1743_v51 }
 0x510   :  { %3469 = vpow2.f32 %v3042_v23 }
 0x511   :  { %3471 = vpow2.f32 %v3043_v40 }
 0x512   :  { %3473 = vtanh.f32 %v1745_v49 }
 0x513   :  { %3475 = vpow2.f32 %v3044_v53  ;;  %v6525_v53 = vld [vmem:[#allocation13_spill] sm:$0xff] }
 0x517   :  { %v3468_v48 = vpop.eup %3467 }
 0x518   :  { %v1659_v56 = vmul.f32 %v3468_v48, %v3466_v42  ;;  %v6523_v42 = vld [vmem:[#allocation68_spill] sm:$0xff] }
 0x519   :  { %v6524_v48 = vld [vmem:[#allocation12_spill] sm:$0xff] }
 0x51a   :  { %v3470_v60 = vpop.eup %3469  ;;  %v1771_v4 = vpack.c.bf16 %v1659_v56, %v1659_v56  ;;  %v6526_v56 = vld [vmem:[#allocation14_spill] sm:$0xff] }
 0x51b   :  { %v1749_v37 = vadd.f32 1.0, %v3470_v60  ;;  %v3472_v52 = vpop.eup %3471  ;;  %v6527_v60 = vld [vmem:[#allocation15_spill] sm:$0xff] }
 0x51c   :  { %v1755_v61 = vadd.f32 1.0, %v3472_v52  ;;  %1804 = vmatprep.mubr.bf16.mxu0 %v1771_v4  ;;  %1845 = vmatprep.mubr.bf16.mxu1 %v1771_v4  ;;  %v3474_v7 = vpop.eup %3473  ;;  %v6529_v4 = vld [vmem:[#allocation17_spill] sm:$0xff]  ;;  %v6530_v52 = vld [vmem:[#allocation18_spill] sm:$0xff] }
 0x51d   :  { %3477 = vrcp.f32 %v1749_v37  ;;  %v3476_v18 = vpop.eup %3475  ;;  %v6528_v37 = vld [vmem:[#allocation16_spill] sm:$0xff] }
 0x51e   :  { %3479 = vrcp.f32 %v1755_v61  ;;  %v1761_v13 = vadd.f32 1.0, %v3476_v18  ;;  %v6531_v61 = vld [vmem:[#allocation19_spill] sm:$0xff]  ;;  %v6533_v18 = vld [vmem:[#allocation21_spill] sm:$0xff] }
 0x520   :  { %3481 = vrcp.f32 %v1761_v13  ;;  %v6537_v13 = vld [vmem:[#allocation25_spill] sm:$0xff] }
 0x527   :  { %v3478_v38 = vpop.eup %3477 }
 0x528   :  { %v1766_v55 = vmul.f32 %v3478_v38, %v3474_v7  ;;  %v3480_v51 = vpop.eup %3479  ;;  %v6532_v7 = vld [vmem:[#allocation20_spill] sm:$0xff]  ;;  %v6534_v38 = vld [vmem:[#allocation22_spill] sm:$0xff] }
 0x529   :  { %v1765_v63 = vmul.f32 %v3480_v51, %v4728_v50  ;;  %v6522_v50 = vld [vmem:[#allocation67_spill] sm:$0xff]  ;;  %v6536_v51 = vld [vmem:[#allocation24_spill] sm:$0xff] }
 0x52a   :  { %v3482_v49 = vpop.eup %3481 }
 0x52b   :  { %v5126_v47 = vadd.f32 %v1766_v55, %v1765_v63  ;;  %v6535_v55 = vld [vmem:[#allocation23_spill] sm:$0xff]  ;;  %v6538_v63 = vld [vmem:[#allocation26_spill] sm:$0xff] }
 0x52d   :  { %3483 = vtanh.f32 %v5126_v47 }
 0x537   :  { %v3484_v23 = vpop.eup %3483 }
 0x538   :  { %v1769_v21 = vmul.f32 %v3484_v23, %v3482_v49  ;;  %v6539_v49 = vld [vmem:[#allocation27_spill] sm:$0xff]  ;;  %v6540_v23 = vld [vmem:[#allocation28_spill] sm:$0xff] }
 0x53a   :  { %v1770_v40 = vpack.c.bf16 %v1769_v21, %v1769_v21  ;;  %v6541_v21 = vld [vmem:[#allocation29_spill] sm:$0xff] }
 0x53c   :  { %1805 = vmatmul.mubr.bf16.vlgmr.msra.gmra.mrb[44].mxu0 %v1770_v40  ;;  %1846 = vmatmul.mubr.bf16.vlgmr.msra.gmra.mrb[44].mxu1 %v1770_v40 }
 0x53d   :  { %1879 = vmatpush1.bf16.msra.mxu0 %v4738_v58  ;;  %1920 = vmatpush1.bf16.msra.mxu1 %v4744_v8 }
 0x53e   :  { %1880 = vmatprep.subr.bf16.mxu0 %v4750_v59  ;;  %1921 = vmatprep.subr.bf16.mxu1 %v4756_v62 }
 0x53f   :  { %1910 = vmatprep.mubr.bf16.mxu0 %v6336_v1  ;;  %1951 = vmatprep.mubr.bf16.mxu1 %v6336_v1 }
 0x541   :  { %1881 = vmatpush1.bf16.msra.mxu0 %v4764_v0  ;;  %1922 = vmatpush1.bf16.msra.mxu1 %v4770_v2 }
 0x542   :  { %1882 = vmatprep.subr.bf16.mxu0 %v4776_v3  ;;  %1923 = vmatprep.subr.bf16.mxu1 %v4782_v5 }
 0x545   :  { %1883 = vmatpush1.bf16.msra.mxu0 %v4788_v6  ;;  %1924 = vmatpush1.bf16.msra.mxu1 %v4794_v9 }
 0x546   :  { %1884 = vmatprep.subr.bf16.mxu0 %v4800_v10  ;;  %1925 = vmatprep.subr.bf16.mxu1 %v4806_v11 }
 0x549   :  { %1885 = vmatpush1.bf16.msra.mxu0 %v4812_v12  ;;  %1926 = vmatpush1.bf16.msra.mxu1 %v4818_v14 }
 0x54a   :  { %1886 = vmatprep.subr.bf16.mxu0 %v4824_v15  ;;  %1927 = vmatprep.subr.bf16.mxu1 %v4830_v16 }
 0x54d   :  { %1887 = vmatpush1.bf16.msra.mxu0 %v4836_v17  ;;  %1928 = vmatpush1.bf16.msra.mxu1 %v4842_v19 }
 0x54e   :  { %1888 = vmatprep.subr.bf16.mxu0 %v4848_v20  ;;  %1929 = vmatprep.subr.bf16.mxu1 %v4854_v22 }
 0x551   :  { %1889 = vmatpush1.bf16.msra.mxu0 %v4860_v24  ;;  %1930 = vmatpush1.bf16.msra.mxu1 %v4866_v25 }
 0x552   :  { %1890 = vmatprep.subr.bf16.mxu0 %v4872_v26  ;;  %1931 = vmatprep.subr.bf16.mxu1 %v4878_v27 }
 0x555   :  { %1891 = vmatpush1.bf16.msra.mxu0 %v4884_v28  ;;  %1932 = vmatpush1.bf16.msra.mxu1 %v4890_v29 }
 0x556   :  { %1892 = vmatprep.subr.bf16.mxu0 %v4896_v30  ;;  %1933 = vmatprep.subr.bf16.mxu1 %v4902_v31 }
 0x559   :  { %1893 = vmatpush1.bf16.msra.mxu0 %v4908_v32  ;;  %1934 = vmatpush1.bf16.msra.mxu1 %v4914_v33 }
 0x55a   :  { %1990 = vmatprep.subr.bf16.mxu0 %v4917_v34  ;;  %2031 = vmatprep.subr.bf16.mxu1 %v4920_v35 }
 0x55c   :  { %1911 = vmatmul.mubr.bf16.vlgmr.msra.gmra.mrb[48].mxu0 %v1770_v40  ;;  %1952 = vmatmul.mubr.bf16.vlgmr.msra.gmra.mrb[48].mxu1 %v1770_v40  ;;  %v6542_v40 = vld [vmem:[#allocation30_spill] sm:$0xff] }
 0x55d   :  { %1991 = vmatpush1.bf16.msra.mxu0 %v4925_v36  ;;  %2032 = vmatpush1.bf16.msra.mxu1 %v4928_v54 }
 0x55e   :  { %1992 = vmatprep.subr.bf16.mxu0 %v4931_v39  ;;  %2033 = vmatprep.subr.bf16.mxu1 %v4934_v41 }
 0x561   :  { %1993 = vmatpush1.bf16.msra.mxu0 %v4937_v57  ;;  %2034 = vmatpush1.bf16.msra.mxu1 %v4940_v45 }
 0x562   :  { %1994 = vmatprep.subr.bf16.mxu0 %v4943_v43  ;;  %2035 = vmatprep.subr.bf16.mxu1 %v4946_v44 }
 0x565   :  { %1995 = vmatpush1.bf16.msra.mxu0 %v6522_v50  ;;  %2036 = vmatpush1.bf16.msra.mxu1 %v6523_v42 }
 0x566   :  { %1996 = vmatprep.subr.bf16.mxu0 %v6524_v48  ;;  %2037 = vmatprep.subr.bf16.mxu1 %v6525_v53  ;;  %v6581_v53 = vld [vmem:[#allocation95_spill] sm:$0xff] }
 0x569   :  { %1997 = vmatpush1.bf16.msra.mxu0 %v6526_v56  ;;  %2038 = vmatpush1.bf16.msra.mxu1 %v6527_v60 }
 0x56a   :  { %1998 = vmatprep.subr.bf16.mxu0 %v6528_v37  ;;  %2039 = vmatprep.subr.bf16.mxu1 %v6529_v4  ;;  %v6579_v4 = vld [vmem:[#allocation93_spill] sm:$0xff] }
 0x56d   :  { %1999 = vmatpush1.bf16.msra.mxu0 %v6530_v52  ;;  %2040 = vmatpush1.bf16.msra.mxu1 %v6531_v61  ;;  %v6578_v61 = vld [vmem:[#allocation10_spill] sm:$0xff] }
 0x56e   :  { %2000 = vmatprep.subr.bf16.mxu0 %v6532_v7  ;;  %2041 = vmatprep.subr.bf16.mxu1 %v6533_v18  ;;  %v6543_v7 = vld [vmem:[#allocation31_spill] sm:$0xff]  ;;  %v6544_v18 = vld [vmem:[#allocation32_spill] sm:$0xff] }
 0x571   :  { %2001 = vmatpush1.bf16.msra.mxu0 %v6534_v38  ;;  %2042 = vmatpush1.bf16.msra.mxu1 %v6535_v55  ;;  %v6545_v38 = vld [vmem:[#allocation33_spill] sm:$0xff]  ;;  %v6546_v55 = vld [vmem:[#allocation34_spill] sm:$0xff] }
 0x572   :  { %2002 = vmatprep.subr.bf16.mxu0 %v6536_v51  ;;  %2043 = vmatprep.subr.bf16.mxu1 %v6537_v13  ;;  %v6547_v51 = vld [vmem:[#allocation35_spill] sm:$0xff]  ;;  %v6548_v13 = vld [vmem:[#allocation36_spill] sm:$0xff] }
 0x575   :  { %2003 = vmatpush1.bf16.msra.mxu0 %v6538_v63  ;;  %2044 = vmatpush1.bf16.msra.mxu1 %v6539_v49  ;;  %v6549_v63 = vld [vmem:[#allocation37_spill] sm:$0xff]  ;;  %v6550_v49 = vld [vmem:[#allocation38_spill] sm:$0xff] }
 0x576   :  { %2004 = vmatprep.subr.bf16.mxu0 %v6540_v23  ;;  %2045 = vmatprep.subr.bf16.mxu1 %v6541_v21  ;;  %v6551_v23 = vld [vmem:[#allocation39_spill] sm:$0xff]  ;;  %v6552_v21 = vld [vmem:[#allocation40_spill] sm:$0xff] }
 0x579   :  { %2005 = vmatpush1.bf16.msra.mxu0 %v6542_v40  ;;  %2046 = vmatpush1.bf16.msra.mxu1 %v6543_v7  ;;  %v6553_v40 = vld [vmem:[#allocation41_spill] sm:$0xff]  ;;  %v6554_v7 = vld [vmem:[#allocation42_spill] sm:$0xff] }
 0x57a   :  { %2006 = vmatprep.subr.bf16.mxu0 %v6544_v18  ;;  %2047 = vmatprep.subr.bf16.mxu1 %v6545_v38  ;;  %v6555_v18 = vld [vmem:[#allocation43_spill] sm:$0xff]  ;;  %v6556_v38 = vld [vmem:[#allocation44_spill] sm:$0xff] }
 0x57d   :  { %2007 = vmatpush1.bf16.msra.mxu0 %v6546_v55  ;;  %2048 = vmatpush1.bf16.msra.mxu1 %v6547_v51  ;;  %v6557_v55 = vld [vmem:[#allocation45_spill] sm:$0xff]  ;;  %v6558_v51 = vld [vmem:[#allocation46_spill] sm:$0xff] }
 0x57e   :  { %2008 = vmatprep.subr.bf16.mxu0 %v6548_v13  ;;  %2049 = vmatprep.subr.bf16.mxu1 %v6549_v63  ;;  %v6559_v13 = vld [vmem:[#allocation47_spill] sm:$0xff]  ;;  %v6560_v63 = vld [vmem:[#allocation48_spill] sm:$0xff] }
 0x581   :  { %2009 = vmatpush1.bf16.msra.mxu0 %v6550_v49  ;;  %2050 = vmatpush1.bf16.msra.mxu1 %v6551_v23  ;;  %v6561_v49 = vld [vmem:[#allocation49_spill] sm:$0xff]  ;;  %v6562_v23 = vld [vmem:[#allocation50_spill] sm:$0xff] }
 0x582   :  { %2010 = vmatprep.subr.bf16.mxu0 %v6552_v21  ;;  %2051 = vmatprep.subr.bf16.mxu1 %v6553_v40  ;;  %v6563_v21 = vld [vmem:[#allocation51_spill] sm:$0xff]  ;;  %v6564_v40 = vld [vmem:[#allocation52_spill] sm:$0xff] }
 0x585   :  { %2011 = vmatpush1.bf16.msra.mxu0 %v6554_v7  ;;  %2052 = vmatpush1.bf16.msra.mxu1 %v6555_v18  ;;  %v6565_v7 = vld [vmem:[#allocation53_spill] sm:$0xff]  ;;  %v6566_v18 = vld [vmem:[#allocation54_spill] sm:$0xff] }
 0x586   :  { %2012 = vmatprep.subr.bf16.mxu0 %v6556_v38  ;;  %2053 = vmatprep.subr.bf16.mxu1 %v6557_v55  ;;  %v6567_v38 = vld [vmem:[#allocation55_spill] sm:$0xff]  ;;  %v6568_v55 = vld [vmem:[#allocation56_spill] sm:$0xff] }
 0x589   :  { %2013 = vmatpush1.bf16.msra.mxu0 %v6558_v51  ;;  %2054 = vmatpush1.bf16.msra.mxu1 %v6559_v13  ;;  %v6569_v51 = vld [vmem:[#allocation57_spill] sm:$0xff]  ;;  %v6570_v13 = vld [vmem:[#allocation58_spill] sm:$0xff] }
 0x58a   :  { %2014 = vmatprep.subr.bf16.mxu0 %v6560_v63  ;;  %2055 = vmatprep.subr.bf16.mxu1 %v6561_v49  ;;  %v6571_v63 = vld [vmem:[#allocation59_spill] sm:$0xff]  ;;  %v6572_v49 = vld [vmem:[#allocation60_spill] sm:$0xff] }
 0x58d   :  { %2015 = vmatpush1.bf16.msra.mxu0 %v6562_v23  ;;  %2056 = vmatpush1.bf16.msra.mxu1 %v6563_v21  ;;  %v6573_v23 = vld [vmem:[#allocation61_spill] sm:$0xff]  ;;  %v6574_v21 = vld [vmem:[#allocation62_spill] sm:$0xff] }
 0x58e   :  { %2016 = vmatprep.subr.bf16.mxu0 %v6564_v40  ;;  %2057 = vmatprep.subr.bf16.mxu1 %v6565_v7  ;;  %v6575_v40 = vld [vmem:[#allocation63_spill] sm:$0xff]  ;;  %v6576_v7 = vld [vmem:[#allocation65_spill] sm:$0xff] }
 0x591   :  { %2017 = vmatpush1.bf16.msra.mxu0 %v6566_v18  ;;  %2058 = vmatpush1.bf16.msra.mxu1 %v6567_v38  ;;  %v6577_v18 = vld [vmem:[#allocation66_spill] sm:$0xff] }
 0x592   :  { %2018 = vmatprep.subr.bf16.mxu0 %v6568_v55  ;;  %2059 = vmatprep.subr.bf16.mxu1 %v6569_v51 }
 0x595   :  { %2019 = vmatpush1.bf16.msra.mxu0 %v6570_v13  ;;  %2060 = vmatpush1.bf16.msra.mxu1 %v6571_v63 }
 0x596   :  { %2020 = vmatprep.subr.bf16.mxu0 %v6572_v49  ;;  %2061 = vmatprep.subr.bf16.mxu1 %v6573_v23 }
 0x599   :  { %2021 = vmatpush1.bf16.msra.mxu0 %v6574_v21  ;;  %2062 = vmatpush1.bf16.msra.mxu1 %v6575_v40  ;;  %v6580_v40 = vld [vmem:[#allocation94_spill] sm:$0xff] }
 0x59a   :  { %2096 = vmatprep.subr.bf16.mxu0 %v6576_v7  ;;  %2137 = vmatprep.subr.bf16.mxu1 %v6577_v18 }
 0x60f   :  { %v1806_v38 = vpop.f32.mrb[44].mxu0  ;;  %v1847_v55 = vpop.f32.mrb[44].mxu1 }
 0x610   :  { %v1807_v51 = vadd.f32 %v1806_v38, %v6578_v61  ;;  %v1808_v52 = vpop.f32.mrb[45].mxu0  ;;  %v1849_v13 = vpop.f32.mrb[45].mxu1  ;;  %v1848_v7 = vadd.f32 %v1847_v55, %v6580_v40  ;;  %v6585_v40 = vld [vmem:[#allocation80_spill] sm:$0xff] }
 0x611   :  { %v1809_v63 = vadd.f32 %v1808_v52, %v6579_v4  ;;  %v1810_v37 = vpop.f32.mrb[46].mxu0  ;;  %v1851_v49 = vpop.f32.mrb[46].mxu1  ;;  %v1850_v18 = vadd.f32 %v1849_v13, %v6581_v53 }
 0x612   :  { %v3045_v60 = vmul.f32 -1.442695, %v1807_v51  ;;  %v1811_v23 = vpop.f32.mrb[47].mxu0  ;;  %v1852_v56 = vpop.f32.mrb[47].mxu1  ;;  %v3047_v48 = vmul.f32 -1.442695, %v1848_v7 }
 0x613   :  { %v3046_v21 = vmul.f32 -1.442695, %v1809_v63  ;;  %v6582_v7 = vld [vmem:[#allocation77_spill] sm:$0xff] }
 0x614   :  { %3485 = vpow2.f32 %v3045_v60 }
 0x615   :  { %3487 = vpow2.f32 %v3046_v21 }
 0x616   :  { %3489 = vtanh.f32 %v1850_v18  ;;  %v6583_v18 = vld [vmem:[#allocation78_spill] sm:$0xff] }
 0x617   :  { %3491 = vpow2.f32 %v3047_v48 }
 0x61e   :  { %v3486_v42 = vpop.eup %3485 }
 0x61f   :  { %v1857_v50 = vadd.f32 1.0, %v3486_v42  ;;  %v3488_v38 = vpop.eup %3487 }
 0x620   :  { %v1863_v52 = vadd.f32 1.0, %v3488_v38  ;;  %v3490_v37 = vpop.eup %3489  ;;  %v6584_v38 = vld [vmem:[#allocation79_spill] sm:$0xff] }
 0x621   :  { %3493 = vrcp.f32 %v1857_v50  ;;  %v3492_v51 = vpop.eup %3491 }
 0x622   :  { %3495 = vrcp.f32 %v1863_v52  ;;  %v1869_v60 = vadd.f32 1.0, %v3492_v51 }
 0x624   :  { %3497 = vrcp.f32 %v1869_v60 }
 0x62b   :  { %v3494_v49 = vpop.eup %3493 }
 0x62c   :  { %v1874_v56 = vmul.f32 %v3494_v49, %v3490_v37  ;;  %v3496_v63 = vpop.eup %3495 }
 0x62d   :  { %v1873_v23 = vmul.f32 %v3496_v63, %v5118_v46 }
 0x62e   :  { %v3498_v63 = vpop.eup %3497 }
 0x62f   :  { %v1912_v55 = vpop.f32.mrb[48].mxu0  ;;  %v1953_v21 = vpop.f32.mrb[48].mxu1  ;;  %v5232_v13 = vadd.f32 %v1874_v56, %v1873_v23 }
 0x630   :  { %v1960_v42 = vadd.f32 %v1912_v55, %v6582_v7  ;;  %v1962_v53 = vadd.f32 %v1953_v21, %v6583_v18  ;;  %v1914_v48 = vpop.f32.mrb[49].mxu0  ;;  %v1955_v50 = vpop.f32.mrb[49].mxu1 }
 0x631   :  { %v1961_v52 = vadd.f32 %v1914_v48, %v6584_v38  ;;  %v1963_v4 = vadd.f32 %v1955_v50, %v6585_v40  ;;  %v1916_v37 = vpop.f32.mrb[50].mxu0  ;;  %v1957_v49 = vpop.f32.mrb[50].mxu1  ;;  %3499 = vtanh.f32 %v5232_v13 }
 0x632   :  { %v3048_v51 = vmul.f32 -1.442695, %v1960_v42  ;;  %v1917_v61 = vpop.f32.mrb[51].mxu0  ;;  %v1958_v46 = vpop.f32.mrb[51].mxu1  ;;  %v3050_v55 = vmul.f32 -1.442695, %v1962_v53 }
 0x633   :  { %v3049_v56 = vmul.f32 -1.442695, %v1961_v52 }
 0x634   :  { %3501 = vpow2.f32 %v3048_v51 }
 0x635   :  { %3503 = vpow2.f32 %v3049_v56 }
 0x636   :  { %3505 = vtanh.f32 %v1963_v4 }
 0x637   :  { %3507 = vpow2.f32 %v3050_v55  ;;  %v6629_v55 = vld [vmem:[#allocation53_spill] sm:$0xff] }
 0x63b   :  { %v3500_v23 = vpop.eup %3499 }
 0x63c   :  { %v1877_v21 = vmul.f32 %v3500_v23, %v3498_v63  ;;  %v6627_v63 = vld [vmem:[#allocation51_spill] sm:$0xff]  ;;  %v6628_v23 = vld [vmem:[#allocation52_spill] sm:$0xff] }
 0x63e   :  { %v3502_v7 = vpop.eup %3501  ;;  %v1989_v18 = vpack.c.bf16 %v1877_v21, %v1877_v21  ;;  %v6630_v21 = vld [vmem:[#allocation54_spill] sm:$0xff] }
 0x63f   :  { %v1967_v60 = vadd.f32 1.0, %v3502_v7  ;;  %v3504_v48 = vpop.eup %3503  ;;  %v6631_v7 = vld [vmem:[#allocation55_spill] sm:$0xff] }
 0x640   :  { %v1973_v40 = vadd.f32 1.0, %v3504_v48  ;;  %2022 = vmatprep.mubr.bf16.mxu0 %v1989_v18  ;;  %2063 = vmatprep.mubr.bf16.mxu1 %v1989_v18  ;;  %v3506_v61 = vpop.eup %3505  ;;  %v6633_v18 = vld [vmem:[#allocation57_spill] sm:$0xff]  ;;  %v6634_v48 = vld [vmem:[#allocation58_spill] sm:$0xff] }
 0x641   :  { %3509 = vrcp.f32 %v1967_v60  ;;  %v3508_v42 = vpop.eup %3507  ;;  %v6632_v60 = vld [vmem:[#allocation56_spill] sm:$0xff] }
 0x642   :  { %3511 = vrcp.f32 %v1973_v40  ;;  %v1979_v37 = vadd.f32 1.0, %v3508_v42  ;;  %v6635_v40 = vld [vmem:[#allocation59_spill] sm:$0xff]  ;;  %v6637_v42 = vld [vmem:[#allocation61_spill] sm:$0xff] }
 0x644   :  { %3513 = vrcp.f32 %v1979_v37  ;;  %v5348_v37 = vld [vmem:[%s5949_s3 + $0xc] ss:$16 sps:$4 sm:$0xff]  }
 0x64b   :  { %v3510_v50 = vpop.eup %3509 }
 0x64c   :  { %v1984_v38 = vmul.f32 %v3510_v50, %v3506_v61  ;;  %v3512_v52 = vpop.eup %3511  ;;  %v6636_v61 = vld [vmem:[#allocation60_spill] sm:$0xff]  ;;  %v6638_v50 = vld [vmem:[#allocation62_spill] sm:$0xff] }
 0x64d   :  { %v1983_v53 = vmul.f32 %v3512_v52, %v5126_v47  ;;  %v6626_v47 = vld [vmem:[#allocation50_spill] sm:$0xff]  ;;  %v5342_v52 = vld [vmem:[%s5949_s3 + $0x4] ss:$16 sps:$4 sm:$0xff]  }
 0x64e   :  { %v3514_v4 = vpop.eup %3513 }
 0x64f   :  { %v5240_v49 = vadd.f32 %v1984_v38, %v1983_v53  ;;  %v6639_v38 = vld [vmem:[#allocation63_spill] sm:$0xff] }
 0x651   :  { %3515 = vtanh.f32 %v5240_v49 }
 0x65b   :  { %v3516_v51 = vpop.eup %3515 }
 0x65c   :  { %v1987_v46 = vmul.f32 %v3516_v51, %v3514_v4  ;;  %v6640_v51 = vld [vmem:[#allocation10_spill] sm:$0xff] }
 0x65e   :  { %v1988_v56 = vpack.c.bf16 %v1987_v46, %v1987_v46 }
 0x660   :  { %2023 = vmatmul.mubr.bf16.vlgmr.msra.gmra.mrb[52].mxu0 %v1988_v56  ;;  %2064 = vmatmul.mubr.bf16.vlgmr.msra.gmra.mrb[52].mxu1 %v1988_v56 }
 0x661   :  { %2097 = vmatpush1.bf16.msra.mxu0 %v4738_v58  ;;  %2138 = vmatpush1.bf16.msra.mxu1 %v4744_v8  ;;  %v6586_v58 = vld [vmem:[#allocation67_spill] sm:$0xff]  ;;  %v6587_v8 = vld [vmem:[#allocation68_spill] sm:$0xff] }
 0x662   :  { %2098 = vmatprep.subr.bf16.mxu0 %v4750_v59  ;;  %2139 = vmatprep.subr.bf16.mxu1 %v4756_v62  ;;  %v6588_v59 = vld [vmem:[#allocation12_spill] sm:$0xff]  ;;  %v6589_v62 = vld [vmem:[#allocation13_spill] sm:$0xff] }
 0x663   :  { %2128 = vmatprep.mubr.bf16.mxu0 %v6336_v1  ;;  %2169 = vmatprep.mubr.bf16.mxu1 %v6336_v1 }
 0x665   :  { %2099 = vmatpush1.bf16.msra.mxu0 %v4764_v0  ;;  %2140 = vmatpush1.bf16.msra.mxu1 %v4770_v2  ;;  %v6590_v0 = vld [vmem:[#allocation14_spill] sm:$0xff]  ;;  %v6591_v2 = vld [vmem:[#allocation15_spill] sm:$0xff] }
 0x666   :  { %2100 = vmatprep.subr.bf16.mxu0 %v4776_v3  ;;  %2141 = vmatprep.subr.bf16.mxu1 %v4782_v5  ;;  %v6592_v3 = vld [vmem:[#allocation16_spill] sm:$0xff]  ;;  %v6593_v5 = vld [vmem:[#allocation17_spill] sm:$0xff] }
 0x669   :  { %2101 = vmatpush1.bf16.msra.mxu0 %v4788_v6  ;;  %2142 = vmatpush1.bf16.msra.mxu1 %v4794_v9  ;;  %v6594_v6 = vld [vmem:[#allocation18_spill] sm:$0xff]  ;;  %v6595_v9 = vld [vmem:[#allocation19_spill] sm:$0xff] }
 0x66a   :  { %2102 = vmatprep.subr.bf16.mxu0 %v4800_v10  ;;  %2143 = vmatprep.subr.bf16.mxu1 %v4806_v11  ;;  %v6596_v10 = vld [vmem:[#allocation20_spill] sm:$0xff]  ;;  %v6597_v11 = vld [vmem:[#allocation21_spill] sm:$0xff] }
 0x66d   :  { %2103 = vmatpush1.bf16.msra.mxu0 %v4812_v12  ;;  %2144 = vmatpush1.bf16.msra.mxu1 %v4818_v14  ;;  %v6598_v12 = vld [vmem:[#allocation22_spill] sm:$0xff]  ;;  %v6599_v14 = vld [vmem:[#allocation23_spill] sm:$0xff] }
 0x66e   :  { %2104 = vmatprep.subr.bf16.mxu0 %v4824_v15  ;;  %2145 = vmatprep.subr.bf16.mxu1 %v4830_v16  ;;  %v6600_v15 = vld [vmem:[#allocation24_spill] sm:$0xff]  ;;  %v6601_v16 = vld [vmem:[#allocation25_spill] sm:$0xff] }
 0x671   :  { %2105 = vmatpush1.bf16.msra.mxu0 %v4836_v17  ;;  %2146 = vmatpush1.bf16.msra.mxu1 %v4842_v19  ;;  %v6602_v17 = vld [vmem:[#allocation26_spill] sm:$0xff]  ;;  %v6603_v19 = vld [vmem:[#allocation27_spill] sm:$0xff] }
 0x672   :  { %2106 = vmatprep.subr.bf16.mxu0 %v4848_v20  ;;  %2147 = vmatprep.subr.bf16.mxu1 %v4854_v22  ;;  %v6604_v20 = vld [vmem:[#allocation28_spill] sm:$0xff]  ;;  %v6605_v22 = vld [vmem:[#allocation29_spill] sm:$0xff] }
 0x675   :  { %2107 = vmatpush1.bf16.msra.mxu0 %v4860_v24  ;;  %2148 = vmatpush1.bf16.msra.mxu1 %v4866_v25  ;;  %v6606_v24 = vld [vmem:[#allocation30_spill] sm:$0xff]  ;;  %v6607_v25 = vld [vmem:[#allocation31_spill] sm:$0xff] }
 0x676   :  { %2108 = vmatprep.subr.bf16.mxu0 %v4872_v26  ;;  %2149 = vmatprep.subr.bf16.mxu1 %v4878_v27  ;;  %v6608_v26 = vld [vmem:[#allocation32_spill] sm:$0xff]  ;;  %v6609_v27 = vld [vmem:[#allocation33_spill] sm:$0xff] }
 0x679   :  { %2109 = vmatpush1.bf16.msra.mxu0 %v4884_v28  ;;  %2150 = vmatpush1.bf16.msra.mxu1 %v4890_v29  ;;  %v6610_v28 = vld [vmem:[#allocation34_spill] sm:$0xff]  ;;  %v6611_v29 = vld [vmem:[#allocation35_spill] sm:$0xff] }
 0x67a   :  { %2110 = vmatprep.subr.bf16.mxu0 %v4896_v30  ;;  %2151 = vmatprep.subr.bf16.mxu1 %v4902_v31  ;;  %v6612_v30 = vld [vmem:[#allocation36_spill] sm:$0xff]  ;;  %v6613_v31 = vld [vmem:[#allocation37_spill] sm:$0xff] }
 0x67d   :  { %2111 = vmatpush1.bf16.msra.mxu0 %v4908_v32  ;;  %2152 = vmatpush1.bf16.msra.mxu1 %v4914_v33  ;;  %v6614_v32 = vld [vmem:[#allocation38_spill] sm:$0xff]  ;;  %v6615_v33 = vld [vmem:[#allocation39_spill] sm:$0xff] }
 0x67e   :  { %2208 = vmatprep.subr.bf16.mxu0 %v4917_v34  ;;  %2249 = vmatprep.subr.bf16.mxu1 %v4920_v35  ;;  %v6616_v34 = vld [vmem:[#allocation40_spill] sm:$0xff]  ;;  %v6617_v35 = vld [vmem:[#allocation41_spill] sm:$0xff] }
 0x680   :  { %2129 = vmatmul.mubr.bf16.vlgmr.msra.gmra.mrb[56].mxu0 %v1988_v56  ;;  %2170 = vmatmul.mubr.bf16.vlgmr.msra.gmra.mrb[56].mxu1 %v1988_v56 }
 0x681   :  { %2209 = vmatpush1.bf16.msra.mxu0 %v4925_v36  ;;  %2250 = vmatpush1.bf16.msra.mxu1 %v4928_v54  ;;  %v6618_v36 = vld [vmem:[#allocation42_spill] sm:$0xff]  ;;  %v6619_v54 = vld [vmem:[#allocation43_spill] sm:$0xff] }
 0x682   :  { %2210 = vmatprep.subr.bf16.mxu0 %v4931_v39  ;;  %2251 = vmatprep.subr.bf16.mxu1 %v4934_v41  ;;  %v6620_v39 = vld [vmem:[#allocation44_spill] sm:$0xff]  ;;  %v6621_v41 = vld [vmem:[#allocation45_spill] sm:$0xff] }
 0x685   :  { %2211 = vmatpush1.bf16.msra.mxu0 %v4937_v57  ;;  %2252 = vmatpush1.bf16.msra.mxu1 %v4940_v45  ;;  %v6622_v57 = vld [vmem:[#allocation46_spill] sm:$0xff]  ;;  %v6623_v45 = vld [vmem:[#allocation47_spill] sm:$0xff] }
 0x686   :  { %2212 = vmatprep.subr.bf16.mxu0 %v4943_v43  ;;  %2253 = vmatprep.subr.bf16.mxu1 %v4946_v44  ;;  %v6624_v43 = vld [vmem:[#allocation48_spill] sm:$0xff]  ;;  %v6625_v44 = vld [vmem:[#allocation49_spill] sm:$0xff] }
 0x689   :  { %2213 = vmatpush1.bf16.msra.mxu0 %v6586_v58  ;;  %2254 = vmatpush1.bf16.msra.mxu1 %v6587_v8  ;;  %v6641_v8 = vld [vmem:[#allocation93_spill] sm:$0xff] }
 0x68a   :  { %2214 = vmatprep.subr.bf16.mxu0 %v6588_v59  ;;  %2255 = vmatprep.subr.bf16.mxu1 %v6589_v62 }
 0x68d   :  { %2215 = vmatpush1.bf16.msra.mxu0 %v6590_v0  ;;  %2256 = vmatpush1.bf16.msra.mxu1 %v6591_v2 }
 0x68e   :  { %2216 = vmatprep.subr.bf16.mxu0 %v6592_v3  ;;  %2257 = vmatprep.subr.bf16.mxu1 %v6593_v5 }
 0x691   :  { %2217 = vmatpush1.bf16.msra.mxu0 %v6594_v6  ;;  %2258 = vmatpush1.bf16.msra.mxu1 %v6595_v9  ;;  %v6642_v9 = vld [vmem:[#allocation94_spill] sm:$0xff] }
 0x692   :  { %2218 = vmatprep.subr.bf16.mxu0 %v6596_v10  ;;  %2259 = vmatprep.subr.bf16.mxu1 %v6597_v11  ;;  %v6643_v11 = vld [vmem:[#allocation95_spill] sm:$0xff] }
 0x695   :  { %2219 = vmatpush1.bf16.msra.mxu0 %v6598_v12  ;;  %2260 = vmatpush1.bf16.msra.mxu1 %v6599_v14 }
 0x696   :  { %2220 = vmatprep.subr.bf16.mxu0 %v6600_v15  ;;  %2261 = vmatprep.subr.bf16.mxu1 %v6601_v16 }
 0x699   :  { %2221 = vmatpush1.bf16.msra.mxu0 %v6602_v17  ;;  %2262 = vmatpush1.bf16.msra.mxu1 %v6603_v19 }
 0x69a   :  { %2222 = vmatprep.subr.bf16.mxu0 %v6604_v20  ;;  %2263 = vmatprep.subr.bf16.mxu1 %v6605_v22 }
 0x69d   :  { %2223 = vmatpush1.bf16.msra.mxu0 %v6606_v24  ;;  %2264 = vmatpush1.bf16.msra.mxu1 %v6607_v25 }
 0x69e   :  { %2224 = vmatprep.subr.bf16.mxu0 %v6608_v26  ;;  %2265 = vmatprep.subr.bf16.mxu1 %v6609_v27 }
 0x6a1   :  { %2225 = vmatpush1.bf16.msra.mxu0 %v6610_v28  ;;  %2266 = vmatpush1.bf16.msra.mxu1 %v6611_v29 }
 0x6a2   :  { %2226 = vmatprep.subr.bf16.mxu0 %v6612_v30  ;;  %2267 = vmatprep.subr.bf16.mxu1 %v6613_v31 }
 0x6a5   :  { %2227 = vmatpush1.bf16.msra.mxu0 %v6614_v32  ;;  %2268 = vmatpush1.bf16.msra.mxu1 %v6615_v33  ;;  %v6644_v32 = vld [vmem:[#allocation81_spill] sm:$0xff] }
 0x6a6   :  { %2228 = vmatprep.subr.bf16.mxu0 %v6616_v34  ;;  %2269 = vmatprep.subr.bf16.mxu1 %v6617_v35  ;;  %v6645_v34 = vld [vmem:[#allocation82_spill] sm:$0xff] }
 0x6a9   :  { %2229 = vmatpush1.bf16.msra.mxu0 %v6618_v36  ;;  %2270 = vmatpush1.bf16.msra.mxu1 %v6619_v54 }
 0x6aa   :  { %2230 = vmatprep.subr.bf16.mxu0 %v6620_v39  ;;  %2271 = vmatprep.subr.bf16.mxu1 %v6621_v41  ;;  %v6646_v39 = vld [vmem:[#allocation83_spill] sm:$0xff] }
 0x6ad   :  { %2231 = vmatpush1.bf16.msra.mxu0 %v6622_v57  ;;  %2272 = vmatpush1.bf16.msra.mxu1 %v6623_v45  ;;  %v6647_v57 = vld [vmem:[#allocation84_spill] sm:$0xff] }
 0x6ae   :  { %2232 = vmatprep.subr.bf16.mxu0 %v6624_v43  ;;  %2273 = vmatprep.subr.bf16.mxu1 %v6625_v44 }
 0x6b1   :  { %2233 = vmatpush1.bf16.msra.mxu0 %v6626_v47  ;;  %2274 = vmatpush1.bf16.msra.mxu1 %v6627_v63 }
 0x6b2   :  { %2234 = vmatprep.subr.bf16.mxu0 %v6628_v23  ;;  %2275 = vmatprep.subr.bf16.mxu1 %v6629_v55 }
 0x6b5   :  { %2235 = vmatpush1.bf16.msra.mxu0 %v6630_v21  ;;  %2276 = vmatpush1.bf16.msra.mxu1 %v6631_v7 }
 0x6b6   :  { %2236 = vmatprep.subr.bf16.mxu0 %v6632_v60  ;;  %2277 = vmatprep.subr.bf16.mxu1 %v6633_v18 }
 0x6b9   :  { %2237 = vmatpush1.bf16.msra.mxu0 %v6634_v48  ;;  %2278 = vmatpush1.bf16.msra.mxu1 %v6635_v40 }
 0x6ba   :  { %2238 = vmatprep.subr.bf16.mxu0 %v6636_v61  ;;  %2279 = vmatprep.subr.bf16.mxu1 %v6637_v42 }
 0x6bd   :  { %2239 = vmatpush1.bf16.msra.mxu0 %v6638_v50  ;;  %2280 = vmatpush1.bf16.msra.mxu1 %v6639_v38 }
 0x6be   :  { %2314 = vmatprep.subr.bf16.mxu0 %v5342_v52  ;;  %2355 = vmatprep.subr.bf16.mxu1 %v5348_v37 }
 0x733   :  { %v2024_v53 = vpop.f32.mrb[52].mxu0  ;;  %v2065_v4 = vpop.f32.mrb[52].mxu1 }
 0x734   :  { %v2025_v46 = vadd.f32 %v2024_v53, %v6640_v51  ;;  %v2026_v56 = vpop.f32.mrb[53].mxu0  ;;  %v2067_v58 = vpop.f32.mrb[53].mxu1  ;;  %v2066_v10 = vadd.f32 %v2065_v4, %v6642_v9 }
 0x735   :  { %v2027_v59 = vadd.f32 %v2026_v56, %v6641_v8  ;;  %v2028_v62 = vpop.f32.mrb[54].mxu0  ;;  %v2069_v0 = vpop.f32.mrb[54].mxu1  ;;  %v2068_v12 = vadd.f32 %v2067_v58, %v6643_v11 }
 0x736   :  { %v3051_v2 = vmul.f32 -1.442695, %v2025_v46  ;;  %v2029_v3 = vpop.f32.mrb[55].mxu0  ;;  %v2070_v5 = vpop.f32.mrb[55].mxu1  ;;  %v3053_v14 = vmul.f32 -1.442695, %v2066_v10 }
 0x737   :  { %v3052_v6 = vmul.f32 -1.442695, %v2027_v59  ;;  %v5374_v5 = vld [vmem:[%s5949_s3] ss:$16 sps:$4 sm:$0xff]   ;;  %v5392_v10 = vld [vmem:[%s5949_s3 + $0x2c] ss:$16 sps:$4 sm:$0xff]  }
 0x738   :  { %3517 = vpow2.f32 %v3051_v2 }
 0x739   :  { %3519 = vpow2.f32 %v3052_v6  ;;  %v5386_v6 = vld [vmem:[%s5949_s3 + $0x24] ss:$16 sps:$4 sm:$0xff]  }
 0x73a   :  { %3521 = vtanh.f32 %v2068_v12  ;;  %v5400_v12 = vld [vmem:[%s5949_s3 + $0x20] ss:$16 sps:$4 sm:$0xff]  }
 0x73b   :  { %3523 = vpow2.f32 %v3053_v14  ;;  %v5406_v14 = vld [vmem:[%s5949_s3 + $0x28] ss:$16 sps:$4 sm:$0xff]  }
 0x742   :  { %v3518_v15 = vpop.eup %3517 }
 0x743   :  { %v2075_v16 = vadd.f32 1.0, %v3518_v15  ;;  %v3520_v17 = vpop.eup %3519  ;;  %v5412_v15 = vld [vmem:[%s5949_s3 + $0x44] ss:$16 sps:$4 sm:$0xff]  }
 0x744   :  { %v2081_v19 = vadd.f32 1.0, %v3520_v17  ;;  %v3522_v20 = vpop.eup %3521  ;;  %v5424_v17 = vld [vmem:[%s5949_s3 + $0x40] ss:$16 sps:$4 sm:$0xff]  }
 0x745   :  { %3525 = vrcp.f32 %v2075_v16  ;;  %v3524_v22 = vpop.eup %3523  ;;  %v5418_v16 = vld [vmem:[%s5949_s3 + $0x4c] ss:$16 sps:$4 sm:$0xff]  }
 0x746   :  { %3527 = vrcp.f32 %v2081_v19  ;;  %v2087_v27 = vadd.f32 1.0, %v3524_v22  ;;  %v5430_v19 = vld [vmem:[%s5949_s3 + $0x48] ss:$16 sps:$4 sm:$0xff]   ;;  %v5442_v22 = vld [vmem:[%s5949_s3 + $0x6c] ss:$16 sps:$4 sm:$0xff]  }
 0x748   :  { %3529 = vrcp.f32 %v2087_v27  ;;  %v5466_v27 = vld [vmem:[%s5949_s3 + $0x8c] ss:$16 sps:$4 sm:$0xff]  }
 0x74f   :  { %v3526_v24 = vpop.eup %3525 }
 0x750   :  { %v2092_v25 = vmul.f32 %v3526_v24, %v3522_v20  ;;  %v3528_v26 = vpop.eup %3527  ;;  %v5436_v20 = vld [vmem:[%s5949_s3 + $0x64] ss:$16 sps:$4 sm:$0xff]   ;;  %v5448_v24 = vld [vmem:[%s5949_s3 + $0x60] ss:$16 sps:$4 sm:$0xff]  }
 0x751   :  { %v2091_v28 = vmul.f32 %v3528_v26, %v5232_v13  ;;  %v5460_v26 = vld [vmem:[%s5949_s3 + $0x84] ss:$16 sps:$4 sm:$0xff]  }
 0x752   :  { %v3530_v55 = vpop.eup %3529 }
 0x753   :  { %v2130_v29 = vpop.f32.mrb[56].mxu0  ;;  %v2171_v30 = vpop.f32.mrb[56].mxu1  ;;  %v5356_v31 = vadd.f32 %v2092_v25, %v2091_v28  ;;  %v5454_v25 = vld [vmem:[%s5949_s3 + $0x68] ss:$16 sps:$4 sm:$0xff]   ;;  %v5472_v28 = vld [vmem:[%s5949_s3 + $0x80] ss:$16 sps:$4 sm:$0xff]  }
 0x754   :  { %v2178_v33 = vadd.f32 %v2130_v29, %v6644_v32  ;;  %v2180_v35 = vadd.f32 %v2171_v30, %v6645_v34  ;;  %v2132_v36 = vpop.f32.mrb[57].mxu0  ;;  %v2173_v54 = vpop.f32.mrb[57].mxu1  ;;  %v5478_v29 = vld [vmem:[%s5949_s3 + $0x88] ss:$16 sps:$4 sm:$0xff]   ;;  %v5484_v30 = vld [vmem:[%s5949_s3 + $0xa4] ss:$16 sps:$4 sm:$0xff]  }
 0x755   :  { %v2179_v41 = vadd.f32 %v2132_v36, %v6646_v39  ;;  %v2181_v45 = vadd.f32 %v2173_v54, %v6647_v57  ;;  %v2134_v43 = vpop.f32.mrb[58].mxu0  ;;  %v2175_v44 = vpop.f32.mrb[58].mxu1  ;;  %3531 = vtanh.f32 %v5356_v31  ;;  %v5490_v32 = vld [vmem:[%s5949_s3 + $0xac] ss:$16 sps:$4 sm:$0xff]   ;;  %v5502_v34 = vld [vmem:[%s5949_s3 + $0xa8] ss:$16 sps:$4 sm:$0xff]  }
 0x756   :  { %v3054_v47 = vmul.f32 -1.442695, %v2178_v33  ;;  %v2135_v63 = vpop.f32.mrb[59].mxu0  ;;  %v2176_v13 = vpop.f32.mrb[59].mxu1  ;;  %v3056_v7 = vmul.f32 -1.442695, %v2180_v35 }
 0x757   :  { %v3055_v23 = vmul.f32 -1.442695, %v2179_v41  ;;  %v5496_v33 = vld [vmem:[%s5949_s3 + $0xa0] ss:$16 sps:$4 sm:$0xff]   ;;  %v5508_v35 = vld [vmem:[%s5949_s3 + $0xc4] ss:$16 sps:$4 sm:$0xff]  }
 0x758   :  { %3533 = vpow2.f32 %v3054_v47  ;;  %v5514_v36 = vld [vmem:[%s5949_s3 + $0xcc] ss:$16 sps:$4 sm:$0xff]   ;;  %v5520_v54 = vld [vmem:[%s5949_s3 + $0xc0] ss:$16 sps:$4 sm:$0xff]   ;;  %v5526_v39 = vld [vmem:[%s5949_s3 + $0xc8] ss:$16 sps:$4 sm:$0xff]  }
 0x759   :  { %3535 = vpow2.f32 %v3055_v23  ;;  %v5532_v41 = vld [vmem:[%s5949_s3 + $0xe4] ss:$16 sps:$4 sm:$0xff]   ;;  %v5538_v57 = vld [vmem:[%s5949_s3 + $0xec] ss:$16 sps:$4 sm:$0xff]   ;;  %v5550_v43 = vld [vmem:[%s5949_s3 + $0xe8] ss:$16 sps:$4 sm:$0xff]  }
 0x75a   :  { %3537 = vtanh.f32 %v2181_v45  ;;  %v5544_v45 = vld [vmem:[%s5949_s3 + $0xe0] ss:$16 sps:$4 sm:$0xff]   ;;  %v5553_v44 = vld [vmem:[#allocation5 + $0x4] ss:$16 sps:$4 sm:$0xff]   ;;  %v5564_v13 = vld [vmem:[#allocation5 + $0x8] ss:$16 sps:$4 sm:$0xff]  }
 0x75b   :  { %3539 = vpow2.f32 %v3056_v7  ;;  %v5556_v47 = vld [vmem:[#allocation5 + $0xc] ss:$16 sps:$4 sm:$0xff]   ;;  %v5561_v63 = vld [vmem:[#allocation5] ss:$16 sps:$4 sm:$0xff]   ;;  %v5567_v23 = vld [vmem:[#allocation5 + $0x24] ss:$16 sps:$4 sm:$0xff]  }
 0x75c   :  { %v5576_v7 = vld [vmem:[#allocation5 + $0x28] ss:$16 sps:$4 sm:$0xff]  }
 0x75f   :  { %v3532_v21 = vpop.eup %3531 }
 0x760   :  { %v2095_v60 = vmul.f32 %v3532_v21, %v3530_v55  ;;  %v5570_v55 = vld [vmem:[#allocation5 + $0x2c] ss:$16 sps:$4 sm:$0xff]   ;;  %v5573_v21 = vld [vmem:[#allocation5 + $0x20] ss:$16 sps:$4 sm:$0xff]  }
 0x762   :  { %v3534_v18 = vpop.eup %3533  ;;  %v2207_v40 = vpack.c.bf16 %v2095_v60, %v2095_v60  ;;  %v5579_v60 = vld [vmem:[#allocation5 + $0x44] ss:$16 sps:$4 sm:$0xff]  }
 0x763   :  { %v2185_v48 = vadd.f32 1.0, %v3534_v18  ;;  %v3536_v61 = vpop.eup %3535  ;;  %v5582_v18 = vld [vmem:[#allocation5 + $0x4c] ss:$16 sps:$4 sm:$0xff]  }
 0x764   :  { %v2191_v42 = vadd.f32 1.0, %v3536_v61  ;;  %2240 = vmatprep.mubr.bf16.mxu0 %v2207_v40  ;;  %2281 = vmatprep.mubr.bf16.mxu1 %v2207_v40  ;;  %v3538_v50 = vpop.eup %3537  ;;  %v5588_v40 = vld [vmem:[#allocation5 + $0x48] ss:$16 sps:$4 sm:$0xff]   ;;  %v5591_v61 = vld [vmem:[#allocation5 + $0x64] ss:$16 sps:$4 sm:$0xff]  }
 0x765   :  { %3541 = vrcp.f32 %v2185_v48  ;;  %v3540_v38 = vpop.eup %3539  ;;  %v5585_v48 = vld [vmem:[#allocation5 + $0x40] ss:$16 sps:$4 sm:$0xff]   ;;  %6649 = vst [vmem:[#allocation69_spill] sm:$0xff] %v5588_v40  ;;  %6650 = vst [vmem:[#allocation70_spill] sm:$0xff] %v5591_v61 }
 0x766   :  { %3543 = vrcp.f32 %v2191_v42  ;;  %v2197_v56 = vadd.f32 1.0, %v3540_v38  ;;  %6648 = vst [vmem:[#allocation64_spill] sm:$0xff] %v5585_v48  ;;  %v5594_v42 = vld [vmem:[#allocation5 + $0x6c] ss:$16 sps:$4 sm:$0xff]   ;;  %v5600_v38 = vld [vmem:[#allocation5 + $0x68] ss:$16 sps:$4 sm:$0xff]  }
 0x767   :  { %6651 = vst [vmem:[#allocation71_spill] sm:$0xff] %v5594_v42  ;;  %6653 = vst [vmem:[#allocation73_spill] sm:$0xff] %v5600_v38 }
 0x768   :  { %3545 = vrcp.f32 %v2197_v56  ;;  %v5612_v56 = vld [vmem:[#allocation5 + $0x88] ss:$16 sps:$4 sm:$0xff]  }
 0x769   :  { %6657 = vst [vmem:[#allocation65_spill] sm:$0xff] %v5612_v56 }
 0x76f   :  { %v3542_v53 = vpop.eup %3541 }
 0x770   :  { %v2202_v4 = vmul.f32 %v3542_v53, %v3538_v50  ;;  %v3544_v46 = vpop.eup %3543  ;;  %v5597_v50 = vld [vmem:[#allocation5 + $0x60] ss:$16 sps:$4 sm:$0xff]   ;;  %v5603_v53 = vld [vmem:[#allocation5 + $0x84] ss:$16 sps:$4 sm:$0xff]  }
 0x771   :  { %v2201_v58 = vmul.f32 %v3544_v46, %v5240_v49  ;;  %v5380_v49 = vld [vmem:[%s5949_s3 + $0x8] ss:$16 sps:$4 sm:$0xff]   ;;  %6652 = vst [vmem:[#allocation72_spill] sm:$0xff] %v5597_v50  ;;  %6654 = vst [vmem:[#allocation74_spill] sm:$0xff] %v5603_v53  ;;  %v5609_v46 = vld [vmem:[#allocation5 + $0x80] ss:$16 sps:$4 sm:$0xff]  }
 0x772   :  { %v3546_v62 = vpop.eup %3545  ;;  %6656 = vst [vmem:[#allocation76_spill] sm:$0xff] %v5609_v46 }
 0x773   :  { %v5364_v59 = vadd.f32 %v2202_v4, %v2201_v58  ;;  %v5606_v4 = vld [vmem:[#allocation5 + $0x8c] ss:$16 sps:$4 sm:$0xff]   ;;  %v5615_v58 = vld [vmem:[#allocation5 + $0xa4] ss:$16 sps:$4 sm:$0xff]  }
 0x774   :  { %6655 = vst [vmem:[#allocation75_spill] sm:$0xff] %v5606_v4  ;;  %6658 = vst [vmem:[#allocation66_spill] sm:$0xff] %v5615_v58 }
 0x775   :  { %3547 = vtanh.f32 %v5364_v59 }
 0x77f   :  { %v3548_v0 = vpop.eup %3547 }
 0x780   :  { %v2205_v2 = vmul.f32 %v3548_v0, %v3546_v62  ;;  %v5618_v62 = vld [vmem:[#allocation5 + $0xac] ss:$16 sps:$4 sm:$0xff]   ;;  %v5621_v0 = vld [vmem:[#allocation5 + $0xa0] ss:$16 sps:$4 sm:$0xff]  }
 0x781   :  { %6659 = vst [vmem:[#allocation77_spill] sm:$0xff] %v5618_v62  ;;  %6660 = vst [vmem:[#allocation78_spill] sm:$0xff] %v5621_v0 }
 0x782   :  { %v5367_v3 = vpack.c.bf16 %v2205_v2, %v2205_v2  ;;  %v5624_v2 = vld [vmem:[#allocation5 + $0xa8] ss:$16 sps:$4 sm:$0xff]  }
 0x783   :  { %6661 = vst [vmem:[#allocation79_spill] sm:$0xff] %v5624_v2 }
 0x784   :  { %2241 = vmatmul.mubr.bf16.vlgmr.msra.gmra.mrb[60].mxu0 %v5367_v3  ;;  %2282 = vmatmul.mubr.bf16.vlgmr.msra.gmra.mrb[60].mxu1 %v5367_v3 }
 0x785   :  { %2315 = vmatpush1.bf16.msra.mxu0 %v5374_v5  ;;  %2356 = vmatpush1.bf16.msra.mxu1 %v5380_v49 }
 0x786   :  { %2316 = vmatprep.subr.bf16.mxu0 %v5386_v6  ;;  %2357 = vmatprep.subr.bf16.mxu1 %v5392_v10 }
 0x787   :  { %2346 = vmatprep.mubr.bf16.mxu0 %v6336_v1  ;;  %2387 = vmatprep.mubr.bf16.mxu1 %v6336_v1 }
 0x789   :  { %2317 = vmatpush1.bf16.msra.mxu0 %v5400_v12  ;;  %2358 = vmatpush1.bf16.msra.mxu1 %v5406_v14 }
 0x78a   :  { %2318 = vmatprep.subr.bf16.mxu0 %v5412_v15  ;;  %2359 = vmatprep.subr.bf16.mxu1 %v5418_v16 }
 0x78d   :  { %2319 = vmatpush1.bf16.msra.mxu0 %v5424_v17  ;;  %2360 = vmatpush1.bf16.msra.mxu1 %v5430_v19 }
 0x78e   :  { %2320 = vmatprep.subr.bf16.mxu0 %v5436_v20  ;;  %2361 = vmatprep.subr.bf16.mxu1 %v5442_v22 }
 0x791   :  { %2321 = vmatpush1.bf16.msra.mxu0 %v5448_v24  ;;  %2362 = vmatpush1.bf16.msra.mxu1 %v5454_v25 }
 0x792   :  { %2322 = vmatprep.subr.bf16.mxu0 %v5460_v26  ;;  %2363 = vmatprep.subr.bf16.mxu1 %v5466_v27 }
 0x795   :  { %2323 = vmatpush1.bf16.msra.mxu0 %v5472_v28  ;;  %2364 = vmatpush1.bf16.msra.mxu1 %v5478_v29 }
 0x796   :  { %2324 = vmatprep.subr.bf16.mxu0 %v5484_v30  ;;  %2365 = vmatprep.subr.bf16.mxu1 %v5490_v32 }
 0x799   :  { %2325 = vmatpush1.bf16.msra.mxu0 %v5496_v33  ;;  %2366 = vmatpush1.bf16.msra.mxu1 %v5502_v34 }
 0x79a   :  { %2326 = vmatprep.subr.bf16.mxu0 %v5508_v35  ;;  %2367 = vmatprep.subr.bf16.mxu1 %v5514_v36 }
 0x79d   :  { %2327 = vmatpush1.bf16.msra.mxu0 %v5520_v54  ;;  %2368 = vmatpush1.bf16.msra.mxu1 %v5526_v39 }
 0x79e   :  { %2328 = vmatprep.subr.bf16.mxu0 %v5532_v41  ;;  %2369 = vmatprep.subr.bf16.mxu1 %v5538_v57 }
 0x7a1   :  { %2329 = vmatpush1.bf16.msra.mxu0 %v5544_v45  ;;  %2370 = vmatpush1.bf16.msra.mxu1 %v5550_v43 }
 0x7a2   :  { %2426 = vmatprep.subr.bf16.mxu0 %v5553_v44  ;;  %2467 = vmatprep.subr.bf16.mxu1 %v5556_v47 }
 0x7a4   :  { %2347 = vmatmul.mubr.bf16.vlgmr.msra.gmra.mrb[64].mxu0 %v5367_v3  ;;  %2388 = vmatmul.mubr.bf16.vlgmr.msra.gmra.mrb[64].mxu1 %v5367_v3  ;;  %v5627_v3 = vld [vmem:[#allocation5 + $0xc4] ss:$16 sps:$4 sm:$0xff]  }
 0x7a5   :  { %2427 = vmatpush1.bf16.msra.mxu0 %v5561_v63  ;;  %2468 = vmatpush1.bf16.msra.mxu1 %v5564_v13  ;;  %6662 = vst [vmem:[#allocation80_spill] sm:$0xff] %v5627_v3 }
 0x7a6   :  { %2428 = vmatprep.subr.bf16.mxu0 %v5567_v23  ;;  %2469 = vmatprep.subr.bf16.mxu1 %v5570_v55 }
 0x7a9   :  { %2429 = vmatpush1.bf16.msra.mxu0 %v5573_v21  ;;  %2470 = vmatpush1.bf16.msra.mxu1 %v5576_v7 }
 0x7aa   :  { %2430 = vmatprep.subr.bf16.mxu0 %v5579_v60  ;;  %2471 = vmatprep.subr.bf16.mxu1 %v5582_v18 }
 0x7ad   :  { %2431 = vmatpush1.bf16.msra.mxu0 %v5585_v48  ;;  %2472 = vmatpush1.bf16.msra.mxu1 %v5588_v40 }
 0x7ae   :  { %2432 = vmatprep.subr.bf16.mxu0 %v5591_v61  ;;  %2473 = vmatprep.subr.bf16.mxu1 %v5594_v42 }
 0x7b1   :  { %2433 = vmatpush1.bf16.msra.mxu0 %v5597_v50  ;;  %2474 = vmatpush1.bf16.msra.mxu1 %v5600_v38 }
 0x7b2   :  { %2434 = vmatprep.subr.bf16.mxu0 %v5603_v53  ;;  %2475 = vmatprep.subr.bf16.mxu1 %v5606_v4 }
 0x7b5   :  { %2435 = vmatpush1.bf16.msra.mxu0 %v5609_v46  ;;  %2476 = vmatpush1.bf16.msra.mxu1 %v5612_v56  ;;  %v5630_v56 = vld [vmem:[#allocation5 + $0xcc] ss:$16 sps:$4 sm:$0xff]  }
 0x7b6   :  { %2436 = vmatprep.subr.bf16.mxu0 %v5615_v58  ;;  %2477 = vmatprep.subr.bf16.mxu1 %v5618_v62  ;;  %6663 = vst [vmem:[#allocation67_spill] sm:$0xff] %v5630_v56  ;;  %v5633_v58 = vld [vmem:[#allocation5 + $0xc0] ss:$16 sps:$4 sm:$0xff]   ;;  %v5636_v62 = vld [vmem:[#allocation5 + $0xc8] ss:$16 sps:$4 sm:$0xff]  }
 0x7b7   :  { %6664 = vst [vmem:[#allocation68_spill] sm:$0xff] %v5633_v58  ;;  %6665 = vst [vmem:[#allocation12_spill] sm:$0xff] %v5636_v62 }
 0x7b9   :  { %2437 = vmatpush1.bf16.msra.mxu0 %v5621_v0  ;;  %2478 = vmatpush1.bf16.msra.mxu1 %v5624_v2  ;;  %v5639_v0 = vld [vmem:[#allocation5 + $0xe4] ss:$16 sps:$4 sm:$0xff]   ;;  %v5642_v2 = vld [vmem:[#allocation5 + $0xec] ss:$16 sps:$4 sm:$0xff]  }
 0x7ba   :  { %2438 = vmatprep.subr.bf16.mxu0 %v5627_v3  ;;  %2479 = vmatprep.subr.bf16.mxu1 %v5630_v56  ;;  %6666 = vst [vmem:[#allocation13_spill] sm:$0xff] %v5639_v0  ;;  %6667 = vst [vmem:[#allocation14_spill] sm:$0xff] %v5642_v2  ;;  %v5645_v3 = vld [vmem:[#allocation5 + $0xe0] ss:$16 sps:$4 sm:$0xff]   ;;  %v5648_v56 = vld [vmem:[#allocation5 + $0xe8] ss:$16 sps:$4 sm:$0xff]  }
 0x7bb   :  { %6668 = vst [vmem:[#allocation15_spill] sm:$0xff] %v5645_v3  ;;  %6669 = vst [vmem:[#allocation16_spill] sm:$0xff] %v5648_v56 }
 0x7bd   :  { %2439 = vmatpush1.bf16.msra.mxu0 %v5633_v58  ;;  %2480 = vmatpush1.bf16.msra.mxu1 %v5636_v62  ;;  %v5651_v58 = vld [vmem:[#allocation5 + $0x104] ss:$16 sps:$4 sm:$0xff]   ;;  %v5654_v62 = vld [vmem:[#allocation5 + $0x10c] ss:$16 sps:$4 sm:$0xff]  }
 0x7be   :  { %2440 = vmatprep.subr.bf16.mxu0 %v5639_v0  ;;  %2481 = vmatprep.subr.bf16.mxu1 %v5642_v2  ;;  %6670 = vst [vmem:[#allocation17_spill] sm:$0xff] %v5651_v58  ;;  %6671 = vst [vmem:[#allocation18_spill] sm:$0xff] %v5654_v62  ;;  %v5657_v0 = vld [vmem:[#allocation5 + $0x100] ss:$16 sps:$4 sm:$0xff]   ;;  %v5660_v2 = vld [vmem:[#allocation5 + $0x108] ss:$16 sps:$4 sm:$0xff]  }
 0x7bf   :  { %6672 = vst [vmem:[#allocation19_spill] sm:$0xff] %v5657_v0  ;;  %6673 = vst [vmem:[#allocation20_spill] sm:$0xff] %v5660_v2 }
 0x7c1   :  { %2441 = vmatpush1.bf16.msra.mxu0 %v5645_v3  ;;  %2482 = vmatpush1.bf16.msra.mxu1 %v5648_v56  ;;  %v5663_v3 = vld [vmem:[#allocation5 + $0x124] ss:$16 sps:$4 sm:$0xff]   ;;  %v5666_v56 = vld [vmem:[#allocation5 + $0x12c] ss:$16 sps:$4 sm:$0xff]  }
 0x7c2   :  { %2442 = vmatprep.subr.bf16.mxu0 %v5651_v58  ;;  %2483 = vmatprep.subr.bf16.mxu1 %v5654_v62  ;;  %6674 = vst [vmem:[#allocation21_spill] sm:$0xff] %v5663_v3  ;;  %6675 = vst [vmem:[#allocation22_spill] sm:$0xff] %v5666_v56  ;;  %v5669_v58 = vld [vmem:[#allocation5 + $0x120] ss:$16 sps:$4 sm:$0xff]   ;;  %v5672_v62 = vld [vmem:[#allocation5 + $0x128] ss:$16 sps:$4 sm:$0xff]  }
 0x7c3   :  { %6676 = vst [vmem:[#allocation23_spill] sm:$0xff] %v5669_v58  ;;  %6677 = vst [vmem:[#allocation24_spill] sm:$0xff] %v5672_v62 }
 0x7c5   :  { %2443 = vmatpush1.bf16.msra.mxu0 %v5657_v0  ;;  %2484 = vmatpush1.bf16.msra.mxu1 %v5660_v2  ;;  %v5675_v0 = vld [vmem:[#allocation5 + $0x144] ss:$16 sps:$4 sm:$0xff]   ;;  %v5678_v2 = vld [vmem:[#allocation5 + $0x14c] ss:$16 sps:$4 sm:$0xff]  }
 0x7c6   :  { %2444 = vmatprep.subr.bf16.mxu0 %v5663_v3  ;;  %2485 = vmatprep.subr.bf16.mxu1 %v5666_v56  ;;  %6678 = vst [vmem:[#allocation25_spill] sm:$0xff] %v5675_v0  ;;  %6679 = vst [vmem:[#allocation26_spill] sm:$0xff] %v5678_v2  ;;  %v5681_v3 = vld [vmem:[#allocation5 + $0x140] ss:$16 sps:$4 sm:$0xff]   ;;  %v5684_v56 = vld [vmem:[#allocation5 + $0x148] ss:$16 sps:$4 sm:$0xff]  }
 0x7c7   :  { %6680 = vst [vmem:[#allocation27_spill] sm:$0xff] %v5681_v3  ;;  %6681 = vst [vmem:[#allocation28_spill] sm:$0xff] %v5684_v56 }
 0x7c9   :  { %2445 = vmatpush1.bf16.msra.mxu0 %v5669_v58  ;;  %2486 = vmatpush1.bf16.msra.mxu1 %v5672_v62  ;;  %v5687_v58 = vld [vmem:[#allocation5 + $0x164] ss:$16 sps:$4 sm:$0xff]   ;;  %v5690_v62 = vld [vmem:[#allocation5 + $0x16c] ss:$16 sps:$4 sm:$0xff]  }
 0x7ca   :  { %2446 = vmatprep.subr.bf16.mxu0 %v5675_v0  ;;  %2487 = vmatprep.subr.bf16.mxu1 %v5678_v2  ;;  %6682 = vst [vmem:[#allocation29_spill] sm:$0xff] %v5687_v58  ;;  %6683 = vst [vmem:[#allocation30_spill] sm:$0xff] %v5690_v62  ;;  %v5693_v0 = vld [vmem:[#allocation5 + $0x160] ss:$16 sps:$4 sm:$0xff]   ;;  %v5696_v2 = vld [vmem:[#allocation5 + $0x168] ss:$16 sps:$4 sm:$0xff]  }
 0x7cb   :  { %6684 = vst [vmem:[#allocation31_spill] sm:$0xff] %v5693_v0  ;;  %6685 = vst [vmem:[#allocation32_spill] sm:$0xff] %v5696_v2 }
 0x7cd   :  { %2447 = vmatpush1.bf16.msra.mxu0 %v5681_v3  ;;  %2488 = vmatpush1.bf16.msra.mxu1 %v5684_v56  ;;  %v5699_v3 = vld [vmem:[#allocation5 + $0x184] ss:$16 sps:$4 sm:$0xff]   ;;  %v5702_v56 = vld [vmem:[#allocation5 + $0x18c] ss:$16 sps:$4 sm:$0xff]  }
 0x7ce   :  { %2448 = vmatprep.subr.bf16.mxu0 %v5687_v58  ;;  %2489 = vmatprep.subr.bf16.mxu1 %v5690_v62  ;;  %6686 = vst [vmem:[#allocation33_spill] sm:$0xff] %v5699_v3  ;;  %6687 = vst [vmem:[#allocation34_spill] sm:$0xff] %v5702_v56  ;;  %v5705_v58 = vld [vmem:[#allocation5 + $0x180] ss:$16 sps:$4 sm:$0xff]   ;;  %v5708_v62 = vld [vmem:[#allocation5 + $0x188] ss:$16 sps:$4 sm:$0xff]  }
 0x7cf   :  { %6688 = vst [vmem:[#allocation35_spill] sm:$0xff] %v5705_v58  ;;  %6689 = vst [vmem:[#allocation36_spill] sm:$0xff] %v5708_v62 }
 0x7d1   :  { %2449 = vmatpush1.bf16.msra.mxu0 %v5693_v0  ;;  %2490 = vmatpush1.bf16.msra.mxu1 %v5696_v2  ;;  %v5711_v0 = vld [vmem:[#allocation5 + $0x1a4] ss:$16 sps:$4 sm:$0xff]   ;;  %v5714_v2 = vld [vmem:[#allocation5 + $0x1ac] ss:$16 sps:$4 sm:$0xff]  }
 0x7d2   :  { %2450 = vmatprep.subr.bf16.mxu0 %v5699_v3  ;;  %2491 = vmatprep.subr.bf16.mxu1 %v5702_v56  ;;  %6690 = vst [vmem:[#allocation37_spill] sm:$0xff] %v5711_v0  ;;  %6691 = vst [vmem:[#allocation38_spill] sm:$0xff] %v5714_v2  ;;  %v5717_v3 = vld [vmem:[#allocation5 + $0x1a0] ss:$16 sps:$4 sm:$0xff]   ;;  %v5720_v56 = vld [vmem:[#allocation5 + $0x1a8] ss:$16 sps:$4 sm:$0xff]  }
 0x7d3   :  { %6692 = vst [vmem:[#allocation39_spill] sm:$0xff] %v5717_v3  ;;  %6693 = vst [vmem:[#allocation40_spill] sm:$0xff] %v5720_v56 }
 0x7d5   :  { %2451 = vmatpush1.bf16.msra.mxu0 %v5705_v58  ;;  %2492 = vmatpush1.bf16.msra.mxu1 %v5708_v62  ;;  %v5723_v58 = vld [vmem:[#allocation5 + $0x1c4] ss:$16 sps:$4 sm:$0xff]   ;;  %v5726_v62 = vld [vmem:[#allocation5 + $0x1cc] ss:$16 sps:$4 sm:$0xff]  }
 0x7d6   :  { %2452 = vmatprep.subr.bf16.mxu0 %v5711_v0  ;;  %2493 = vmatprep.subr.bf16.mxu1 %v5714_v2  ;;  %6694 = vst [vmem:[#allocation41_spill] sm:$0xff] %v5723_v58  ;;  %6695 = vst [vmem:[#allocation42_spill] sm:$0xff] %v5726_v62  ;;  %v5729_v0 = vld [vmem:[#allocation5 + $0x1c0] ss:$16 sps:$4 sm:$0xff]   ;;  %v5732_v2 = vld [vmem:[#allocation5 + $0x1c8] ss:$16 sps:$4 sm:$0xff]  }
 0x7d7   :  { %6696 = vst [vmem:[#allocation43_spill] sm:$0xff] %v5729_v0  ;;  %6697 = vst [vmem:[#allocation44_spill] sm:$0xff] %v5732_v2 }
 0x7d9   :  { %2453 = vmatpush1.bf16.msra.mxu0 %v5717_v3  ;;  %2494 = vmatpush1.bf16.msra.mxu1 %v5720_v56  ;;  %v5735_v3 = vld [vmem:[#allocation5 + $0x1e4] ss:$16 sps:$4 sm:$0xff]   ;;  %v5738_v56 = vld [vmem:[#allocation5 + $0x1ec] ss:$16 sps:$4 sm:$0xff]  }
 0x7da   :  { %2454 = vmatprep.subr.bf16.mxu0 %v5723_v58  ;;  %2495 = vmatprep.subr.bf16.mxu1 %v5726_v62  ;;  %6698 = vst [vmem:[#allocation45_spill] sm:$0xff] %v5735_v3  ;;  %6699 = vst [vmem:[#allocation46_spill] sm:$0xff] %v5738_v56  ;;  %v5741_v58 = vld [vmem:[#allocation5 + $0x1e0] ss:$16 sps:$4 sm:$0xff]   ;;  %v5744_v62 = vld [vmem:[#allocation5 + $0x1e8] ss:$16 sps:$4 sm:$0xff]  }
 0x7db   :  { %6700 = vst [vmem:[#allocation47_spill] sm:$0xff] %v5741_v58  ;;  %6701 = vst [vmem:[#allocation48_spill] sm:$0xff] %v5744_v62 }
 0x7dd   :  { %2455 = vmatpush1.bf16.msra.mxu0 %v5729_v0  ;;  %2496 = vmatpush1.bf16.msra.mxu1 %v5732_v2 }
 0x7de   :  { %2456 = vmatprep.subr.bf16.mxu0 %v5735_v3  ;;  %2497 = vmatprep.subr.bf16.mxu1 %v5738_v56 }
 0x7e1   :  { %2457 = vmatpush1.bf16.msra.mxu0 %v5741_v58  ;;  %2498 = vmatpush1.bf16.msra.mxu1 %v5744_v62 }
 0x7e2   :  { %2532 = vmatprep.subr.bf16.mxu0 %v5342_v52  ;;  %2573 = vmatprep.subr.bf16.mxu1 %v5348_v37 }
 0x857   :  { %v2242_v2 = vpop.f32.mrb[60].mxu0  ;;  %v2283_v0 = vpop.f32.mrb[60].mxu1 }
 0x858   :  { %v2243_v3 = vadd.f32 %v2242_v2, %v6640_v51  ;;  %v2244_v46 = vpop.f32.mrb[61].mxu0  ;;  %v2285_v4 = vpop.f32.mrb[61].mxu1  ;;  %v2284_v52 = vadd.f32 %v2283_v0, %v6642_v9  ;;  %v6705_v9 = vld [vmem:[#allocation88_spill] sm:$0xff] }
 0x859   :  { %v2245_v56 = vadd.f32 %v2244_v46, %v6641_v8  ;;  %v2246_v53 = vpop.f32.mrb[62].mxu0  ;;  %v2287_v38 = vpop.f32.mrb[62].mxu1  ;;  %v2286_v37 = vadd.f32 %v2285_v4, %v6643_v11 }
 0x85a   :  { %v3057_v50 = vmul.f32 -1.442695, %v2243_v3  ;;  %v2247_v58 = vpop.f32.mrb[63].mxu0  ;;  %v2288_v42 = vpop.f32.mrb[63].mxu1  ;;  %v3059_v62 = vmul.f32 -1.442695, %v2284_v52 }
 0x85b   :  { %v3058_v61 = vmul.f32 -1.442695, %v2245_v56  ;;  %v6702_v52 = vld [vmem:[#allocation85_spill] sm:$0xff] }
 0x85c   :  { %3549 = vpow2.f32 %v3057_v50 }
 0x85d   :  { %3551 = vpow2.f32 %v3058_v61 }
 0x85e   :  { %3553 = vtanh.f32 %v2286_v37  ;;  %v6703_v37 = vld [vmem:[#allocation86_spill] sm:$0xff] }
 0x85f   :  { %3555 = vpow2.f32 %v3059_v62 }
 0x866   :  { %v3550_v40 = vpop.eup %3549 }
 0x867   :  { %v2293_v48 = vadd.f32 1.0, %v3550_v40  ;;  %v3552_v2 = vpop.eup %3551 }
 0x868   :  { %v2299_v46 = vadd.f32 1.0, %v3552_v2  ;;  %v3554_v38 = vpop.eup %3553  ;;  %v6704_v2 = vld [vmem:[#allocation87_spill] sm:$0xff] }
 0x869   :  { %3557 = vrcp.f32 %v2293_v48  ;;  %v3556_v53 = vpop.eup %3555 }
 0x86a   :  { %3559 = vrcp.f32 %v2299_v46  ;;  %v2305_v50 = vadd.f32 1.0, %v3556_v53 }
 0x86c   :  { %3561 = vrcp.f32 %v2305_v50 }
 0x873   :  { %v3558_v58 = vpop.eup %3557 }
 0x874   :  { %v2310_v42 = vmul.f32 %v3558_v58, %v3554_v38  ;;  %v3560_v56 = vpop.eup %3559 }
 0x875   :  { %v2309_v61 = vmul.f32 %v3560_v56, %v5356_v31 }
 0x876   :  { %v3562_v56 = vpop.eup %3561 }
 0x877   :  { %v2348_v0 = vpop.f32.mrb[64].mxu0  ;;  %v2389_v3 = vpop.f32.mrb[64].mxu1  ;;  %v5754_v4 = vadd.f32 %v2310_v42, %v2309_v61 }
 0x878   :  { %v2396_v40 = vadd.f32 %v2348_v0, %v6702_v52  ;;  %v2398_v11 = vadd.f32 %v2389_v3, %v6703_v37  ;;  %v2350_v62 = vpop.f32.mrb[65].mxu0  ;;  %v2391_v48 = vpop.f32.mrb[65].mxu1 }
 0x879   :  { %v2397_v46 = vadd.f32 %v2350_v62, %v6704_v2  ;;  %v2399_v8 = vadd.f32 %v2391_v48, %v6705_v9  ;;  %v2352_v38 = vpop.f32.mrb[66].mxu0  ;;  %v2393_v58 = vpop.f32.mrb[66].mxu1  ;;  %3563 = vtanh.f32 %v5754_v4 }
 0x87a   :  { %v3060_v53 = vmul.f32 -1.442695, %v2396_v40  ;;  %v2353_v51 = vpop.f32.mrb[67].mxu0  ;;  %v2394_v31 = vpop.f32.mrb[67].mxu1  ;;  %v3062_v0 = vmul.f32 -1.442695, %v2398_v11 }
 0x87b   :  { %v3061_v42 = vmul.f32 -1.442695, %v2397_v46 }
 0x87c   :  { %3565 = vpow2.f32 %v3060_v53 }
 0x87d   :  { %3567 = vpow2.f32 %v3061_v42 }
 0x87e   :  { %3569 = vtanh.f32 %v2399_v8 }
 0x87f   :  { %3571 = vpow2.f32 %v3062_v0  ;;  %v6750_v0 = vld [vmem:[#allocation39_spill] sm:$0xff] }
 0x883   :  { %v3564_v61 = vpop.eup %3563 }
 0x884   :  { %v2313_v3 = vmul.f32 %v3564_v61, %v3562_v56  ;;  %v6748_v56 = vld [vmem:[#allocation37_spill] sm:$0xff]  ;;  %v6749_v61 = vld [vmem:[#allocation38_spill] sm:$0xff] }
 0x886   :  { %v3566_v52 = vpop.eup %3565  ;;  %v2425_v37 = vpack.c.bf16 %v2313_v3, %v2313_v3  ;;  %v6751_v3 = vld [vmem:[#allocation40_spill] sm:$0xff] }
 0x887   :  { %v2403_v50 = vadd.f32 1.0, %v3566_v52  ;;  %v3568_v62 = vpop.eup %3567  ;;  %v6752_v52 = vld [vmem:[#allocation41_spill] sm:$0xff] }
 0x888   :  { %v2409_v9 = vadd.f32 1.0, %v3568_v62  ;;  %2458 = vmatprep.mubr.bf16.mxu0 %v2425_v37  ;;  %2499 = vmatprep.mubr.bf16.mxu1 %v2425_v37  ;;  %v3570_v51 = vpop.eup %3569  ;;  %v6754_v37 = vld [vmem:[#allocation43_spill] sm:$0xff]  ;;  %v6755_v62 = vld [vmem:[#allocation44_spill] sm:$0xff] }
 0x889   :  { %3573 = vrcp.f32 %v2403_v50  ;;  %v3572_v40 = vpop.eup %3571  ;;  %v6753_v50 = vld [vmem:[#allocation42_spill] sm:$0xff] }
 0x88a   :  { %3575 = vrcp.f32 %v2409_v9  ;;  %v2415_v38 = vadd.f32 1.0, %v3572_v40  ;;  %v6756_v9 = vld [vmem:[#allocation45_spill] sm:$0xff]  ;;  %v6758_v40 = vld [vmem:[#allocation47_spill] sm:$0xff] }
 0x88c   :  { %3577 = vrcp.f32 %v2415_v38 }
 0x893   :  { %v3574_v48 = vpop.eup %3573 }
 0x894   :  { %v2420_v2 = vmul.f32 %v3574_v48, %v3570_v51  ;;  %v3576_v46 = vpop.eup %3575  ;;  %v6757_v51 = vld [vmem:[#allocation46_spill] sm:$0xff]  ;;  %v6759_v48 = vld [vmem:[#allocation48_spill] sm:$0xff] }
 0x895   :  { %v2419_v11 = vmul.f32 %v3576_v46, %v5364_v59  ;;  %v6707_v59 = vld [vmem:[#allocation69_spill] sm:$0xff] }
 0x896   :  { %v3578_v8 = vpop.eup %3577 }
 0x897   :  { %v5762_v58 = vadd.f32 %v2420_v2, %v2419_v11  ;;  %v6760_v2 = vmov 0.0|0.0   ;;  %v6761_v11 = vld [vmem:[#allocation10_spill] sm:$0xff] }
 0x899   :  { %3579 = vtanh.f32 %v5762_v58 }
 0x8a3   :  { %v3580_v53 = vpop.eup %3579 }
 0x8a4   :  { %v2423_v31 = vmul.f32 %v3580_v53, %v3578_v8 }
 0x8a6   :  { %v2424_v42 = vpack.c.bf16 %v2423_v31, %v2423_v31 }
 0x8a8   :  { %2459 = vmatmul.mubr.bf16.vlgmr.msra.gmra.mrb[68].mxu0 %v2424_v42  ;;  %2500 = vmatmul.mubr.bf16.vlgmr.msra.gmra.mrb[68].mxu1 %v2424_v42 }
 0x8a9   :  { %2533 = vmatpush1.bf16.msra.mxu0 %v5374_v5  ;;  %2574 = vmatpush1.bf16.msra.mxu1 %v5380_v49  ;;  %v6708_v5 = vld [vmem:[#allocation70_spill] sm:$0xff]  ;;  %v6709_v49 = vld [vmem:[#allocation71_spill] sm:$0xff] }
 0x8aa   :  { %2534 = vmatprep.subr.bf16.mxu0 %v5386_v6  ;;  %2575 = vmatprep.subr.bf16.mxu1 %v5392_v10  ;;  %v6710_v6 = vld [vmem:[#allocation72_spill] sm:$0xff]  ;;  %v6711_v10 = vld [vmem:[#allocation73_spill] sm:$0xff] }
 0x8ab   :  { %2564 = vmatprep.mubr.bf16.mxu0 %v6336_v1  ;;  %2605 = vmatprep.mubr.bf16.mxu1 %v6336_v1  ;;  %v6706_v1 = vld [vmem:[#allocation64_spill] sm:$0xff] }
 0x8ad   :  { %2535 = vmatpush1.bf16.msra.mxu0 %v5400_v12  ;;  %2576 = vmatpush1.bf16.msra.mxu1 %v5406_v14  ;;  %v6712_v12 = vld [vmem:[#allocation74_spill] sm:$0xff]  ;;  %v6713_v14 = vld [vmem:[#allocation75_spill] sm:$0xff] }
 0x8ae   :  { %2536 = vmatprep.subr.bf16.mxu0 %v5412_v15  ;;  %2577 = vmatprep.subr.bf16.mxu1 %v5418_v16  ;;  %v6714_v15 = vld [vmem:[#allocation76_spill] sm:$0xff]  ;;  %v6715_v16 = vld [vmem:[#allocation65_spill] sm:$0xff] }
 0x8b1   :  { %2537 = vmatpush1.bf16.msra.mxu0 %v5424_v17  ;;  %2578 = vmatpush1.bf16.msra.mxu1 %v5430_v19  ;;  %v6716_v17 = vld [vmem:[#allocation66_spill] sm:$0xff]  ;;  %v6717_v19 = vld [vmem:[#allocation77_spill] sm:$0xff] }
 0x8b2   :  { %2538 = vmatprep.subr.bf16.mxu0 %v5436_v20  ;;  %2579 = vmatprep.subr.bf16.mxu1 %v5442_v22  ;;  %v6718_v20 = vld [vmem:[#allocation78_spill] sm:$0xff]  ;;  %v6719_v22 = vld [vmem:[#allocation79_spill] sm:$0xff] }
 0x8b5   :  { %2539 = vmatpush1.bf16.msra.mxu0 %v5448_v24  ;;  %2580 = vmatpush1.bf16.msra.mxu1 %v5454_v25  ;;  %v6720_v24 = vld [vmem:[#allocation80_spill] sm:$0xff]  ;;  %v6721_v25 = vld [vmem:[#allocation67_spill] sm:$0xff] }
 0x8b6   :  { %2540 = vmatprep.subr.bf16.mxu0 %v5460_v26  ;;  %2581 = vmatprep.subr.bf16.mxu1 %v5466_v27  ;;  %v6722_v26 = vld [vmem:[#allocation68_spill] sm:$0xff] }
 0x8b7   :  { %v6723_v27 = vld [vmem:[#allocation12_spill] sm:$0xff] }
 0x8b9   :  { %2541 = vmatpush1.bf16.msra.mxu0 %v5472_v28  ;;  %2582 = vmatpush1.bf16.msra.mxu1 %v5478_v29  ;;  %v6724_v28 = vld [vmem:[#allocation13_spill] sm:$0xff]  ;;  %v6725_v29 = vld [vmem:[#allocation14_spill] sm:$0xff] }
 0x8ba   :  { %2542 = vmatprep.subr.bf16.mxu0 %v5484_v30  ;;  %2583 = vmatprep.subr.bf16.mxu1 %v5490_v32  ;;  %v6726_v30 = vld [vmem:[#allocation15_spill] sm:$0xff]  ;;  %v6727_v32 = vld [vmem:[#allocation16_spill] sm:$0xff] }
 0x8bd   :  { %2543 = vmatpush1.bf16.msra.mxu0 %v5496_v33  ;;  %2584 = vmatpush1.bf16.msra.mxu1 %v5502_v34  ;;  %v6728_v33 = vld [vmem:[#allocation17_spill] sm:$0xff]  ;;  %v6729_v34 = vld [vmem:[#allocation18_spill] sm:$0xff] }
 0x8be   :  { %2544 = vmatprep.subr.bf16.mxu0 %v5508_v35  ;;  %2585 = vmatprep.subr.bf16.mxu1 %v5514_v36  ;;  %v6730_v35 = vld [vmem:[#allocation19_spill] sm:$0xff]  ;;  %v6731_v36 = vld [vmem:[#allocation20_spill] sm:$0xff] }
 0x8c1   :  { %2545 = vmatpush1.bf16.msra.mxu0 %v5520_v54  ;;  %2586 = vmatpush1.bf16.msra.mxu1 %v5526_v39  ;;  %v6732_v54 = vld [vmem:[#allocation21_spill] sm:$0xff]  ;;  %v6733_v39 = vld [vmem:[#allocation22_spill] sm:$0xff] }
 0x8c2   :  { %2546 = vmatprep.subr.bf16.mxu0 %v5532_v41  ;;  %2587 = vmatprep.subr.bf16.mxu1 %v5538_v57  ;;  %v6734_v41 = vld [vmem:[#allocation23_spill] sm:$0xff]  ;;  %v6735_v57 = vld [vmem:[#allocation24_spill] sm:$0xff] }
 0x8c5   :  { %2547 = vmatpush1.bf16.msra.mxu0 %v5544_v45  ;;  %2588 = vmatpush1.bf16.msra.mxu1 %v5550_v43  ;;  %v6736_v45 = vld [vmem:[#allocation25_spill] sm:$0xff]  ;;  %v6737_v43 = vld [vmem:[#allocation26_spill] sm:$0xff] }
 0x8c6   :  { %2644 = vmatprep.subr.bf16.mxu0 %v5553_v44  ;;  %2685 = vmatprep.subr.bf16.mxu1 %v5556_v47  ;;  %v6738_v44 = vld [vmem:[#allocation27_spill] sm:$0xff]  ;;  %v6739_v47 = vld [vmem:[#allocation28_spill] sm:$0xff] }
 0x8c8   :  { %2565 = vmatmul.mubr.bf16.vlgmr.msra.gmra.mrb[72].mxu0 %v2424_v42  ;;  %2606 = vmatmul.mubr.bf16.vlgmr.msra.gmra.mrb[72].mxu1 %v2424_v42  ;;  %v6762_v42 = vld [vmem:[#allocation93_spill] sm:$0xff] }
 0x8c9   :  { %2645 = vmatpush1.bf16.msra.mxu0 %v5561_v63  ;;  %2686 = vmatpush1.bf16.msra.mxu1 %v5564_v13  ;;  %v6740_v63 = vld [vmem:[#allocation29_spill] sm:$0xff]  ;;  %v6741_v13 = vld [vmem:[#allocation30_spill] sm:$0xff] }
 0x8ca   :  { %2646 = vmatprep.subr.bf16.mxu0 %v5567_v23  ;;  %2687 = vmatprep.subr.bf16.mxu1 %v5570_v55  ;;  %v6742_v23 = vld [vmem:[#allocation31_spill] sm:$0xff]  ;;  %v6743_v55 = vld [vmem:[#allocation32_spill] sm:$0xff] }
 0x8cd   :  { %2647 = vmatpush1.bf16.msra.mxu0 %v5573_v21  ;;  %2688 = vmatpush1.bf16.msra.mxu1 %v5576_v7  ;;  %v6744_v21 = vld [vmem:[#allocation33_spill] sm:$0xff]  ;;  %v6745_v7 = vld [vmem:[#allocation34_spill] sm:$0xff] }
 0x8ce   :  { %2648 = vmatprep.subr.bf16.mxu0 %v5579_v60  ;;  %2689 = vmatprep.subr.bf16.mxu1 %v5582_v18  ;;  %v6746_v60 = vld [vmem:[#allocation35_spill] sm:$0xff]  ;;  %v6747_v18 = vld [vmem:[#allocation36_spill] sm:$0xff] }
 0x8d1   :  { %2649 = vmatpush1.bf16.msra.mxu0 %v6706_v1  ;;  %2690 = vmatpush1.bf16.msra.mxu1 %v6707_v59 }
 0x8d2   :  { %2650 = vmatprep.subr.bf16.mxu0 %v6708_v5  ;;  %2691 = vmatprep.subr.bf16.mxu1 %v6709_v49 }
 0x8d5   :  { %2651 = vmatpush1.bf16.msra.mxu0 %v6710_v6  ;;  %2692 = vmatpush1.bf16.msra.mxu1 %v6711_v10 }
 0x8d6   :  { %2652 = vmatprep.subr.bf16.mxu0 %v6712_v12  ;;  %2693 = vmatprep.subr.bf16.mxu1 %v6713_v14  ;;  %v6763_v14 = vld [vmem:[#allocation94_spill] sm:$0xff] }
 0x8d9   :  { %2653 = vmatpush1.bf16.msra.mxu0 %v6714_v15  ;;  %2694 = vmatpush1.bf16.msra.mxu1 %v6715_v16  ;;  %v6764_v16 = vld [vmem:[#allocation95_spill] sm:$0xff] }
 0x8da   :  { %2654 = vmatprep.subr.bf16.mxu0 %v6716_v17  ;;  %2695 = vmatprep.subr.bf16.mxu1 %v6717_v19 }
 0x8dd   :  { %2655 = vmatpush1.bf16.msra.mxu0 %v6718_v20  ;;  %2696 = vmatpush1.bf16.msra.mxu1 %v6719_v22 }
 0x8de   :  { %2656 = vmatprep.subr.bf16.mxu0 %v6720_v24  ;;  %2697 = vmatprep.subr.bf16.mxu1 %v6721_v25 }
 0x8e1   :  { %2657 = vmatpush1.bf16.msra.mxu0 %v6722_v26  ;;  %2698 = vmatpush1.bf16.msra.mxu1 %v6723_v27 }
 0x8e2   :  { %2658 = vmatprep.subr.bf16.mxu0 %v6724_v28  ;;  %2699 = vmatprep.subr.bf16.mxu1 %v6725_v29 }
 0x8e5   :  { %2659 = vmatpush1.bf16.msra.mxu0 %v6726_v30  ;;  %2700 = vmatpush1.bf16.msra.mxu1 %v6727_v32 }
 0x8e6   :  { %2660 = vmatprep.subr.bf16.mxu0 %v6728_v33  ;;  %2701 = vmatprep.subr.bf16.mxu1 %v6729_v34 }
 0x8e9   :  { %2661 = vmatpush1.bf16.msra.mxu0 %v6730_v35  ;;  %2702 = vmatpush1.bf16.msra.mxu1 %v6731_v36 }
 0x8ea   :  { %2662 = vmatprep.subr.bf16.mxu0 %v6732_v54  ;;  %2703 = vmatprep.subr.bf16.mxu1 %v6733_v39  ;;  %v6765_v54 = vld [vmem:[#allocation89_spill] sm:$0xff] }
 0x8ed   :  { %2663 = vmatpush1.bf16.msra.mxu0 %v6734_v41  ;;  %2704 = vmatpush1.bf16.msra.mxu1 %v6735_v57  ;;  %v6766_v41 = vld [vmem:[#allocation90_spill] sm:$0xff] }
 0x8ee   :  { %2664 = vmatprep.subr.bf16.mxu0 %v6736_v45  ;;  %2705 = vmatprep.subr.bf16.mxu1 %v6737_v43 }
 0x8f1   :  { %2665 = vmatpush1.bf16.msra.mxu0 %v6738_v44  ;;  %2706 = vmatpush1.bf16.msra.mxu1 %v6739_v47  ;;  %v6767_v44 = vld [vmem:[#allocation91_spill] sm:$0xff] }
 0x8f2   :  { %2666 = vmatprep.subr.bf16.mxu0 %v6740_v63  ;;  %2707 = vmatprep.subr.bf16.mxu1 %v6741_v13  ;;  %v6768_v63 = vld [vmem:[#allocation92_spill] sm:$0xff] }
 0x8f5   :  { %2667 = vmatpush1.bf16.msra.mxu0 %v6742_v23  ;;  %2708 = vmatpush1.bf16.msra.mxu1 %v6743_v55 }
 0x8f6   :  { %2668 = vmatprep.subr.bf16.mxu0 %v6744_v21  ;;  %2709 = vmatprep.subr.bf16.mxu1 %v6745_v7 }
 0x8f9   :  { %2669 = vmatpush1.bf16.msra.mxu0 %v6746_v60  ;;  %2710 = vmatpush1.bf16.msra.mxu1 %v6747_v18 }
 0x8fa   :  { %2670 = vmatprep.subr.bf16.mxu0 %v6748_v56  ;;  %2711 = vmatprep.subr.bf16.mxu1 %v6749_v61 }
 0x8fd   :  { %2671 = vmatpush1.bf16.msra.mxu0 %v6750_v0  ;;  %2712 = vmatpush1.bf16.msra.mxu1 %v6751_v3 }
 0x8fe   :  { %2672 = vmatprep.subr.bf16.mxu0 %v6752_v52  ;;  %2713 = vmatprep.subr.bf16.mxu1 %v6753_v50 }
 0x901   :  { %2673 = vmatpush1.bf16.msra.mxu0 %v6754_v37  ;;  %2714 = vmatpush1.bf16.msra.mxu1 %v6755_v62 }
 0x902   :  { %2674 = vmatprep.subr.bf16.mxu0 %v6756_v9  ;;  %2715 = vmatprep.subr.bf16.mxu1 %v6757_v51 }
 0x905   :  { %2675 = vmatpush1.bf16.msra.mxu0 %v6758_v40  ;;  %2716 = vmatpush1.bf16.msra.mxu1 %v6759_v48 }
 0x906   :  { %3190 = vmatprep.subr.bf16.mxu0 %v6760_v2 }
 0x97b   :  { %v2460_v46 = vpop.f32.mrb[68].mxu0  ;;  %v2501_v38 = vpop.f32.mrb[68].mxu1 }
 0x97c   :  { %v2461_v8 = vadd.f32 %v2460_v46, %v6761_v11  ;;  %v2462_v53 = vpop.f32.mrb[69].mxu0  ;;  %v2503_v31 = vpop.f32.mrb[69].mxu1  ;;  %v2502_v15 = vadd.f32 %v2501_v38, %v6763_v14 }
 0x97d   :  { %v2463_v1 = vadd.f32 %v2462_v53, %v6762_v42  ;;  %v2464_v59 = vpop.f32.mrb[70].mxu0  ;;  %v2505_v5 = vpop.f32.mrb[70].mxu1  ;;  %v2504_v17 = vadd.f32 %v2503_v31, %v6764_v16 }
 0x97e   :  { %v3063_v49 = vmul.f32 -1.442695, %v2461_v8  ;;  %v2465_v6 = vpop.f32.mrb[71].mxu0  ;;  %v2506_v10 = vpop.f32.mrb[71].mxu1  ;;  %v3065_v19 = vmul.f32 -1.442695, %v2502_v15 }
 0x97f   :  { %v3064_v12 = vmul.f32 -1.442695, %v2463_v1  ;;  %v2751_v6 = vld [vmem:[%s5952_s6 + $0x8] sm:$0xff] }
 0x980   :  { %3581 = vpow2.f32 %v3063_v49  ;;  %v2750_v49 = vld [vmem:[%s5952_s6] sm:$0xff] }
 0x981   :  { %3583 = vpow2.f32 %v3064_v12  ;;  %v3191_v10 = vpack.c.bf16 %v2751_v6, %v2750_v49  ;;  %v2753_v12 = vld [vmem:[%s5952_s6 + $0x18] sm:$0xff] }
 0x982   :  { %3585 = vtanh.f32 %v2504_v17  ;;  %v2754_v17 = vld [vmem:[%s5952_s6 + $0x20] sm:$0xff] }
 0x983   :  { %3587 = vpow2.f32 %v3065_v19  ;;  %v2755_v19 = vld [vmem:[%s5952_s6 + $0x28] sm:$0xff] }
 0x98a   :  { %v3582_v20 = vpop.eup %3581 }
 0x98b   :  { %v2511_v22 = vadd.f32 1.0, %v3582_v20  ;;  %v3584_v24 = vpop.eup %3583  ;;  %v3197_v20 = vpack.c.bf16 %v2755_v19, %v2754_v17 }
 0x98c   :  { %v2517_v25 = vadd.f32 1.0, %v3584_v24  ;;  %v3586_v26 = vpop.eup %3585  ;;  %v2757_v24 = vld [vmem:[%s5952_s6 + $0x38] sm:$0xff] }
 0x98d   :  { %3589 = vrcp.f32 %v2511_v22  ;;  %v3588_v27 = vpop.eup %3587  ;;  %v2756_v22 = vld [vmem:[%s5952_s6 + $0x30] sm:$0xff] }
 0x98e   :  { %3591 = vrcp.f32 %v2517_v25  ;;  %v2523_v32 = vadd.f32 1.0, %v3588_v27  ;;  %v3200_v25 = vpack.c.bf16 %v2757_v24, %v2756_v22  ;;  %v2759_v27 = vld [vmem:[%s5952_s6 + $0x48] sm:$0xff] }
 0x990   :  { %3593 = vrcp.f32 %v2523_v32 }
 0x997   :  { %v3590_v28 = vpop.eup %3589 }
 0x998   :  { %v2528_v29 = vmul.f32 %v3590_v28, %v3586_v26  ;;  %v3592_v30 = vpop.eup %3591  ;;  %v2758_v26 = vld [vmem:[%s5952_s6 + $0x40] sm:$0xff] }
 0x999   :  { %v2527_v33 = vmul.f32 %v3592_v30, %v5754_v4  ;;  %v3203_v28 = vpack.c.bf16 %v2759_v27, %v2758_v26  ;;  %v2761_v30 = vld [vmem:[%s5952_s6 + $0x58] sm:$0xff] }
 0x99a   :  { %v3594_v18 = vpop.eup %3593 }
 0x99b   :  { %v2566_v34 = vpop.f32.mrb[72].mxu0  ;;  %v2607_v35 = vpop.f32.mrb[72].mxu1  ;;  %v5867_v36 = vadd.f32 %v2528_v29, %v2527_v33  ;;  %v2760_v29 = vld [vmem:[%s5952_s6 + $0x50] sm:$0xff]  ;;  %v2762_v33 = vld [vmem:[%s5952_s6 + $0x60] sm:$0xff] }
 0x99c   :  { %v2614_v39 = vadd.f32 %v2566_v34, %v6765_v54  ;;  %v2616_v57 = vadd.f32 %v2607_v35, %v6766_v41  ;;  %v2568_v45 = vpop.f32.mrb[73].mxu0  ;;  %v2609_v43 = vpop.f32.mrb[73].mxu1  ;;  %v3206_v32 = vpack.c.bf16 %v2761_v30, %v2760_v29  ;;  %v2763_v34 = vld [vmem:[%s5952_s6 + $0x68] sm:$0xff]  ;;  %v6769_v35 = vmov 0.0   ;;  %v2765_v41 = vld [vmem:[%s5952_s6 + $0x78] sm:$0xff] }
 0x99d   :  { %v2615_v47 = vadd.f32 %v2568_v45, %v6767_v44  ;;  %v2617_v13 = vadd.f32 %v2609_v43, %v6768_v63  ;;  %v2570_v23 = vpop.f32.mrb[74].mxu0  ;;  %v2611_v55 = vpop.f32.mrb[74].mxu1  ;;  %3595 = vtanh.f32 %v5867_v36  ;;  %v3209_v54 = vpack.c.bf16 %v2763_v34, %v2762_v33  ;;  %v2843_v45 = vld [vmem:[%s5947_s1] sm:$0xff] }
 0x99e   :  { %v3066_v21 = vmul.f32 -1.442695, %v2614_v39  ;;  %v2571_v7 = vpop.f32.mrb[75].mxu0  ;;  %v2612_v4 = vpop.f32.mrb[75].mxu1  ;;  %v3068_v61 = vmul.f32 -1.442695, %v2616_v57 }
 0x99f   :  { %v3067_v60 = vmul.f32 -1.442695, %v2615_v47  ;;  %v2764_v39 = vld [vmem:[%s5952_s6 + $0x70] sm:$0xff]  ;;  %v2844_v43 = vand.u32 2147483647, %v2843_v45  ;;  %v6770_v29 = vld [vmem:[#allocation9_spill] sm:$0xff] }
 0x9a0   :  { %3597 = vpow2.f32 %v3066_v21  ;;  %v3212_v57 = vpack.c.bf16 %v2765_v41, %v2764_v39  ;;  %vm2871_vm12 = vcmp.lt.s32.totalorder %v6770_v29, 2 }
 0x9a1   :  { %3599 = vpow2.f32 %v3067_v60  ;;  %v2846_v44 = vsel %vm2845_vm9, %v2844_v43, 0.0  ;;  %v6771_v43 = vld [vmem:[#allocation11_spill] sm:$0xff] }
 0x9a2   :  { %3601 = vtanh.f32 %v2617_v13  ;;  %2847 = vadd.xlane.f32.xlu0 %v2846_v44  ;;  %vm2888_vm14 = vcmp.eq.s32.totalorder %v6771_v43, 1  ;;  %vm2887_vm15 = vcmp.eq.s32.totalorder %v6771_v43, 0 }
 0x9a3   :  { %3603 = vpow2.f32 %v3068_v61 }
 0x9a7   :  { %v3596_v56 = vpop.eup %3595 }
 0x9a8   :  { %v2531_v0 = vmul.f32 %v3596_v56, %v3594_v18 }
 0x9aa   :  { %v3598_v3 = vpop.eup %3597  ;;  %v2643_v50 = vpack.c.bf16 %v2531_v0, %v2531_v0 }
 0x9ab   :  { %v2621_v52 = vadd.f32 1.0, %v3598_v3  ;;  %v3600_v37 = vpop.eup %3599 }
 0x9ac   :  { %v2627_v62 = vadd.f32 1.0, %v3600_v37  ;;  %2676 = vmatprep.mubr.bf16.mxu0 %v2643_v50  ;;  %2717 = vmatprep.mubr.bf16.mxu1 %v2643_v50  ;;  %v3602_v9 = vpop.eup %3601 }
 0x9ad   :  { %3605 = vrcp.f32 %v2621_v52  ;;  %v3604_v51 = vpop.eup %3603 }
 0x9ae   :  { %3607 = vrcp.f32 %v2627_v62  ;;  %v2633_v38 = vadd.f32 1.0, %v3604_v51 }
 0x9b0   :  { %3609 = vrcp.f32 %v2633_v38 }
 0x9b7   :  { %v3606_v40 = vpop.eup %3605 }
 0x9b8   :  { %v2638_v48 = vmul.f32 %v3606_v40, %v3602_v9  ;;  %v3608_v46 = vpop.eup %3607 }
 0x9b9   :  { %v2637_v8 = vmul.f32 %v3608_v46, %v5762_v58  ;;  %v2752_v58 = vld [vmem:[%s5952_s6 + $0x10] sm:$0xff] }
 0x9ba   :  { %v3610_v31 = vpop.eup %3609  ;;  %v3194_v15 = vpack.c.bf16 %v2753_v12, %v2752_v58 }
 0x9bb   :  { %v2639_v53 = vadd.f32 %v2638_v48, %v2637_v8 }
 0x9bd   :  { %3611 = vtanh.f32 %v2639_v53  ;;  %v3072_v53 = vld [vmem:[#allocation2] ss:$0 sm:$0xff] }
 0x9c7   :  { %v3612_v1 = vpop.eup %3611 }
 0x9c8   :  { %v2641_v59 = vmul.f32 %v3612_v1, %v3610_v31 }
 0x9ca   :  { %v2642_v5 = vpack.c.bf16 %v2641_v59, %v2641_v59 }
 0x9cc   :  { %2677 = vmatmul.mubr.bf16.vlgmr.msra.gmra.mrb[76].mxu0 %v2642_v5  ;;  %2718 = vmatmul.mubr.bf16.vlgmr.msra.gmra.mrb[76].mxu1 %v2642_v5 }
 0x9cd   :  { %3192 = vmatpush3.bf16.msra.mxu0 %v3191_v10  ;;  %3123 = vmatprep.mubr.msk.f32.mxu0 %vm3883_vm8, %v6769_v35 }
 0x9ce   :  { %3193 = vmatprep.subr.bf16.mxu0 %v6760_v2 }
 0x9d1   :  { %3195 = vmatpush3.bf16.msra.mxu0 %v3194_v15 }
 0x9d2   :  { %3196 = vmatprep.subr.bf16.mxu0 %v6760_v2 }
 0x9d5   :  { %3198 = vmatpush3.bf16.msra.mxu0 %v3197_v20 }
 0x9d6   :  { %3199 = vmatprep.subr.bf16.mxu0 %v6760_v2 }
 0x9d9   :  { %3201 = vmatpush3.bf16.msra.mxu0 %v3200_v25 }
 0x9da   :  { %3202 = vmatprep.subr.bf16.mxu0 %v6760_v2 }
 0x9dd   :  { %3204 = vmatpush3.bf16.msra.mxu0 %v3203_v28 }
 0x9de   :  { %3205 = vmatprep.subr.bf16.mxu0 %v6760_v2 }
 0x9e1   :  { %3207 = vmatpush3.bf16.msra.mxu0 %v3206_v32 }
 0x9e2   :  { %3208 = vmatprep.subr.bf16.mxu0 %v6760_v2 }
 0x9e5   :  { %3210 = vmatpush3.bf16.msra.mxu0 %v3209_v54 }
 0x9e6   :  { %3211 = vmatprep.subr.bf16.mxu0 %v6760_v2 }
 0x9e9   :  { %3213 = vmatpush3.bf16.msra.mxu0 %v3212_v57 }
 0xa2f   :  { %v2848_v12 = vpop.xlane.xlu0 %2847 }
 0xa30   :  { %vm2849_vm10 = vcmp.gt.f32.partialorder %v2848_v12, 0.0 }
 0xa31   :  { %v3073_v15 = vsel %vm2849_vm10, 1.0, %v6769_v35 }
 0xa9f   :  { %v2678_v47 = vpop.f32.mrb[76].mxu0  ;;  %v2719_v63 = vpop.f32.mrb[76].mxu1 }
 0xaa0   :  { %v2679_v13 = vadd.f32 %v2678_v47, %v6761_v11  ;;  %v2680_v23 = vpop.f32.mrb[77].mxu0  ;;  %v2721_v55 = vpop.f32.mrb[77].mxu1  ;;  %v2720_v61 = vadd.f32 %v2719_v63, %v6763_v14 }
 0xaa1   :  { %v2681_v21 = vadd.f32 %v2680_v23, %v6762_v42  ;;  %v2682_v7 = vpop.f32.mrb[78].mxu0  ;;  %v2723_v4 = vpop.f32.mrb[78].mxu1  ;;  %v2722_v0 = vadd.f32 %v2721_v55, %v6764_v16 }
 0xaa2   :  { %v3069_v2 = vmul.f32 -1.442695, %v2679_v13  ;;  %v2683_v60 = vpop.f32.mrb[79].mxu0  ;;  %v2724_v18 = vpop.f32.mrb[79].mxu1  ;;  %v3071_v3 = vmul.f32 -1.442695, %v2720_v61 }
 0xaa3   :  { %v3070_v56 = vmul.f32 -1.442695, %v2681_v21 }
 0xaa4   :  { %3613 = vpow2.f32 %v3069_v2 }
 0xaa5   :  { %3615 = vpow2.f32 %v3070_v56 }
 0xaa6   :  { %3617 = vtanh.f32 %v2722_v0 }
 0xaa7   :  { %3619 = vpow2.f32 %v3071_v3 }
 0xaae   :  { %v3614_v52 = vpop.eup %3613 }
 0xaaf   :  { %v2729_v50 = vadd.f32 1.0, %v3614_v52  ;;  %v3616_v11 = vpop.eup %3615 }
 0xab0   :  { %v2735_v42 = vadd.f32 1.0, %v3616_v11  ;;  %v3618_v37 = vpop.eup %3617 }
 0xab1   :  { %3621 = vrcp.f32 %v2729_v50  ;;  %v3620_v62 = vpop.eup %3619 }
 0xab2   :  { %3623 = vrcp.f32 %v2735_v42  ;;  %v2741_v48 = vadd.f32 1.0, %v3620_v62 }
 0xab4   :  { %3625 = vrcp.f32 %v2741_v48 }
 0xabb   :  { %v3622_v9 = vpop.eup %3621 }
 0xabc   :  { %v2746_v51 = vmul.f32 %v3622_v9, %v3618_v37  ;;  %v3624_v40 = vpop.eup %3623 }
 0xabd   :  { %v2745_v46 = vmul.f32 %v3624_v40, %v5867_v36 }
 0xabe   :  { %v3626_v16 = vpop.eup %3625 }
 0xabf   :  { %v2747_v14 = vadd.f32 %v2746_v51, %v2745_v46 }
 0xac1   :  { %3627 = vtanh.f32 %v2747_v14 }
 0xacb   :  { %v3628_v38 = vpop.eup %3627 }
 0xacc   :  { %v2749_v8 = vmul.f32 %v3628_v38, %v3626_v16 }
 0xace   :  { %3124 = vmatmul.mubr.f32.vlgmr.msra.gmra.mrb[80].mxu0 %v2749_v8 }
 0xba1   :  { %v2839_v31 = vpop.f32.mrb[80].mxu0 }
 0xba2   :  { %v2840_v1 = vadd.f32 %v3072_v53, %v2839_v31  ;;  %v3125_v59 = vpop.f32.mrb[81].mxu0 }
 0xba4   :  { %v2855_v5 = vand.u32 2147483647, %v2840_v1  ;;  %2893 = vperm.xlu0 %3227, %v2840_v1   ;;  %v2852_v19 = vmax.f32 %v2840_v1, 0.0  ;;  %v2853_v20 = vmul.f32 %v3073_v15, %v2840_v1 }
 0xba6   :  { %v2856_v49 = vsub.f32 0.0, %v2855_v5  ;;  %v2854_v27 = vsub.f32 %v2852_v19, %v2853_v20 }
 0xba8   :  { %v2857_v6 = vmul.f32 1.442695, %v2856_v49 }
 0xbaa   :  { %3629 = vpow2.f32 %v2857_v6 }
 0xbb4   :  { %v3630_v10 = vpop.eup %3629 }
 0xbb5   :  { %v2859_v58 = vadd.f32 1.0, %v3630_v10  ;;  %v2862_v36 = vmul.f32 -0.5, %v3630_v10  ;;  %v2865_v22 = vand.u32 2147483647, %v3630_v10 }
 0xbb7   :  { %3631 = vlog2.f32 %v2859_v58  ;;  %v2863_v17 = vadd.f32 1.0, %v2862_v36  ;;  %vm2866_vm11 = vcmp.lt.f32.partialorder %v2865_v22, 0.0004427343 }
 0xbb9   :  { %v2864_v26 = vmul.f32 %v3630_v10, %v2863_v17 }
 0xbc1   :  { %v3632_v24 = vpop.eup %3631 }
 0xbc2   :  { %v2861_v25 = vmul.f32 0.6931472, %v3632_v24 }
 0xbc4   :  { %v2867_v28 = vsel %vm2866_vm11, %v2864_v26, %v2861_v25 }
 0xbc5   :  { %v2868_v30 = vadd.f32 %v2867_v28, %v2854_v27 }
 0xbc7   :  { %v2872_v32 = vsel %vm2871_vm12, %v2868_v30, 0.0 }
 0xbc8   :  { %v2874_v33 = vsel %vm2873_vm13, %v2872_v32, 0.0 }
 0xbc9   :  { %2875 = vadd.xlane.f32.xlu1 %v2874_v33 }
 0xc23   :  { %v2894_v47 = vpop.permute.xlu0 %2893 }
 0xc56   :  { %v2876_v34 = vpop.xlane.xlu1 %2875 }
 0xc57   :  { %v2877_v54 = vrot.slane %v2876_v34, 4 }
 0xc59   :  { %v2878_v35 = vadd.f32 %v2877_v54, %v2876_v34 }
 0xc5b   :  { %v2879_v39 = vrot.slane %v2878_v35, 2 }
 0xc5d   :  { %v2880_v41 = vadd.f32 %v2879_v39, %v2878_v35 }
 0xc5f   :  { %v2881_v57 = vrot.slane %v2880_v41, 1 }
 0xc61   :  { %v2882_v45 = vadd.f32 %v2881_v57, %v2880_v41 }
 0xc63   :  { %3214 = vpush %v2882_v45 }
 0xc94   :  { %s3215_s1 = spop %3214 }
 0xc95   :  { %s2886_s6 = smul.f32 0.5, %s3215_s1 }
 0xc97   :  { %v2889_v44 = vstv %s2886_s6 }
 0xc98   :  { %v2890_v63 = vsel %vm2888_vm14, %v2889_v44, 0.0 }
 0xc99   :  { %v2896_v13 = vsel %vm2887_vm15, %v2894_v47, %v2890_v63 }
 0xc9a   :  { %2897 = vst [vmem:[%s5954_s8] sm:$0xff] %v2896_v13 }
 0xc9b   :  { %2902 = vsyncpa [#allocation4], 1 }
 0xc9c   :  { %2903 = vsyncpa [#allocation6], 1 }

</bundles_post_ra>
